<compile_context>
chip_gen: v5e
topology: v5e:2x2
jax: 0.10.0
libtpu: 0.0.40
codegen_flags: <defaults>
</compile_context>

<pallas_src>
import functools

import jax
import jax.numpy as jnp
from jax import lax
from jax.experimental import pallas as pl
from jax.experimental.pallas import tpu as pltpu

BN_EPS = 1e-5
LANE = 128


def _round_up(x, m):
    return (x + m - 1) // m * m


# --------------------------------------------------------------------------
# Pallas kernels
# --------------------------------------------------------------------------
def _pw_kernel(a_ref, b_ref, s_ref, c_ref, o_ref):
    """o = relu((A @ B) * scale + bias); A cast to bf16, f32 accumulate."""
    a = a_ref[...].astype(jnp.bfloat16)
    acc = jnp.dot(a, b_ref[...], preferred_element_type=jnp.float32)
    o_ref[...] = jnp.maximum(acc * s_ref[...] + c_ref[...], 0.0)


def _pw_add_kernel(a_ref, skip_ref, b_ref, s_ref, c_ref, o_ref):
    """o = relu(((A + skip) @ B) * scale + bias) — residual add fused in."""
    a = (a_ref[...] + skip_ref[...]).astype(jnp.bfloat16)
    acc = jnp.dot(a, b_ref[...], preferred_element_type=jnp.float32)
    o_ref[...] = jnp.maximum(acc * s_ref[...] + c_ref[...], 0.0)


def _conv3x3_kernel(x_ref, w_ref, s_ref, c_ref, o_ref):
    """3x3 / stride 1 / pad 1 conv via implicit im2col: 9 shifted bf16 dots."""
    _, H, W, Cout = o_ref.shape
    Cin = x_ref.shape[3]
    x = x_ref[0]                                   # (H+2, W+2, Cin) f32
    acc = jnp.zeros((H * W, Cout), jnp.float32)
    for i in range(3):
        for j in range(3):
            a = x[i:i + H, j:j + W, :].reshape(H * W, Cin).astype(jnp.bfloat16)
            acc = acc + jnp.dot(a, w_ref[i, j],
                                preferred_element_type=jnp.float32)
    y = jnp.maximum(acc * s_ref[...] + c_ref[...], 0.0)
    o_ref[...] = y.reshape(1, H, W, Cout)


# --------------------------------------------------------------------------
# Kernel wrappers
# --------------------------------------------------------------------------
def pointwise_conv_bn_relu(x, w_mat, scale, bias, skip=None):
    """1x1 conv + folded BN + ReLU; optionally fuses `x + skip` on the input.

    x / skip : (N, H, W, Cin) NHWC f32, Cin a multiple of 128
    w_mat    : (Cin, Cout) bf16, Cout a multiple of 128
    scale/bias: (1, Cout) f32
    """
    N, H, W, Cin = x.shape
    Cout = w_mat.shape[1]
    M = N * H * W
    tm = 256 if M >= 256 else _round_up(M, 8)
    Mp = _round_up(M, tm)

    a = x.reshape(M, Cin)
    if Mp != M:
        a = jnp.pad(a, ((0, Mp - M), (0, 0)))
    args = [a]
    in_specs = [pl.BlockSpec((tm, Cin), lambda i: (i, 0))]
    kern = _pw_kernel
    if skip is not None:
        s2 = skip.reshape(M, Cin)
        if Mp != M:
            s2 = jnp.pad(s2, ((0, Mp - M), (0, 0)))
        args.append(s2)
        in_specs.append(pl.BlockSpec((tm, Cin), lambda i: (i, 0)))
        kern = _pw_add_kernel
    args += [w_mat, scale, bias]
    in_specs += [
        pl.BlockSpec((Cin, Cout), lambda i: (0, 0)),
        pl.BlockSpec((1, Cout), lambda i: (0, 0)),
        pl.BlockSpec((1, Cout), lambda i: (0, 0)),
    ]

    out = pl.pallas_call(
        kern,
        out_shape=jax.ShapeDtypeStruct((Mp, Cout), jnp.float32),
        grid=(Mp // tm,),
        in_specs=in_specs,
        out_specs=pl.BlockSpec((tm, Cout), lambda i: (i, 0)),
        compiler_params=pltpu.CompilerParams(
            dimension_semantics=("parallel",)),
    )(*args)
    return out[:M].reshape(N, H, W, Cout)


def conv3x3_bn_relu(x, w4, scale, bias):
    """3x3 stride-1 pad-1 conv + folded BN + ReLU, implicit im2col in-kernel.

    x  : (N, H, W, Cin) NHWC f32, Cin a multiple of 128
    w4 : (3, 3, Cin, Cout) bf16, Cout a multiple of 128
    """
    N, H, W, Cin = x.shape
    Cout = w4.shape[3]
    xp = jnp.pad(x, ((0, 0), (1, 1), (1, 1), (0, 0)))
    return pl.pallas_call(
        _conv3x3_kernel,
        out_shape=jax.ShapeDtypeStruct((N, H, W, Cout), jnp.float32),
        grid=(N,),
        in_specs=[
            pl.BlockSpec((1, H + 2, W + 2, Cin), lambda n: (n, 0, 0, 0)),
            pl.BlockSpec((3, 3, Cin, Cout), lambda n: (0, 0, 0, 0)),
            pl.BlockSpec((1, Cout), lambda n: (0, 0)),
            pl.BlockSpec((1, Cout), lambda n: (0, 0)),
        ],
        out_specs=pl.BlockSpec((1, H, W, Cout), lambda n: (n, 0, 0, 0)),
        compiler_params=pltpu.CompilerParams(
            dimension_semantics=("parallel",)),
    )(xp, w4, scale, bias)


# --------------------------------------------------------------------------
# Host-side glue
# --------------------------------------------------------------------------
def upsample_bilinear_x2(x):
    """nn.UpsamplingBilinear2d(scale_factor=2) == bilinear, align_corners=True."""
    N, H, W, C = x.shape

    def interp(n_in):
        n_out = 2 * n_in
        src = jnp.arange(n_out, dtype=jnp.float32) * (n_in - 1) / (n_out - 1)
        lo = jnp.floor(src).astype(jnp.int32)
        hi = jnp.minimum(lo + 1, n_in - 1)
        frac = src - lo.astype(jnp.float32)
        return lo, hi, frac

    hlo, hhi, hf = interp(H)
    wlo, whi, wf = interp(W)
    xh = x[:, hlo] * (1 - hf)[None, :, None, None] + x[:, hhi] * hf[None, :, None, None]
    out = (xh[:, :, wlo] * (1 - wf)[None, None, :, None]
           + xh[:, :, whi] * wf[None, None, :, None])
    return out


# --------------------------------------------------------------------------
# Deterministic parameters (Conv2d bias=False + BatchNorm folded, eval mode)
# --------------------------------------------------------------------------
class ParamGen:
    def __init__(self, seed=0):
        self.key = jax.random.PRNGKey(seed)

    def normal(self, shape, scale=0.1):
        self.key, sub = jax.random.split(self.key)
        return scale * jax.random.normal(sub, shape, jnp.float32)


def make_conv_bn(pg, cin, cout, k):
    w = pg.normal((cout, cin, k, k))
    gamma = 1.0 + pg.normal((cout,))
    beta = pg.normal((cout,))
    mean = pg.normal((cout,))
    var = 1.0 + jnp.abs(pg.normal((cout,)))
    scale = gamma / jnp.sqrt(var + BN_EPS)
    bias = beta - mean * scale
    return dict(w=w, scale=scale, bias=bias)


def make_decoder_block(pg, inc, outc, unic):
    return dict(conv1=make_conv_bn(pg, inc, outc, 1),
                conv2=make_conv_bn(pg, outc, outc, 1),
                conv3=make_conv_bn(pg, outc, outc, 3),
                conv4=make_conv_bn(pg, outc, unic, 1),
                inc=inc, outc=outc, unic=unic)


def _fold_pointwise(p, cin_p, cout_p):
    w = p["w"][:, :, 0, 0]                                     # (Cout, Cin)
    cout, cin = w.shape
    wm = jnp.zeros((cin_p, cout_p), jnp.float32).at[:cin, :cout].set(w.T)
    s = jnp.zeros((1, cout_p), jnp.float32).at[0, :cout].set(p["scale"])
    b = jnp.zeros((1, cout_p), jnp.float32).at[0, :cout].set(p["bias"])
    return wm.astype(jnp.bfloat16), s, b


def _fold_3x3(p, cin_p, cout_p):
    w = jnp.transpose(p["w"], (2, 3, 1, 0))                    # (3,3,Cin,Cout)
    cin, cout = w.shape[2], w.shape[3]
    w4 = jnp.zeros((3, 3, cin_p, cout_p), jnp.float32).at[:, :, :cin, :cout].set(w)
    s = jnp.zeros((1, cout_p), jnp.float32).at[0, :cout].set(p["scale"])
    b = jnp.zeros((1, cout_p), jnp.float32).at[0, :cout].set(p["bias"])
    return w4.astype(jnp.bfloat16), s, b


# --------------------------------------------------------------------------
# decoderBlock forward (Pallas path) and pure-JAX reference
# --------------------------------------------------------------------------
def decoder_block_fwd(x1_nchw, x2_nchw, p, is_up=True, crop=False):
    inc, outc, unic = p["inc"], p["outc"], p["unic"]
    inc_p = _round_up(inc, LANE)
    outc_p = _round_up(outc, LANE)
    unic_p = _round_up(unic, LANE)

    # NCHW -> NHWC, zero-pad channels to lane-dense width.
    x1 = jnp.transpose(x1_nchw, (0, 2, 3, 1)).astype(jnp.float32)
    x2 = jnp.transpose(x2_nchw, (0, 2, 3, 1)).astype(jnp.float32)
    x1 = jnp.pad(x1, ((0, 0), (0, 0), (0, 0), (0, inc_p - inc)))
    x2 = jnp.pad(x2, ((0, 0), (0, 0), (0, 0), (0, outc_p - outc)))

    w1, s1, b1 = _fold_pointwise(p["conv1"], inc_p, outc_p)
    w2, s2, b2 = _fold_pointwise(p["conv2"], outc_p, outc_p)
    w3, s3, b3 = _fold_3x3(p["conv3"], outc_p, outc_p)
    w4, s4, b4 = _fold_pointwise(p["conv4"], outc_p, unic_p)

    y = pointwise_conv_bn_relu(x1, w1, s1, b1)             # conv1 + bn1 + relu
    if is_up:
        y = upsample_bilinear_x2(y)
    if crop:
        y = y[:, :-1, :-1, :]
    y = pointwise_conv_bn_relu(y, w2, s2, b2, skip=x2)     # (y+x2) + conv2 + bn2 + relu
    y = conv3x3_bn_relu(y, w3, s3, b3)                     # conv3 + bn3 + relu
    y = pointwise_conv_bn_relu(y, w4, s4, b4)              # conv4 + bn4 + relu

    y = y[..., :unic]
    return jnp.transpose(y, (0, 3, 1, 2))                  # NHWC -> NCHW


def _conv_bn_relu_ref(x, p, padding=0):
    w = jnp.transpose(p["w"], (2, 3, 1, 0))                # HWIO
    y = lax.conv_general_dilated(
        x, w, window_strides=(1, 1),
        padding=[(padding, padding), (padding, padding)],
        dimension_numbers=("NHWC", "HWIO", "NHWC"))
    return jnp.maximum(y * p["scale"] + p["bias"], 0.0)


def decoder_block_ref(x1_nchw, x2_nchw, p, is_up=True, crop=False):
    x1 = jnp.transpose(x1_nchw, (0, 2, 3, 1)).astype(jnp.float32)
    x2 = jnp.transpose(x2_nchw, (0, 2, 3, 1)).astype(jnp.float32)
    y = _conv_bn_relu_ref(x1, p["conv1"])
    if is_up:
        y = upsample_bilinear_x2(y)
    if crop:
        y = y[:, :-1, :-1, :]
    y = _conv_bn_relu_ref(y + x2, p["conv2"])
    y = _conv_bn_relu_ref(y, p["conv3"], padding=1)
    y = _conv_bn_relu_ref(y, p["conv4"])
    return jnp.transpose(y, (0, 3, 1, 2))


# --------------------------------------------------------------------------
if __name__ == "__main__":
    INC, OUTC, UNIC = 32, 16, 16
    N, H1, W1 = 2, 8, 8          # x1: previous (deeper) decoder layer
    H2, W2 = 2 * H1, 2 * W1      # x2: encoder feature map (is_up=True path)

    pg = ParamGen(seed=0)
    params = make_decoder_block(pg, INC, OUTC, UNIC)

    k1, k2 = jax.random.split(jax.random.PRNGKey(0))
    x1 = jax.random.normal(k1, (N, INC, H1, W1), jnp.float32)
    x2 = jax.random.normal(k2, (N, OUTC, H2, W2), jnp.float32)

    fwd = jax.jit(functools.partial(decoder_block_fwd, p=params,
                                    is_up=True, crop=False))
    out = fwd(x1, x2)
    jax.block_until_ready(out)

    assert out.shape == (N, UNIC, H2, W2), out.shape
    assert bool(jnp.all(jnp.isfinite(out)))

    ref = decoder_block_ref(x1, x2, params, is_up=True, crop=False)
    err = float(jnp.max(jnp.abs(out - ref)))
    assert err < 1e-1, f"max abs err vs f32 reference: {err}"
    print("KERNEL_OK")
</pallas_src>

<mosaic_0001>
module attributes {stable_mosaic.version = 11 : i64} {
  func.func @_pw_kernel(%arg0: i32, %arg1: memref<128x128xf32, #tpu.memory_space<vmem>>, %arg2: memref<128x128xbf16, #tpu.memory_space<vmem>>, %arg3: memref<1x128xf32, #tpu.memory_space<vmem>>, %arg4: memref<1x128xf32, #tpu.memory_space<vmem>>, %arg5: memref<128x128xf32, #tpu.memory_space<vmem>>) attributes {dimension_semantics = [#tpu.dimension_semantics<parallel>], iteration_bounds = array<i64: 1>, scalar_prefetch = 0 : i64, scratch_operands = 0 : i64, tpu.core_type = #tpu.core_type<tc>, window_params = [{transform_indices = @transform_0, window_bounds = array<i64: 128, 128>}, {pipeline_mode = #tpu.pipeline_mode<synchronous>, transform_indices = @transform_1, window_bounds = array<i64: 128, 128>}, {pipeline_mode = #tpu.pipeline_mode<synchronous>, transform_indices = @transform_2, window_bounds = array<i64: 1, 128>}, {pipeline_mode = #tpu.pipeline_mode<synchronous>, transform_indices = @transform_3, window_bounds = array<i64: 1, 128>}, {transform_indices = @transform_4, window_bounds = array<i64: 128, 128>}]} {
    %c0 = arith.constant 0 : index
    %c0_0 = arith.constant 0 : index
    %0 = vector.load %arg1[%c0, %c0_0] : memref<128x128xf32, #tpu.memory_space<vmem>>, vector<128x128xf32>
    %1 = arith.truncf %0 : vector<128x128xf32> to vector<128x128xbf16>
    %c0_1 = arith.constant 0 : index
    %c0_2 = arith.constant 0 : index
    %2 = vector.load %arg2[%c0_1, %c0_2] : memref<128x128xbf16, #tpu.memory_space<vmem>>, vector<128x128xbf16>
    %cst = arith.constant dense<0.000000e+00> : vector<128x128xf32>
    %3 = tpu.matmul %1, %2, %cst {dimension_numbers = #tpu.dot_dimension_numbers<[1], [0], [0], [1], [0, 0, 1, 1], [], []>} : vector<128x128xbf16>, vector<128x128xbf16>, vector<128x128xf32> -> vector<128x128xf32>
    %c0_3 = arith.constant 0 : index
    %c0_4 = arith.constant 0 : index
    %4 = vector.load %arg3[%c0_3, %c0_4] : memref<1x128xf32, #tpu.memory_space<vmem>>, vector<1x128xf32>
    %5 = vector.broadcast %4 : vector<1x128xf32> to vector<128x128xf32>
    %6 = arith.mulf %3, %5 : vector<128x128xf32>
    %c0_5 = arith.constant 0 : index
    %c0_6 = arith.constant 0 : index
    %7 = vector.load %arg4[%c0_5, %c0_6] : memref<1x128xf32, #tpu.memory_space<vmem>>, vector<1x128xf32>
    %8 = vector.broadcast %7 : vector<1x128xf32> to vector<128x128xf32>
    %9 = arith.addf %6, %8 : vector<128x128xf32>
    %cst_7 = arith.constant 0.000000e+00 : f32
    %10 = vector.broadcast %cst_7 : f32 to vector<128x128xf32>
    %11 = arith.maximumf %9, %10 : vector<128x128xf32>
    %c0_8 = arith.constant 0 : index
    %c0_9 = arith.constant 0 : index
    %12 = vector.load %arg5[%c0_8, %c0_9] : memref<128x128xf32, #tpu.memory_space<vmem>>, vector<128x128xf32>
    tpu.vector_store %arg5[%c0_8, %c0_9], %11 {strides = array<i32>} : memref<128x128xf32, #tpu.memory_space<vmem>>, vector<128x128xf32>,
    return
  }
  func.func @transform_0(%arg0: i32) -> (i32, i32) {
    %c0_i32 = arith.constant 0 : i32
    %c0_i32_0 = arith.constant 0 : i32
    return %arg0, %c0_i32 : i32, i32
  }
  func.func @transform_1(%arg0: i32) -> (i32, i32) {
    %c0_i32 = arith.constant 0 : i32
    %c0_i32_0 = arith.constant 0 : i32
    %c0_i32_1 = arith.constant 0 : i32
    return %c0_i32, %c0_i32_0 : i32, i32
  }
  func.func @transform_2(%arg0: i32) -> (i32, i32) {
    %c0_i32 = arith.constant 0 : i32
    %c0_i32_0 = arith.constant 0 : i32
    %c0_i32_1 = arith.constant 0 : i32
    return %c0_i32, %c0_i32_0 : i32, i32
  }
  func.func @transform_3(%arg0: i32) -> (i32, i32) {
    %c0_i32 = arith.constant 0 : i32
    %c0_i32_0 = arith.constant 0 : i32
    %c0_i32_1 = arith.constant 0 : i32
    return %c0_i32, %c0_i32_0 : i32, i32
  }
  func.func @transform_4(%arg0: i32) -> (i32, i32) {
    %c0_i32 = arith.constant 0 : i32
    %c0_i32_0 = arith.constant 0 : i32
    return %arg0, %c0_i32 : i32, i32
  }
}

module attributes {stable_mosaic.version = 11 : i64} {
  func.func @_pw_add_kernel(%arg0: i32, %arg1: memref<256x128xf32, #tpu.memory_space<vmem>>, %arg2: memref<256x128xf32, #tpu.memory_space<vmem>>, %arg3: memref<128x128xbf16, #tpu.memory_space<vmem>>, %arg4: memref<1x128xf32, #tpu.memory_space<vmem>>, %arg5: memref<1x128xf32, #tpu.memory_space<vmem>>, %arg6: memref<256x128xf32, #tpu.memory_space<vmem>>) attributes {dimension_semantics = [#tpu.dimension_semantics<parallel>], iteration_bounds = array<i64: 2>, scalar_prefetch = 0 : i64, scratch_operands = 0 : i64, tpu.core_type = #tpu.core_type<tc>, window_params = [{transform_indices = @transform_0, window_bounds = array<i64: 256, 128>}, {transform_indices = @transform_1, window_bounds = array<i64: 256, 128>}, {pipeline_mode = #tpu.pipeline_mode<synchronous>, transform_indices = @transform_2, window_bounds = array<i64: 128, 128>}, {pipeline_mode = #tpu.pipeline_mode<synchronous>, transform_indices = @transform_3, window_bounds = array<i64: 1, 128>}, {pipeline_mode = #tpu.pipeline_mode<synchronous>, transform_indices = @transform_4, window_bounds = array<i64: 1, 128>}, {transform_indices = @transform_5, window_bounds = array<i64: 256, 128>}]} {
    %c0 = arith.constant 0 : index
    %c0_0 = arith.constant 0 : index
    %0 = vector.load %arg1[%c0, %c0_0] : memref<256x128xf32, #tpu.memory_space<vmem>>, vector<256x128xf32>
    %c0_1 = arith.constant 0 : index
    %c0_2 = arith.constant 0 : index
    %1 = vector.load %arg2[%c0_1, %c0_2] : memref<256x128xf32, #tpu.memory_space<vmem>>, vector<256x128xf32>
    %2 = arith.addf %0, %1 : vector<256x128xf32>
    %3 = arith.truncf %2 : vector<256x128xf32> to vector<256x128xbf16>
    %c0_3 = arith.constant 0 : index
    %c0_4 = arith.constant 0 : index
    %4 = vector.load %arg3[%c0_3, %c0_4] : memref<128x128xbf16, #tpu.memory_space<vmem>>, vector<128x128xbf16>
    %cst = arith.constant dense<0.000000e+00> : vector<256x128xf32>
    %5 = tpu.matmul %3, %4, %cst {dimension_numbers = #tpu.dot_dimension_numbers<[1], [0], [0], [1], [0, 0, 1, 1], [], []>} : vector<256x128xbf16>, vector<128x128xbf16>, vector<256x128xf32> -> vector<256x128xf32>
    %c0_5 = arith.constant 0 : index
    %c0_6 = arith.constant 0 : index
    %6 = vector.load %arg4[%c0_5, %c0_6] : memref<1x128xf32, #tpu.memory_space<vmem>>, vector<1x128xf32>
    %7 = vector.broadcast %6 : vector<1x128xf32> to vector<256x128xf32>
    %8 = arith.mulf %5, %7 : vector<256x128xf32>
    %c0_7 = arith.constant 0 : index
    %c0_8 = arith.constant 0 : index
    %9 = vector.load %arg5[%c0_7, %c0_8] : memref<1x128xf32, #tpu.memory_space<vmem>>, vector<1x128xf32>
    %10 = vector.broadcast %9 : vector<1x128xf32> to vector<256x128xf32>
    %11 = arith.addf %8, %10 : vector<256x128xf32>
    %cst_9 = arith.constant 0.000000e+00 : f32
    %12 = vector.broadcast %cst_9 : f32 to vector<256x128xf32>
    %13 = arith.maximumf %11, %12 : vector<256x128xf32>
    %c0_10 = arith.constant 0 : index
    %c0_11 = arith.constant 0 : index
    %14 = vector.load %arg6[%c0_10, %c0_11] : memref<256x128xf32, #tpu.memory_space<vmem>>, vector<256x128xf32>
    tpu.vector_store %arg6[%c0_10, %c0_11], %13 {strides = array<i32>} : memref<256x128xf32, #tpu.memory_space<vmem>>, vector<256x128xf32>,
    return
  }
  func.func @transform_0(%arg0: i32) -> (i32, i32) {
    %c0_i32 = arith.constant 0 : i32
    %c0_i32_0 = arith.constant 0 : i32
    return %arg0, %c0_i32 : i32, i32
  }
  func.func @transform_1(%arg0: i32) -> (i32, i32) {
    %c0_i32 = arith.constant 0 : i32
    %c0_i32_0 = arith.constant 0 : i32
    return %arg0, %c0_i32 : i32, i32
  }
  func.func @transform_2(%arg0: i32) -> (i32, i32) {
    %c0_i32 = arith.constant 0 : i32
    %c0_i32_0 = arith.constant 0 : i32
    %c0_i32_1 = arith.constant 0 : i32
    return %c0_i32, %c0_i32_0 : i32, i32
  }
  func.func @transform_3(%arg0: i32) -> (i32, i32) {
    %c0_i32 = arith.constant 0 : i32
    %c0_i32_0 = arith.constant 0 : i32
    %c0_i32_1 = arith.constant 0 : i32
    return %c0_i32, %c0_i32_0 : i32, i32
  }
  func.func @transform_4(%arg0: i32) -> (i32, i32) {
    %c0_i32 = arith.constant 0 : i32
    %c0_i32_0 = arith.constant 0 : i32
    %c0_i32_1 = arith.constant 0 : i32
    return %c0_i32, %c0_i32_0 : i32, i32
  }
  func.func @transform_5(%arg0: i32) -> (i32, i32) {
    %c0_i32 = arith.constant 0 : i32
    %c0_i32_0 = arith.constant 0 : i32
    return %arg0, %c0_i32 : i32, i32
  }
}

module attributes {stable_mosaic.version = 11 : i64} {
  func.func @_conv3x3_kernel(%arg0: i32, %arg1: memref<1x18x18x128xf32, #tpu.memory_space<vmem>>, %arg2: memref<3x3x128x128xbf16, #tpu.memory_space<vmem>>, %arg3: memref<1x128xf32, #tpu.memory_space<vmem>>, %arg4: memref<1x128xf32, #tpu.memory_space<vmem>>, %arg5: memref<1x16x16x128xf32, #tpu.memory_space<vmem>>) attributes {dimension_semantics = [#tpu.dimension_semantics<parallel>], iteration_bounds = array<i64: 2>, scalar_prefetch = 0 : i64, scratch_operands = 0 : i64, tpu.core_type = #tpu.core_type<tc>, window_params = [{transform_indices = @transform_0, window_bounds = array<i64: 1, 18, 18, 128>}, {pipeline_mode = #tpu.pipeline_mode<synchronous>, transform_indices = @transform_1, window_bounds = array<i64: 3, 3, 128, 128>}, {pipeline_mode = #tpu.pipeline_mode<synchronous>, transform_indices = @transform_2, window_bounds = array<i64: 1, 128>}, {pipeline_mode = #tpu.pipeline_mode<synchronous>, transform_indices = @transform_3, window_bounds = array<i64: 1, 128>}, {transform_indices = @transform_4, window_bounds = array<i64: 1, 16, 16, 128>}]} {
    %c0 = arith.constant 0 : index
    %c0_0 = arith.constant 0 : index
    %c0_1 = arith.constant 0 : index
    %c0_2 = arith.constant 0 : index
    %0 = vector.load %arg1[%c0, %c0_0, %c0_1, %c0_2] : memref<1x18x18x128xf32, #tpu.memory_space<vmem>>, vector<1x18x18x128xf32>
    %1 = vector.shape_cast %0 : vector<1x18x18x128xf32> to vector<18x18x128xf32>
    %cst = arith.constant 0.000000e+00 : f32
    %2 = vector.broadcast %cst : f32 to vector<256x128xf32>
    %3 = vector.extract_strided_slice %1 {offsets = [0, 0, 0], sizes = [16, 16, 128], strides = [1, 1, 1]} : vector<18x18x128xf32> to vector<16x16x128xf32>
    %4 = vector.shape_cast %3 : vector<16x16x128xf32> to vector<256x128xf32>
    %5 = arith.truncf %4 : vector<256x128xf32> to vector<256x128xbf16>
    %c0_3 = arith.constant 0 : index
    %c0_4 = arith.constant 0 : index
    %c0_5 = arith.constant 0 : index
    %c0_6 = arith.constant 0 : index
    %6 = vector.load %arg2[%c0_3, %c0_4, %c0_5, %c0_6] : memref<3x3x128x128xbf16, #tpu.memory_space<vmem>>, vector<1x1x128x128xbf16>
    %7 = vector.shape_cast %6 : vector<1x1x128x128xbf16> to vector<128x128xbf16>
    %cst_7 = arith.constant dense<0.000000e+00> : vector<256x128xf32>
    %8 = tpu.matmul %5, %7, %cst_7 {dimension_numbers = #tpu.dot_dimension_numbers<[1], [0], [0], [1], [0, 0, 1, 1], [], []>} : vector<256x128xbf16>, vector<128x128xbf16>, vector<256x128xf32> -> vector<256x128xf32>
    %9 = arith.addf %2, %8 : vector<256x128xf32>
    %10 = vector.extract_strided_slice %1 {offsets = [0, 1, 0], sizes = [16, 16, 128], strides = [1, 1, 1]} : vector<18x18x128xf32> to vector<16x16x128xf32>
    %11 = vector.shape_cast %10 : vector<16x16x128xf32> to vector<256x128xf32>
    %12 = arith.truncf %11 : vector<256x128xf32> to vector<256x128xbf16>
    %c0_8 = arith.constant 0 : index
    %c1 = arith.constant 1 : index
    %c0_9 = arith.constant 0 : index
    %c0_10 = arith.constant 0 : index
    %13 = vector.load %arg2[%c0_8, %c1, %c0_9, %c0_10] : memref<3x3x128x128xbf16, #tpu.memory_space<vmem>>, vector<1x1x128x128xbf16>
    %14 = vector.shape_cast %13 : vector<1x1x128x128xbf16> to vector<128x128xbf16>
    %cst_11 = arith.constant dense<0.000000e+00> : vector<256x128xf32>
    %15 = tpu.matmul %12, %14, %cst_11 {dimension_numbers = #tpu.dot_dimension_numbers<[1], [0], [0], [1], [0, 0, 1, 1], [], []>} : vector<256x128xbf16>, vector<128x128xbf16>, vector<256x128xf32> -> vector<256x128xf32>
    %16 = arith.addf %9, %15 : vector<256x128xf32>
    %17 = vector.extract_strided_slice %1 {offsets = [0, 2, 0], sizes = [16, 16, 128], strides = [1, 1, 1]} : vector<18x18x128xf32> to vector<16x16x128xf32>
    %18 = vector.shape_cast %17 : vector<16x16x128xf32> to vector<256x128xf32>
    %19 = arith.truncf %18 : vector<256x128xf32> to vector<256x128xbf16>
    %c0_12 = arith.constant 0 : index
    %c2 = arith.constant 2 : index
    %c0_13 = arith.constant 0 : index
    %c0_14 = arith.constant 0 : index
    %20 = vector.load %arg2[%c0_12, %c2, %c0_13, %c0_14] : memref<3x3x128x128xbf16, #tpu.memory_space<vmem>>, vector<1x1x128x128xbf16>
    %21 = vector.shape_cast %20 : vector<1x1x128x128xbf16> to vector<128x128xbf16>
    %cst_15 = arith.constant dense<0.000000e+00> : vector<256x128xf32>
    %22 = tpu.matmul %19, %21, %cst_15 {dimension_numbers = #tpu.dot_dimension_numbers<[1], [0], [0], [1], [0, 0, 1, 1], [], []>} : vector<256x128xbf16>, vector<128x128xbf16>, vector<256x128xf32> -> vector<256x128xf32>
    %23 = arith.addf %16, %22 : vector<256x128xf32>
    %24 = vector.extract_strided_slice %1 {offsets = [1, 0, 0], sizes = [16, 16, 128], strides = [1, 1, 1]} : vector<18x18x128xf32> to vector<16x16x128xf32>
    %25 = vector.shape_cast %24 : vector<16x16x128xf32> to vector<256x128xf32>
    %26 = arith.truncf %25 : vector<256x128xf32> to vector<256x128xbf16>
    %c1_16 = arith.constant 1 : index
    %c0_17 = arith.constant 0 : index
    %c0_18 = arith.constant 0 : index
    %c0_19 = arith.constant 0 : index
    %27 = vector.load %arg2[%c1_16, %c0_17, %c0_18, %c0_19] : memref<3x3x128x128xbf16, #tpu.memory_space<vmem>>, vector<1x1x128x128xbf16>
    %28 = vector.shape_cast %27 : vector<1x1x128x128xbf16> to vector<128x128xbf16>
    %cst_20 = arith.constant dense<0.000000e+00> : vector<256x128xf32>
    %29 = tpu.matmul %26, %28, %cst_20 {dimension_numbers = #tpu.dot_dimension_numbers<[1], [0], [0], [1], [0, 0, 1, 1], [], []>} : vector<256x128xbf16>, vector<128x128xbf16>, vector<256x128xf32> -> vector<256x128xf32>
    %30 = arith.addf %23, %29 : vector<256x128xf32>
    %31 = vector.extract_strided_slice %1 {offsets = [1, 1, 0], sizes = [16, 16, 128], strides = [1, 1, 1]} : vector<18x18x128xf32> to vector<16x16x128xf32>
    %32 = vector.shape_cast %31 : vector<16x16x128xf32> to vector<256x128xf32>
    %33 = arith.truncf %32 : vector<256x128xf32> to vector<256x128xbf16>
    %c1_21 = arith.constant 1 : index
    %c1_22 = arith.constant 1 : index
    %c0_23 = arith.constant 0 : index
    %c0_24 = arith.constant 0 : index
    %34 = vector.load %arg2[%c1_21, %c1_22, %c0_23, %c0_24] : memref<3x3x128x128xbf16, #tpu.memory_space<vmem>>, vector<1x1x128x128xbf16>
    %35 = vector.shape_cast %34 : vector<1x1x128x128xbf16> to vector<128x128xbf16>
    %cst_25 = arith.constant dense<0.000000e+00> : vector<256x128xf32>
    %36 = tpu.matmul %33, %35, %cst_25 {dimension_numbers = #tpu.dot_dimension_numbers<[1], [0], [0], [1], [0, 0, 1, 1], [], []>} : vector<256x128xbf16>, vector<128x128xbf16>, vector<256x128xf32> -> vector<256x128xf32>
    %37 = arith.addf %30, %36 : vector<256x128xf32>
    %38 = vector.extract_strided_slice %1 {offsets = [1, 2, 0], sizes = [16, 16, 128], strides = [1, 1, 1]} : vector<18x18x128xf32> to vector<16x16x128xf32>
    %39 = vector.shape_cast %38 : vector<16x16x128xf32> to vector<256x128xf32>
    %40 = arith.truncf %39 : vector<256x128xf32> to vector<256x128xbf16>
    %c1_26 = arith.constant 1 : index
    %c2_27 = arith.constant 2 : index
    %c0_28 = arith.constant 0 : index
    %c0_29 = arith.constant 0 : index
    %41 = vector.load %arg2[%c1_26, %c2_27, %c0_28, %c0_29] : memref<3x3x128x128xbf16, #tpu.memory_space<vmem>>, vector<1x1x128x128xbf16>
    %42 = vector.shape_cast %41 : vector<1x1x128x128xbf16> to vector<128x128xbf16>
    %cst_30 = arith.constant dense<0.000000e+00> : vector<256x128xf32>
    %43 = tpu.matmul %40, %42, %cst_30 {dimension_numbers = #tpu.dot_dimension_numbers<[1], [0], [0], [1], [0, 0, 1, 1], [], []>} : vector<256x128xbf16>, vector<128x128xbf16>, vector<256x128xf32> -> vector<256x128xf32>
    %44 = arith.addf %37, %43 : vector<256x128xf32>
    %45 = vector.extract_strided_slice %1 {offsets = [2, 0, 0], sizes = [16, 16, 128], strides = [1, 1, 1]} : vector<18x18x128xf32> to vector<16x16x128xf32>
    %46 = vector.shape_cast %45 : vector<16x16x128xf32> to vector<256x128xf32>
    %47 = arith.truncf %46 : vector<256x128xf32> to vector<256x128xbf16>
    %c2_31 = arith.constant 2 : index
    %c0_32 = arith.constant 0 : index
    %c0_33 = arith.constant 0 : index
    %c0_34 = arith.constant 0 : index
    %48 = vector.load %arg2[%c2_31, %c0_32, %c0_33, %c0_34] : memref<3x3x128x128xbf16, #tpu.memory_space<vmem>>, vector<1x1x128x128xbf16>
    %49 = vector.shape_cast %48 : vector<1x1x128x128xbf16> to vector<128x128xbf16>
    %cst_35 = arith.constant dense<0.000000e+00> : vector<256x128xf32>
    %50 = tpu.matmul %47, %49, %cst_35 {dimension_numbers = #tpu.dot_dimension_numbers<[1], [0], [0], [1], [0, 0, 1, 1], [], []>} : vector<256x128xbf16>, vector<128x128xbf16>, vector<256x128xf32> -> vector<256x128xf32>
    %51 = arith.addf %44, %50 : vector<256x128xf32>
    %52 = vector.extract_strided_slice %1 {offsets = [2, 1, 0], sizes = [16, 16, 128], strides = [1, 1, 1]} : vector<18x18x128xf32> to vector<16x16x128xf32>
    %53 = vector.shape_cast %52 : vector<16x16x128xf32> to vector<256x128xf32>
    %54 = arith.truncf %53 : vector<256x128xf32> to vector<256x128xbf16>
    %c2_36 = arith.constant 2 : index
    %c1_37 = arith.constant 1 : index
    %c0_38 = arith.constant 0 : index
    %c0_39 = arith.constant 0 : index
    %55 = vector.load %arg2[%c2_36, %c1_37, %c0_38, %c0_39] : memref<3x3x128x128xbf16, #tpu.memory_space<vmem>>, vector<1x1x128x128xbf16>
    %56 = vector.shape_cast %55 : vector<1x1x128x128xbf16> to vector<128x128xbf16>
    %cst_40 = arith.constant dense<0.000000e+00> : vector<256x128xf32>
    %57 = tpu.matmul %54, %56, %cst_40 {dimension_numbers = #tpu.dot_dimension_numbers<[1], [0], [0], [1], [0, 0, 1, 1], [], []>} : vector<256x128xbf16>, vector<128x128xbf16>, vector<256x128xf32> -> vector<256x128xf32>
    %58 = arith.addf %51, %57 : vector<256x128xf32>
    %59 = vector.extract_strided_slice %1 {offsets = [2, 2, 0], sizes = [16, 16, 128], strides = [1, 1, 1]} : vector<18x18x128xf32> to vector<16x16x128xf32>
    %60 = vector.shape_cast %59 : vector<16x16x128xf32> to vector<256x128xf32>
    %61 = arith.truncf %60 : vector<256x128xf32> to vector<256x128xbf16>
    %c2_41 = arith.constant 2 : index
    %c2_42 = arith.constant 2 : index
    %c0_43 = arith.constant 0 : index
    %c0_44 = arith.constant 0 : index
    %62 = vector.load %arg2[%c2_41, %c2_42, %c0_43, %c0_44] : memref<3x3x128x128xbf16, #tpu.memory_space<vmem>>, vector<1x1x128x128xbf16>
    %63 = vector.shape_cast %62 : vector<1x1x128x128xbf16> to vector<128x128xbf16>
    %cst_45 = arith.constant dense<0.000000e+00> : vector<256x128xf32>
    %64 = tpu.matmul %61, %63, %cst_45 {dimension_numbers = #tpu.dot_dimension_numbers<[1], [0], [0], [1], [0, 0, 1, 1], [], []>} : vector<256x128xbf16>, vector<128x128xbf16>, vector<256x128xf32> -> vector<256x128xf32>
    %65 = arith.addf %58, %64 : vector<256x128xf32>
    %c0_46 = arith.constant 0 : index
    %c0_47 = arith.constant 0 : index
    %66 = vector.load %arg3[%c0_46, %c0_47] : memref<1x128xf32, #tpu.memory_space<vmem>>, vector<1x128xf32>
    %67 = vector.broadcast %66 : vector<1x128xf32> to vector<256x128xf32>
    %68 = arith.mulf %65, %67 : vector<256x128xf32>
    %c0_48 = arith.constant 0 : index
    %c0_49 = arith.constant 0 : index
    %69 = vector.load %arg4[%c0_48, %c0_49] : memref<1x128xf32, #tpu.memory_space<vmem>>, vector<1x128xf32>
    %70 = vector.broadcast %69 : vector<1x128xf32> to vector<256x128xf32>
    %71 = arith.addf %68, %70 : vector<256x128xf32>
    %cst_50 = arith.constant 0.000000e+00 : f32
    %72 = vector.broadcast %cst_50 : f32 to vector<256x128xf32>
    %73 = arith.maximumf %71, %72 : vector<256x128xf32>
    %74 = vector.shape_cast %73 : vector<256x128xf32> to vector<1x16x16x128xf32>
    %c0_51 = arith.constant 0 : index
    %c0_52 = arith.constant 0 : index
    %c0_53 = arith.constant 0 : index
    %c0_54 = arith.constant 0 : index
    %75 = vector.load %arg5[%c0_51, %c0_52, %c0_53, %c0_54] : memref<1x16x16x128xf32, #tpu.memory_space<vmem>>, vector<1x16x16x128xf32>
    tpu.vector_store %arg5[%c0_51, %c0_52, %c0_53, %c0_54], %74 {strides = array<i32>} : memref<1x16x16x128xf32, #tpu.memory_space<vmem>>, vector<1x16x16x128xf32>,
    return
  }
  func.func @transform_0(%arg0: i32) -> (i32, i32, i32, i32) {
    %c0_i32 = arith.constant 0 : i32
    %c0_i32_0 = arith.constant 0 : i32
    %c0_i32_1 = arith.constant 0 : i32
    %c0_i32_2 = arith.constant 0 : i32
    return %arg0, %c0_i32, %c0_i32_0, %c0_i32_1 : i32, i32, i32, i32
  }
  func.func @transform_1(%arg0: i32) -> (i32, i32, i32, i32) {
    %c0_i32 = arith.constant 0 : i32
    %c0_i32_0 = arith.constant 0 : i32
    %c0_i32_1 = arith.constant 0 : i32
    %c0_i32_2 = arith.constant 0 : i32
    %c0_i32_3 = arith.constant 0 : i32
    return %c0_i32, %c0_i32_0, %c0_i32_1, %c0_i32_2 : i32, i32, i32, i32
  }
  func.func @transform_2(%arg0: i32) -> (i32, i32) {
    %c0_i32 = arith.constant 0 : i32
    %c0_i32_0 = arith.constant 0 : i32
    %c0_i32_1 = arith.constant 0 : i32
    return %c0_i32, %c0_i32_0 : i32, i32
  }
  func.func @transform_3(%arg0: i32) -> (i32, i32) {
    %c0_i32 = arith.constant 0 : i32
    %c0_i32_0 = arith.constant 0 : i32
    %c0_i32_1 = arith.constant 0 : i32
    return %c0_i32, %c0_i32_0 : i32, i32
  }
  func.func @transform_4(%arg0: i32) -> (i32, i32, i32, i32) {
    %c0_i32 = arith.constant 0 : i32
    %c0_i32_0 = arith.constant 0 : i32
    %c0_i32_1 = arith.constant 0 : i32
    %c0_i32_2 = arith.constant 0 : i32
    return %arg0, %c0_i32, %c0_i32_0, %c0_i32_1 : i32, i32, i32, i32
  }
}

module attributes {stable_mosaic.version = 11 : i64} {
  func.func @_pw_kernel(%arg0: i32, %arg1: memref<256x128xf32, #tpu.memory_space<vmem>>, %arg2: memref<128x128xbf16, #tpu.memory_space<vmem>>, %arg3: memref<1x128xf32, #tpu.memory_space<vmem>>, %arg4: memref<1x128xf32, #tpu.memory_space<vmem>>, %arg5: memref<256x128xf32, #tpu.memory_space<vmem>>) attributes {dimension_semantics = [#tpu.dimension_semantics<parallel>], iteration_bounds = array<i64: 2>, scalar_prefetch = 0 : i64, scratch_operands = 0 : i64, tpu.core_type = #tpu.core_type<tc>, window_params = [{transform_indices = @transform_0, window_bounds = array<i64: 256, 128>}, {pipeline_mode = #tpu.pipeline_mode<synchronous>, transform_indices = @transform_1, window_bounds = array<i64: 128, 128>}, {pipeline_mode = #tpu.pipeline_mode<synchronous>, transform_indices = @transform_2, window_bounds = array<i64: 1, 128>}, {pipeline_mode = #tpu.pipeline_mode<synchronous>, transform_indices = @transform_3, window_bounds = array<i64: 1, 128>}, {transform_indices = @transform_4, window_bounds = array<i64: 256, 128>}]} {
    %c0 = arith.constant 0 : index
    %c0_0 = arith.constant 0 : index
    %0 = vector.load %arg1[%c0, %c0_0] : memref<256x128xf32, #tpu.memory_space<vmem>>, vector<256x128xf32>
    %1 = arith.truncf %0 : vector<256x128xf32> to vector<256x128xbf16>
    %c0_1 = arith.constant 0 : index
    %c0_2 = arith.constant 0 : index
    %2 = vector.load %arg2[%c0_1, %c0_2] : memref<128x128xbf16, #tpu.memory_space<vmem>>, vector<128x128xbf16>
    %cst = arith.constant dense<0.000000e+00> : vector<256x128xf32>
    %3 = tpu.matmul %1, %2, %cst {dimension_numbers = #tpu.dot_dimension_numbers<[1], [0], [0], [1], [0, 0, 1, 1], [], []>} : vector<256x128xbf16>, vector<128x128xbf16>, vector<256x128xf32> -> vector<256x128xf32>
    %c0_3 = arith.constant 0 : index
    %c0_4 = arith.constant 0 : index
    %4 = vector.load %arg3[%c0_3, %c0_4] : memref<1x128xf32, #tpu.memory_space<vmem>>, vector<1x128xf32>
    %5 = vector.broadcast %4 : vector<1x128xf32> to vector<256x128xf32>
    %6 = arith.mulf %3, %5 : vector<256x128xf32>
    %c0_5 = arith.constant 0 : index
    %c0_6 = arith.constant 0 : index
    %7 = vector.load %arg4[%c0_5, %c0_6] : memref<1x128xf32, #tpu.memory_space<vmem>>, vector<1x128xf32>
    %8 = vector.broadcast %7 : vector<1x128xf32> to vector<256x128xf32>
    %9 = arith.addf %6, %8 : vector<256x128xf32>
    %cst_7 = arith.constant 0.000000e+00 : f32
    %10 = vector.broadcast %cst_7 : f32 to vector<256x128xf32>
    %11 = arith.maximumf %9, %10 : vector<256x128xf32>
    %c0_8 = arith.constant 0 : index
    %c0_9 = arith.constant 0 : index
    %12 = vector.load %arg5[%c0_8, %c0_9] : memref<256x128xf32, #tpu.memory_space<vmem>>, vector<256x128xf32>
    tpu.vector_store %arg5[%c0_8, %c0_9], %11 {strides = array<i32>} : memref<256x128xf32, #tpu.memory_space<vmem>>, vector<256x128xf32>,
    return
  }
  func.func @transform_0(%arg0: i32) -> (i32, i32) {
    %c0_i32 = arith.constant 0 : i32
    %c0_i32_0 = arith.constant 0 : i32
    return %arg0, %c0_i32 : i32, i32
  }
  func.func @transform_1(%arg0: i32) -> (i32, i32) {
    %c0_i32 = arith.constant 0 : i32
    %c0_i32_0 = arith.constant 0 : i32
    %c0_i32_1 = arith.constant 0 : i32
    return %c0_i32, %c0_i32_0 : i32, i32
  }
  func.func @transform_2(%arg0: i32) -> (i32, i32) {
    %c0_i32 = arith.constant 0 : i32
    %c0_i32_0 = arith.constant 0 : i32
    %c0_i32_1 = arith.constant 0 : i32
    return %c0_i32, %c0_i32_0 : i32, i32
  }
  func.func @transform_3(%arg0: i32) -> (i32, i32) {
    %c0_i32 = arith.constant 0 : i32
    %c0_i32_0 = arith.constant 0 : i32
    %c0_i32_1 = arith.constant 0 : i32
    return %c0_i32, %c0_i32_0 : i32, i32
  }
  func.func @transform_4(%arg0: i32) -> (i32, i32) {
    %c0_i32 = arith.constant 0 : i32
    %c0_i32_0 = arith.constant 0 : i32
    return %arg0, %c0_i32 : i32, i32
  }
}

</mosaic_0001>

<bundles_post_ra>
// kernel: decoder_block_fwd.4
= control target key start
LH: loop header
LB: loop body
LE: loop exit
PB: predicated region body
PF: predicated region fallthrough
CT: control target
= control target key end

     0   :  { %s483_s1 = inlined_call_operand.vmem [shape: bf16[128,128], index: 1, kind: input, shape index: {}]   ;;  %s484_s2 = inlined_call_operand.vmem [shape: f32[1,128], index: 2, kind: input, shape index: {}]   ;;  %s485_s3 = inlined_call_operand.vmem [shape: f32[1,128], index: 3, kind: input, shape index: {}]   ;;  %s486_s0 = inlined_call_operand.vmem [shape: f32[128,128], index: 0, kind: input, shape index: {}]   ;;  %s487_s4 = inlined_call_operand.vmem [shape: f32[128,128], index: 4, kind: output, shape index: {}]  }
   0x1   :  { %v269_v0 = vld [vmem:[%s483_s1 + $0x38] sm:$0xff]  ;;  %v268_v1 = vld [vmem:[%s483_s1 + $0x30] sm:$0xff]  ;;  %v267_v2 = vld [vmem:[%s483_s1 + $0x28] sm:$0xff] }
   0x2   :  { %105 = vmatpush.bf16.msra.mxu0 %v269_v0  ;;  %270 = vmatpush.bf16.msra.mxu1 %v269_v0  ;;  %v266_v3 = vld [vmem:[%s483_s1 + $0x20] sm:$0xff]  ;;  %v265_v4 = vld [vmem:[%s483_s1 + $0x18] sm:$0xff]  ;;  %v264_v5 = vld [vmem:[%s483_s1 + $0x10] sm:$0xff] }
   0x3   :  { %271 = vmatpush.bf16.msra.mxu2 %v269_v0  ;;  %272 = vmatpush.bf16.msra.mxu3 %v269_v0  ;;  %v263_v6 = vld [vmem:[%s483_s1 + $0x8] sm:$0xff]  ;;  %v262_v7 = vld [vmem:[%s483_s1] sm:$0xff]  ;;  %v19_v20 = vld [vmem:[%s486_s0 + $0x10] sm:$0xff] }
   0x4   :  { %v17_v8 = vld [vmem:[%s486_s0] sm:$0xff]  ;;  %v18_v9 = vld [vmem:[%s486_s0 + $0x8] sm:$0xff]  ;;  %v20_v21 = vld [vmem:[%s486_s0 + $0x18] sm:$0xff] }
   0x5   :  { %v21_v10 = vld [vmem:[%s486_s0 + $0x20] sm:$0xff]  ;;  %v22_v11 = vld [vmem:[%s486_s0 + $0x28] sm:$0xff]  ;;  %v33_v16 = vpack.c.bf16 %v18_v9, %v17_v8  ;;  %v23_v22 = vld [vmem:[%s486_s0 + $0x30] sm:$0xff]  ;;  %v34_v28 = vpack.c.bf16 %v20_v21, %v19_v20 }
   0x6   :  { %106 = vmatpush.bf16.msra.mxu0 %v268_v1  ;;  %273 = vmatpush.bf16.msra.mxu1 %v268_v1  ;;  %v25_v12 = vld [vmem:[%s486_s0 + $0x40] sm:$0xff]  ;;  %v26_v13 = vld [vmem:[%s486_s0 + $0x48] sm:$0xff]  ;;  %v35_v17 = vpack.c.bf16 %v22_v11, %v21_v10  ;;  %v24_v23 = vld [vmem:[%s486_s0 + $0x38] sm:$0xff] }
   0x7   :  { %274 = vmatpush.bf16.msra.mxu2 %v268_v1  ;;  %275 = vmatpush.bf16.msra.mxu3 %v268_v1  ;;  %v29_v14 = vld [vmem:[%s486_s0 + $0x60] sm:$0xff]  ;;  %v30_v15 = vld [vmem:[%s486_s0 + $0x68] sm:$0xff]  ;;  %v37_v18 = vpack.c.bf16 %v26_v13, %v25_v12  ;;  %v27_v24 = vld [vmem:[%s486_s0 + $0x50] sm:$0xff]  ;;  %v36_v29 = vpack.c.bf16 %v24_v23, %v23_v22 }
   0x8   :  { %v39_v19 = vpack.c.bf16 %v30_v15, %v29_v14  ;;  %v28_v25 = vld [vmem:[%s486_s0 + $0x58] sm:$0xff]  ;;  %v31_v26 = vld [vmem:[%s486_s0 + $0x70] sm:$0xff]  ;;  %v396_v32 = vld [vmem:[%s484_s2] ss:$0 sm:$0xff] }
   0x9   :  { %v32_v27 = vld [vmem:[%s486_s0 + $0x78] sm:$0xff]  ;;  %v38_v30 = vpack.c.bf16 %v28_v25, %v27_v24  ;;  %v401_v33 = vld [vmem:[%s485_s3] ss:$0 sm:$0xff] }
   0xa   :  { %107 = vmatpush.bf16.msra.mxu0 %v267_v2  ;;  %276 = vmatpush.bf16.msra.mxu1 %v267_v2  ;;  %v40_v31 = vpack.c.bf16 %v32_v27, %v31_v26 }
   0xb   :  { %277 = vmatpush.bf16.msra.mxu2 %v267_v2  ;;  %278 = vmatpush.bf16.msra.mxu3 %v267_v2 }
   0xe   :  { %108 = vmatpush.bf16.msra.mxu0 %v266_v3  ;;  %279 = vmatpush.bf16.msra.mxu1 %v266_v3 }
   0xf   :  { %280 = vmatpush.bf16.msra.mxu2 %v266_v3  ;;  %281 = vmatpush.bf16.msra.mxu3 %v266_v3 }
  0x12   :  { %109 = vmatpush.bf16.msra.mxu0 %v265_v4  ;;  %282 = vmatpush.bf16.msra.mxu1 %v265_v4 }
  0x13   :  { %283 = vmatpush.bf16.msra.mxu2 %v265_v4  ;;  %284 = vmatpush.bf16.msra.mxu3 %v265_v4 }
  0x16   :  { %110 = vmatpush.bf16.msra.mxu0 %v264_v5  ;;  %285 = vmatpush.bf16.msra.mxu1 %v264_v5 }
  0x17   :  { %286 = vmatpush.bf16.msra.mxu2 %v264_v5  ;;  %287 = vmatpush.bf16.msra.mxu3 %v264_v5 }
  0x1a   :  { %111 = vmatpush.bf16.msra.mxu0 %v263_v6  ;;  %288 = vmatpush.bf16.msra.mxu1 %v263_v6 }
  0x1b   :  { %289 = vmatpush.bf16.msra.mxu2 %v263_v6  ;;  %290 = vmatpush.bf16.msra.mxu3 %v263_v6 }
  0x1e   :  { %112 = vmatpush.bf16.msra.mxu0 %v262_v7  ;;  %291 = vmatpush.bf16.msra.mxu1 %v262_v7 }
  0x1f   :  { %292 = vmatpush.bf16.msra.mxu2 %v262_v7  ;;  %293 = vmatpush.bf16.msra.mxu3 %v262_v7 }
  0x21   :  { %113 = vmatmul.bf16.vlgmr.msra.gmra.mxu0 %v33_v16  ;;  %123 = vmatmul.bf16.vlgmr.msra.gmra.mxu1 %v35_v17 }
  0x22   :  { %133 = vmatmul.bf16.vlgmr.msra.gmra.mxu2 %v37_v18  ;;  %143 = vmatmul.bf16.vlgmr.msra.gmra.mxu3 %v39_v19 }
  0x31   :  { %118 = vmatmul.bf16.gmra.mxu0 %v34_v28  ;;  %128 = vmatmul.bf16.gmra.mxu1 %v36_v29 }
  0x32   :  { %138 = vmatmul.bf16.gmra.mxu2 %v38_v30  ;;  %148 = vmatmul.bf16.gmra.mxu3 %v40_v31 }
  0x9e   :  { %v114_v34 = vpop.f32.mrf.mxu0  ;;  %v124_v35 = vpop.f32.mrf.mxu1 }
  0x9f   :  { %v158_v36 = vmul.f32 %v396_v32, %v114_v34  ;;  %v162_v37 = vmul.f32 %v396_v32, %v124_v35 }
  0xa1   :  { %v178_v38 = vadd.f32 %v401_v33, %v158_v36  ;;  %v182_v39 = vadd.f32 %v401_v33, %v162_v37 }
  0xa3   :  { %v194_v40 = vmax.f32 %v178_v38, 0.0  ;;  %v198_v41 = vmax.f32 %v182_v39, 0.0 }
  0xa5   :  { %210 = vst [vmem:[%s487_s4] sm:$0xff] %v194_v40  ;;  %v134_v42 = vpop.f32.mrf.mxu2  ;;  %v144_v43 = vpop.f32.mrf.mxu3 }
  0xa6   :  { %214 = vst [vmem:[%s487_s4 + $0x20] sm:$0xff] %v198_v41  ;;  %v166_v44 = vmul.f32 %v396_v32, %v134_v42  ;;  %v170_v45 = vmul.f32 %v396_v32, %v144_v43  ;;  %v116_v46 = vpop.f32.mrf.mxu0  ;;  %v126_v47 = vpop.f32.mrf.mxu1 }
  0xa7   :  { %v159_v48 = vmul.f32 %v396_v32, %v116_v46  ;;  %v163_v49 = vmul.f32 %v396_v32, %v126_v47 }
  0xa8   :  { %v186_v50 = vadd.f32 %v401_v33, %v166_v44  ;;  %v190_v51 = vadd.f32 %v401_v33, %v170_v45 }
  0xa9   :  { %v179_v52 = vadd.f32 %v401_v33, %v159_v48  ;;  %v183_v53 = vadd.f32 %v401_v33, %v163_v49 }
  0xaa   :  { %v202_v54 = vmax.f32 %v186_v50, 0.0  ;;  %v206_v55 = vmax.f32 %v190_v51, 0.0 }
  0xab   :  { %v195_v56 = vmax.f32 %v179_v52, 0.0  ;;  %v199_v57 = vmax.f32 %v183_v53, 0.0 }
  0xac   :  { %218 = vst [vmem:[%s487_s4 + $0x40] sm:$0xff] %v202_v54 }
  0xad   :  { %222 = vst [vmem:[%s487_s4 + $0x60] sm:$0xff] %v206_v55  ;;  %v136_v58 = vpop.f32.mrf.mxu2  ;;  %v146_v59 = vpop.f32.mrf.mxu3 }
  0xae   :  { %211 = vst [vmem:[%s487_s4 + $0x8] sm:$0xff] %v195_v56  ;;  %v167_v60 = vmul.f32 %v396_v32, %v136_v58  ;;  %v171_v61 = vmul.f32 %v396_v32, %v146_v59  ;;  %v119_v62 = vpop.f32.mrf.mxu0  ;;  %v129_v63 = vpop.f32.mrf.mxu1 }
  0xaf   :  { %215 = vst [vmem:[%s487_s4 + $0x28] sm:$0xff] %v199_v57  ;;  %v160_v0 = vmul.f32 %v396_v32, %v119_v62  ;;  %v164_v1 = vmul.f32 %v396_v32, %v129_v63 }
  0xb0   :  { %v187_v2 = vadd.f32 %v401_v33, %v167_v60  ;;  %v191_v3 = vadd.f32 %v401_v33, %v171_v61 }
  0xb1   :  { %v180_v4 = vadd.f32 %v401_v33, %v160_v0  ;;  %v184_v5 = vadd.f32 %v401_v33, %v164_v1 }
  0xb2   :  { %v203_v6 = vmax.f32 %v187_v2, 0.0  ;;  %v207_v7 = vmax.f32 %v191_v3, 0.0 }
  0xb3   :  { %v196_v8 = vmax.f32 %v180_v4, 0.0  ;;  %v200_v9 = vmax.f32 %v184_v5, 0.0 }
  0xb4   :  { %219 = vst [vmem:[%s487_s4 + $0x48] sm:$0xff] %v203_v6 }
  0xb5   :  { %223 = vst [vmem:[%s487_s4 + $0x68] sm:$0xff] %v207_v7  ;;  %v139_v10 = vpop.f32.mrf.mxu2  ;;  %v149_v11 = vpop.f32.mrf.mxu3 }
  0xb6   :  { %212 = vst [vmem:[%s487_s4 + $0x10] sm:$0xff] %v196_v8  ;;  %v168_v12 = vmul.f32 %v396_v32, %v139_v10  ;;  %v172_v13 = vmul.f32 %v396_v32, %v149_v11  ;;  %v121_v14 = vpop.f32.mrf.mxu0  ;;  %v131_v15 = vpop.f32.mrf.mxu1 }
  0xb7   :  { %216 = vst [vmem:[%s487_s4 + $0x30] sm:$0xff] %v200_v9  ;;  %v161_v16 = vmul.f32 %v396_v32, %v121_v14  ;;  %v165_v17 = vmul.f32 %v396_v32, %v131_v15 }
  0xb8   :  { %v188_v18 = vadd.f32 %v401_v33, %v168_v12  ;;  %v192_v19 = vadd.f32 %v401_v33, %v172_v13 }
  0xb9   :  { %v181_v20 = vadd.f32 %v401_v33, %v161_v16  ;;  %v185_v21 = vadd.f32 %v401_v33, %v165_v17 }
  0xba   :  { %v204_v22 = vmax.f32 %v188_v18, 0.0  ;;  %v208_v23 = vmax.f32 %v192_v19, 0.0 }
  0xbb   :  { %v197_v24 = vmax.f32 %v181_v20, 0.0  ;;  %v201_v25 = vmax.f32 %v185_v21, 0.0 }
  0xbc   :  { %220 = vst [vmem:[%s487_s4 + $0x50] sm:$0xff] %v204_v22 }
  0xbd   :  { %224 = vst [vmem:[%s487_s4 + $0x70] sm:$0xff] %v208_v23  ;;  %v141_v26 = vpop.f32.mrf.mxu2  ;;  %v151_v27 = vpop.f32.mrf.mxu3 }
  0xbe   :  { %213 = vst [vmem:[%s487_s4 + $0x18] sm:$0xff] %v197_v24  ;;  %v169_v28 = vmul.f32 %v396_v32, %v141_v26  ;;  %v173_v29 = vmul.f32 %v396_v32, %v151_v27 }
  0xbf   :  { %217 = vst [vmem:[%s487_s4 + $0x38] sm:$0xff] %v201_v25 }
  0xc0   :  { %v189_v30 = vadd.f32 %v401_v33, %v169_v28  ;;  %v193_v31 = vadd.f32 %v401_v33, %v173_v29 }
  0xc2   :  { %v205_v34 = vmax.f32 %v189_v30, 0.0  ;;  %v209_v35 = vmax.f32 %v193_v31, 0.0 }
  0xc4   :  { %221 = vst [vmem:[%s487_s4 + $0x58] sm:$0xff] %v205_v34 }
  0xc5   :  { %225 = vst [vmem:[%s487_s4 + $0x78] sm:$0xff] %v209_v35 }

// kernel: decoder_block_fwd.5
= control target key start
LH: loop header
LB: loop body
LE: loop exit
PB: predicated region body
PF: predicated region fallthrough
CT: control target
= control target key end

     0   :  { %s844_s18 = smov 0   ;;  %s1069_s0 = inlined_call_operand.vmem [shape: f32[512,128], index: 0, kind: input, shape index: {}]   ;;  %s1070_s1 = inlined_call_operand.vmem [shape: f32[512,128], index: 1, kind: input, shape index: {}]   ;;  %s1071_s2 = inlined_call_operand.vmem [shape: bf16[128,128], index: 2, kind: input, shape index: {}]   ;;  %s1072_s3 = inlined_call_operand.vmem [shape: f32[1,128], index: 3, kind: input, shape index: {}]   ;;  %s1073_s4 = inlined_call_operand.vmem [shape: f32[1,128], index: 4, kind: input, shape index: {}]   ;;  %s1074_s5 = inlined_call_operand.vmem [shape: f32[512,128], index: 5, kind: output, shape index: {}]  }
   0x1 LB: > { %s719_s19 = sadd.s32 4294967295, %s812_s18   ;;  %p723_p0 = scmp.ge.s32.totalorder %s812_s18, 1  ;;  %s812_s18 = sphi %s844_s18, %s15_s18  }
   0x2   : > { %p199_p1 = scmp.lt.s32.totalorder %s812_s18, 3 }
   0x4   : > { %p200_p2 = pnand %p723_p0, %p199_p1 }
   0x5   : > { %s724_s24 = sshll.u32 (!%p200_p2), %s719_s19, 5 }
   0x6   : > { %203 = sbr.rel (%p200_p2) target bundleno = 240 (0xf0), region = 40  ;;  %p233_p3 = scmp.lt.s32.totalorder (!%p200_p2), %s724_s24, 63 }
   0xb   : > { %v771_v0 = vld [vmem:[%s1071_s2 + $0x38] sm:$0xff]  ;;  %v770_v1 = vld [vmem:[%s1071_s2 + $0x30] sm:$0xff]  ;;  %v769_v2 = vld [vmem:[%s1071_s2 + $0x28] sm:$0xff]  ;;  %s1076_s24 = smov (!%p233_p3, %s724_s24), 63 }
   0xc   : > { %426 = vmatpush.bf16.msra.mxu0 %v771_v0  ;;  %772 = vmatpush.bf16.msra.mxu1 %v771_v0  ;;  %v768_v3 = vld [vmem:[%s1071_s2 + $0x20] sm:$0xff]  ;;  %s864_s29 = sshll.u32 %s1076_s24, 3  ;;  %v767_v4 = vld [vmem:[%s1071_s2 + $0x18] sm:$0xff]  ;;  %v766_v5 = vld [vmem:[%s1071_s2 + $0x10] sm:$0xff] }
   0xd   : > { %773 = vmatpush.bf16.msra.mxu2 %v771_v0  ;;  %774 = vmatpush.bf16.msra.mxu3 %v771_v0  ;;  %s873_s9 = scalar_lea.vmem %s1069_s0, %s864_s29  ;;  %s879_s12 = scalar_lea.vmem %s1070_s1, %s864_s29  ;;  %v765_v8 = vld [vmem:[%s1071_s2 + $0x8] sm:$0xff]  ;;  %v764_v28 = vld [vmem:[%s1071_s2] sm:$0xff] }
   0xe   : > { %v250_v6 = vld [vmem:[%s873_s9] sm:$0xff]  ;;  %v251_v9 = vld [vmem:[%s873_s9 + $0x8] sm:$0xff]  ;;  %v252_v36 = vld [vmem:[%s873_s9 + $0x10] sm:$0xff]  ;;  %s972_s26 = scalar_lea.vmem %s1074_s5, %s864_s29 }
   0xf   : > { %v282_v7 = vld [vmem:[%s879_s12] sm:$0xff]  ;;  %v283_v10 = vld [vmem:[%s879_s12 + $0x8] sm:$0xff]  ;;  %v253_v37 = vld [vmem:[%s873_s9 + $0x18] sm:$0xff] }
  0x10   : > { %427 = vmatpush.bf16.msra.mxu0 %v770_v1  ;;  %775 = vmatpush.bf16.msra.mxu1 %v770_v1  ;;  %v258_v11 = vld [vmem:[%s873_s9 + $0x40] sm:$0xff]  ;;  %v259_v12 = vld [vmem:[%s873_s9 + $0x48] sm:$0xff]  ;;  %v314_v23 = vadd.f32 %v282_v7, %v250_v6  ;;  %v315_v24 = vadd.f32 %v283_v10, %v251_v9  ;;  %v284_v38 = vld [vmem:[%s879_s12 + $0x10] sm:$0xff] }
  0x11   : > { %776 = vmatpush.bf16.msra.mxu2 %v770_v1  ;;  %777 = vmatpush.bf16.msra.mxu3 %v770_v1  ;;  %v290_v13 = vld [vmem:[%s879_s12 + $0x40] sm:$0xff]  ;;  %v291_v14 = vld [vmem:[%s879_s12 + $0x48] sm:$0xff]  ;;  %v285_v39 = vld [vmem:[%s879_s12 + $0x18] sm:$0xff]  ;;  %v316_v52 = vadd.f32 %v284_v38, %v252_v36 }
  0x12   : > { %v266_v15 = vld [vmem:[%s873_s9 + $0x80] sm:$0xff]  ;;  %v267_v16 = vld [vmem:[%s873_s9 + $0x88] sm:$0xff]  ;;  %v322_v25 = vadd.f32 %v290_v13, %v258_v11  ;;  %v323_v26 = vadd.f32 %v291_v14, %v259_v12  ;;  %v346_v32 = vpack.c.bf16 %v315_v24, %v314_v23  ;;  %v260_v40 = vld [vmem:[%s873_s9 + $0x50] sm:$0xff]  ;;  %v317_v53 = vadd.f32 %v285_v39, %v253_v37 }
  0x13   : > { %v298_v17 = vld [vmem:[%s879_s12 + $0x80] sm:$0xff]  ;;  %v299_v18 = vld [vmem:[%s879_s12 + $0x88] sm:$0xff]  ;;  %v261_v41 = vld [vmem:[%s873_s9 + $0x58] sm:$0xff] }
  0x14   : > { %428 = vmatpush.bf16.msra.mxu0 %v769_v2  ;;  %778 = vmatpush.bf16.msra.mxu1 %v769_v2  ;;  %v274_v19 = vld [vmem:[%s873_s9 + $0xc0] sm:$0xff]  ;;  %v275_v20 = vld [vmem:[%s873_s9 + $0xc8] sm:$0xff]  ;;  %v330_v27 = vadd.f32 %v298_v17, %v266_v15  ;;  %v331_v29 = vadd.f32 %v299_v18, %v267_v16  ;;  %v350_v33 = vpack.c.bf16 %v323_v26, %v322_v25  ;;  %v292_v42 = vld [vmem:[%s879_s12 + $0x50] sm:$0xff] }
  0x15   : > { %779 = vmatpush.bf16.msra.mxu2 %v769_v2  ;;  %780 = vmatpush.bf16.msra.mxu3 %v769_v2  ;;  %v306_v21 = vld [vmem:[%s879_s12 + $0xc0] sm:$0xff]  ;;  %v307_v22 = vld [vmem:[%s879_s12 + $0xc8] sm:$0xff]  ;;  %v293_v43 = vld [vmem:[%s879_s12 + $0x58] sm:$0xff]  ;;  %v324_v54 = vadd.f32 %v292_v42, %v260_v40  ;;  %v347_v60 = vpack.c.bf16 %v317_v53, %v316_v52 }
  0x16   : > { %v338_v30 = vadd.f32 %v306_v21, %v274_v19  ;;  %v339_v31 = vadd.f32 %v307_v22, %v275_v20  ;;  %v354_v34 = vpack.c.bf16 %v331_v29, %v330_v27  ;;  %v268_v44 = vld [vmem:[%s873_s9 + $0x90] sm:$0xff]  ;;  %v269_v45 = vld [vmem:[%s873_s9 + $0x98] sm:$0xff]  ;;  %v325_v55 = vadd.f32 %v293_v43, %v261_v41  ;;  %v254_v0 = vld [vmem:[%s873_s9 + $0x20] sm:$0xff] }
  0x17   : > { %v300_v46 = vld [vmem:[%s879_s12 + $0x90] sm:$0xff]  ;;  %v301_v47 = vld [vmem:[%s879_s12 + $0x98] sm:$0xff]  ;;  %v255_v1 = vld [vmem:[%s873_s9 + $0x28] sm:$0xff] }
  0x18   : > { %429 = vmatpush.bf16.msra.mxu0 %v768_v3  ;;  %781 = vmatpush.bf16.msra.mxu1 %v768_v3  ;;  %v358_v35 = vpack.c.bf16 %v339_v31, %v338_v30  ;;  %v276_v48 = vld [vmem:[%s873_s9 + $0xd0] sm:$0xff]  ;;  %v277_v49 = vld [vmem:[%s873_s9 + $0xd8] sm:$0xff]  ;;  %v332_v56 = vadd.f32 %v300_v46, %v268_v44  ;;  %v333_v57 = vadd.f32 %v301_v47, %v269_v45  ;;  %v286_v2 = vld [vmem:[%s879_s12 + $0x20] sm:$0xff] }
  0x19   : > { %782 = vmatpush.bf16.msra.mxu2 %v768_v3  ;;  %783 = vmatpush.bf16.msra.mxu3 %v768_v3  ;;  %v308_v50 = vld [vmem:[%s879_s12 + $0xd0] sm:$0xff]  ;;  %v309_v51 = vld [vmem:[%s879_s12 + $0xd8] sm:$0xff]  ;;  %v351_v61 = vpack.c.bf16 %v325_v55, %v324_v54  ;;  %v287_v3 = vld [vmem:[%s879_s12 + $0x28] sm:$0xff]  ;;  %v318_v16 = vadd.f32 %v286_v2, %v254_v0 }
  0x1a   : > { %v340_v58 = vadd.f32 %v308_v50, %v276_v48  ;;  %v341_v59 = vadd.f32 %v309_v51, %v277_v49  ;;  %v355_v62 = vpack.c.bf16 %v333_v57, %v332_v56  ;;  %v294_v6 = vld [vmem:[%s879_s12 + $0x60] sm:$0xff]  ;;  %v295_v7 = vld [vmem:[%s879_s12 + $0x68] sm:$0xff]  ;;  %v319_v17 = vadd.f32 %v287_v3, %v255_v1  ;;  %v257_v29 = vld [vmem:[%s873_s9 + $0x38] sm:$0xff] }
  0x1b   : > { %v271_v9 = vld [vmem:[%s873_s9 + $0xa8] sm:$0xff]  ;;  %v302_v10 = vld [vmem:[%s879_s12 + $0xa0] sm:$0xff]  ;;  %v288_v30 = vld [vmem:[%s879_s12 + $0x30] sm:$0xff] }
  0x1c   : > { %430 = vmatpush.bf16.msra.mxu0 %v767_v4  ;;  %784 = vmatpush.bf16.msra.mxu1 %v767_v4  ;;  %v359_v63 = vpack.c.bf16 %v341_v59, %v340_v58  ;;  %v303_v11 = vld [vmem:[%s879_s12 + $0xa8] sm:$0xff]  ;;  %v278_v12 = vld [vmem:[%s873_s9 + $0xe0] sm:$0xff]  ;;  %v348_v24 = vpack.c.bf16 %v319_v17, %v318_v16  ;;  %v289_v31 = vld [vmem:[%s879_s12 + $0x38] sm:$0xff] }
  0x1d   : > { %785 = vmatpush.bf16.msra.mxu2 %v767_v4  ;;  %786 = vmatpush.bf16.msra.mxu3 %v767_v4  ;;  %v262_v4 = vld [vmem:[%s873_s9 + $0x60] sm:$0xff]  ;;  %v279_v13 = vld [vmem:[%s873_s9 + $0xe8] sm:$0xff]  ;;  %v335_v21 = vadd.f32 %v303_v11, %v271_v9  ;;  %v272_v36 = vld [vmem:[%s873_s9 + $0xb0] sm:$0xff]  ;;  %v321_v45 = vadd.f32 %v289_v31, %v257_v29 }
  0x1e   : > { %v310_v14 = vld [vmem:[%s879_s12 + $0xe0] sm:$0xff]  ;;  %v311_v15 = vld [vmem:[%s879_s12 + $0xe8] sm:$0xff]  ;;  %v326_v18 = vadd.f32 %v294_v6, %v262_v4  ;;  %v273_v37 = vld [vmem:[%s873_s9 + $0xb8] sm:$0xff] }
  0x1f   : > { %v342_v22 = vadd.f32 %v310_v14, %v278_v12  ;;  %v343_v23 = vadd.f32 %v311_v15, %v279_v13  ;;  %v304_v38 = vld [vmem:[%s879_s12 + $0xb0] sm:$0xff]  ;;  %v305_v39 = vld [vmem:[%s879_s12 + $0xb8] sm:$0xff]  ;;  %v957_v56 = vld [vmem:[%s1072_s3] ss:$0 sm:$0xff] }
  0x20   : > { %431 = vmatpush.bf16.msra.mxu0 %v766_v5  ;;  %787 = vmatpush.bf16.msra.mxu1 %v766_v5  ;;  %v280_v40 = vld [vmem:[%s873_s9 + $0xf0] sm:$0xff]  ;;  %v281_v41 = vld [vmem:[%s873_s9 + $0xf8] sm:$0xff]  ;;  %v336_v48 = vadd.f32 %v304_v38, %v272_v36  ;;  %v337_v49 = vadd.f32 %v305_v39, %v273_v37  ;;  %v962_v57 = vld [vmem:[%s1073_s4] ss:$0 sm:$0xff] }
  0x21   : > { %788 = vmatpush.bf16.msra.mxu2 %v766_v5  ;;  %789 = vmatpush.bf16.msra.mxu3 %v766_v5  ;;  %v263_v5 = vld [vmem:[%s873_s9 + $0x68] sm:$0xff]  ;;  %v360_v27 = vpack.c.bf16 %v343_v23, %v342_v22  ;;  %v312_v42 = vld [vmem:[%s879_s12 + $0xf0] sm:$0xff]  ;;  %v313_v43 = vld [vmem:[%s879_s12 + $0xf8] sm:$0xff] }
  0x22   : > { %v327_v19 = vadd.f32 %v295_v7, %v263_v5  ;;  %v344_v50 = vadd.f32 %v312_v42, %v280_v40  ;;  %v345_v51 = vadd.f32 %v313_v43, %v281_v41  ;;  %v357_v54 = vpack.c.bf16 %v337_v49, %v336_v48 }
  0x24   : > { %432 = vmatpush.bf16.msra.mxu0 %v765_v8  ;;  %790 = vmatpush.bf16.msra.mxu1 %v765_v8  ;;  %v352_v25 = vpack.c.bf16 %v327_v19, %v326_v18  ;;  %v361_v55 = vpack.c.bf16 %v345_v51, %v344_v50 }
  0x25   : > { %791 = vmatpush.bf16.msra.mxu2 %v765_v8  ;;  %792 = vmatpush.bf16.msra.mxu3 %v765_v8  ;;  %v270_v8 = vld [vmem:[%s873_s9 + $0xa0] sm:$0xff] }
  0x26   : > { %v334_v20 = vadd.f32 %v302_v10, %v270_v8 }
  0x28   : > { %433 = vmatpush.bf16.msra.mxu0 %v764_v28  ;;  %793 = vmatpush.bf16.msra.mxu1 %v764_v28  ;;  %v356_v26 = vpack.c.bf16 %v335_v21, %v334_v20 }
  0x29   : > { %794 = vmatpush.bf16.msra.mxu2 %v764_v28  ;;  %795 = vmatpush.bf16.msra.mxu3 %v764_v28  ;;  %v256_v28 = vld [vmem:[%s873_s9 + $0x30] sm:$0xff] }
  0x2a   : > { %v320_v44 = vadd.f32 %v288_v30, %v256_v28 }
  0x2b   : > { %434 = vmatmul.bf16.vlgmr.msra.gmra.mxu0 %v346_v32  ;;  %454 = vmatmul.bf16.vlgmr.msra.gmra.mxu1 %v350_v33  ;;  %v264_v32 = vld [vmem:[%s873_s9 + $0x70] sm:$0xff]  ;;  %v265_v33 = vld [vmem:[%s873_s9 + $0x78] sm:$0xff] }
  0x2c   : > { %474 = vmatmul.bf16.vlgmr.msra.gmra.mxu2 %v354_v34  ;;  %494 = vmatmul.bf16.vlgmr.msra.gmra.mxu3 %v358_v35  ;;  %v296_v34 = vld [vmem:[%s879_s12 + $0x70] sm:$0xff]  ;;  %v297_v35 = vld [vmem:[%s879_s12 + $0x78] sm:$0xff]  ;;  %v349_v52 = vpack.c.bf16 %v321_v45, %v320_v44 }
  0x2d   : > { %v328_v46 = vadd.f32 %v296_v34, %v264_v32  ;;  %v329_v47 = vadd.f32 %v297_v35, %v265_v33 }
  0x2f   : > { %v353_v53 = vpack.c.bf16 %v329_v47, %v328_v46 }
  0x3b   : > { %439 = vmatmul.bf16.gmra.mxu0 %v347_v60  ;;  %459 = vmatmul.bf16.gmra.mxu1 %v351_v61 }
  0x3c   : > { %479 = vmatmul.bf16.gmra.mxu2 %v355_v62  ;;  %499 = vmatmul.bf16.gmra.mxu3 %v359_v63 }
  0x4b   : > { %444 = vmatmul.bf16.gmra.mxu0 %v348_v24  ;;  %464 = vmatmul.bf16.gmra.mxu1 %v352_v25 }
  0x4c   : > { %484 = vmatmul.bf16.gmra.mxu2 %v356_v26  ;;  %504 = vmatmul.bf16.gmra.mxu3 %v360_v27 }
  0x5b   : > { %449 = vmatmul.bf16.gmra.mxu0 %v349_v52  ;;  %469 = vmatmul.bf16.gmra.mxu1 %v353_v53 }
  0x5c   : > { %489 = vmatmul.bf16.gmra.mxu2 %v357_v54  ;;  %509 = vmatmul.bf16.gmra.mxu3 %v361_v55 }
  0xa8   : > { %v435_v58 = vpop.f32.mrf.mxu0  ;;  %v455_v59 = vpop.f32.mrf.mxu1 }
  0xa9   : > { %v519_v60 = vmul.f32 %v957_v56, %v435_v58  ;;  %v527_v61 = vmul.f32 %v957_v56, %v455_v59 }
  0xab   : > { %v555_v62 = vadd.f32 %v962_v57, %v519_v60  ;;  %v563_v63 = vadd.f32 %v962_v57, %v527_v61 }
  0xad   : > { %v587_v0 = vmax.f32 %v555_v62, 0.0  ;;  %v595_v1 = vmax.f32 %v563_v63, 0.0 }
  0xaf   : > { %619 = vst [vmem:[%s972_s26] sm:$0xff] %v587_v0  ;;  %v475_v2 = vpop.f32.mrf.mxu2  ;;  %v495_v3 = vpop.f32.mrf.mxu3 }
  0xb0   : > { %627 = vst [vmem:[%s972_s26 + $0x40] sm:$0xff] %v595_v1  ;;  %v535_v4 = vmul.f32 %v957_v56, %v475_v2  ;;  %v543_v5 = vmul.f32 %v957_v56, %v495_v3  ;;  %v437_v6 = vpop.f32.mrf.mxu0  ;;  %v457_v7 = vpop.f32.mrf.mxu1 }
  0xb1   : > { %v520_v8 = vmul.f32 %v957_v56, %v437_v6  ;;  %v528_v9 = vmul.f32 %v957_v56, %v457_v7 }
  0xb2   : > { %v571_v10 = vadd.f32 %v962_v57, %v535_v4  ;;  %v579_v11 = vadd.f32 %v962_v57, %v543_v5 }
  0xb3   : > { %v556_v12 = vadd.f32 %v962_v57, %v520_v8  ;;  %v564_v13 = vadd.f32 %v962_v57, %v528_v9 }
  0xb4   : > { %v603_v14 = vmax.f32 %v571_v10, 0.0  ;;  %v611_v15 = vmax.f32 %v579_v11, 0.0 }
  0xb5   : > { %v588_v16 = vmax.f32 %v556_v12, 0.0  ;;  %v596_v17 = vmax.f32 %v564_v13, 0.0 }
  0xb6   : > { %635 = vst [vmem:[%s972_s26 + $0x80] sm:$0xff] %v603_v14 }
  0xb7   : > { %643 = vst [vmem:[%s972_s26 + $0xc0] sm:$0xff] %v611_v15  ;;  %v477_v18 = vpop.f32.mrf.mxu2  ;;  %v497_v19 = vpop.f32.mrf.mxu3 }
  0xb8   : > { %620 = vst [vmem:[%s972_s26 + $0x8] sm:$0xff] %v588_v16  ;;  %v536_v20 = vmul.f32 %v957_v56, %v477_v18  ;;  %v544_v21 = vmul.f32 %v957_v56, %v497_v19  ;;  %v440_v22 = vpop.f32.mrf.mxu0  ;;  %v460_v23 = vpop.f32.mrf.mxu1 }
  0xb9   : > { %628 = vst [vmem:[%s972_s26 + $0x48] sm:$0xff] %v596_v17  ;;  %v521_v24 = vmul.f32 %v957_v56, %v440_v22  ;;  %v529_v25 = vmul.f32 %v957_v56, %v460_v23 }
  0xba   : > { %v572_v26 = vadd.f32 %v962_v57, %v536_v20  ;;  %v580_v27 = vadd.f32 %v962_v57, %v544_v21 }
  0xbb   : > { %v557_v28 = vadd.f32 %v962_v57, %v521_v24  ;;  %v565_v29 = vadd.f32 %v962_v57, %v529_v25 }
  0xbc   : > { %v604_v30 = vmax.f32 %v572_v26, 0.0  ;;  %v612_v31 = vmax.f32 %v580_v27, 0.0 }
  0xbd   : > { %v589_v32 = vmax.f32 %v557_v28, 0.0  ;;  %v597_v33 = vmax.f32 %v565_v29, 0.0 }
  0xbe   : > { %636 = vst [vmem:[%s972_s26 + $0x88] sm:$0xff] %v604_v30 }
  0xbf   : > { %644 = vst [vmem:[%s972_s26 + $0xc8] sm:$0xff] %v612_v31  ;;  %v480_v34 = vpop.f32.mrf.mxu2  ;;  %v500_v35 = vpop.f32.mrf.mxu3 }
  0xc0   : > { %621 = vst [vmem:[%s972_s26 + $0x10] sm:$0xff] %v589_v32  ;;  %v537_v36 = vmul.f32 %v957_v56, %v480_v34  ;;  %v545_v37 = vmul.f32 %v957_v56, %v500_v35  ;;  %v442_v38 = vpop.f32.mrf.mxu0  ;;  %v462_v39 = vpop.f32.mrf.mxu1 }
  0xc1   : > { %629 = vst [vmem:[%s972_s26 + $0x50] sm:$0xff] %v597_v33  ;;  %v522_v40 = vmul.f32 %v957_v56, %v442_v38  ;;  %v530_v41 = vmul.f32 %v957_v56, %v462_v39 }
  0xc2   : > { %v573_v42 = vadd.f32 %v962_v57, %v537_v36  ;;  %v581_v43 = vadd.f32 %v962_v57, %v545_v37 }
  0xc3   : > { %v558_v44 = vadd.f32 %v962_v57, %v522_v40  ;;  %v566_v45 = vadd.f32 %v962_v57, %v530_v41 }
  0xc4   : > { %v605_v46 = vmax.f32 %v573_v42, 0.0  ;;  %v613_v47 = vmax.f32 %v581_v43, 0.0 }
  0xc5   : > { %v590_v48 = vmax.f32 %v558_v44, 0.0  ;;  %v598_v49 = vmax.f32 %v566_v45, 0.0 }
  0xc6   : > { %637 = vst [vmem:[%s972_s26 + $0x90] sm:$0xff] %v605_v46 }
  0xc7   : > { %645 = vst [vmem:[%s972_s26 + $0xd0] sm:$0xff] %v613_v47  ;;  %v482_v50 = vpop.f32.mrf.mxu2  ;;  %v502_v51 = vpop.f32.mrf.mxu3 }
  0xc8   : > { %622 = vst [vmem:[%s972_s26 + $0x18] sm:$0xff] %v590_v48  ;;  %v538_v52 = vmul.f32 %v957_v56, %v482_v50  ;;  %v546_v53 = vmul.f32 %v957_v56, %v502_v51  ;;  %v445_v54 = vpop.f32.mrf.mxu0  ;;  %v465_v55 = vpop.f32.mrf.mxu1 }
  0xc9   : > { %630 = vst [vmem:[%s972_s26 + $0x58] sm:$0xff] %v598_v49  ;;  %v523_v58 = vmul.f32 %v957_v56, %v445_v54  ;;  %v531_v59 = vmul.f32 %v957_v56, %v465_v55 }
  0xca   : > { %v574_v60 = vadd.f32 %v962_v57, %v538_v52  ;;  %v582_v61 = vadd.f32 %v962_v57, %v546_v53 }
  0xcb   : > { %v559_v62 = vadd.f32 %v962_v57, %v523_v58  ;;  %v567_v63 = vadd.f32 %v962_v57, %v531_v59 }
  0xcc   : > { %v606_v0 = vmax.f32 %v574_v60, 0.0  ;;  %v614_v1 = vmax.f32 %v582_v61, 0.0 }
  0xcd   : > { %v591_v2 = vmax.f32 %v559_v62, 0.0  ;;  %v599_v3 = vmax.f32 %v567_v63, 0.0 }
  0xce   : > { %638 = vst [vmem:[%s972_s26 + $0x98] sm:$0xff] %v606_v0 }
  0xcf   : > { %646 = vst [vmem:[%s972_s26 + $0xd8] sm:$0xff] %v614_v1  ;;  %v485_v4 = vpop.f32.mrf.mxu2  ;;  %v505_v5 = vpop.f32.mrf.mxu3 }
  0xd0   : > { %623 = vst [vmem:[%s972_s26 + $0x20] sm:$0xff] %v591_v2  ;;  %v539_v6 = vmul.f32 %v957_v56, %v485_v4  ;;  %v547_v7 = vmul.f32 %v957_v56, %v505_v5  ;;  %v447_v8 = vpop.f32.mrf.mxu0  ;;  %v467_v9 = vpop.f32.mrf.mxu1 }
  0xd1   : > { %631 = vst [vmem:[%s972_s26 + $0x60] sm:$0xff] %v599_v3  ;;  %v524_v10 = vmul.f32 %v957_v56, %v447_v8  ;;  %v532_v11 = vmul.f32 %v957_v56, %v467_v9 }
  0xd2   : > { %v575_v12 = vadd.f32 %v962_v57, %v539_v6  ;;  %v583_v13 = vadd.f32 %v962_v57, %v547_v7 }
  0xd3   : > { %v560_v14 = vadd.f32 %v962_v57, %v524_v10  ;;  %v568_v15 = vadd.f32 %v962_v57, %v532_v11 }
  0xd4   : > { %v607_v16 = vmax.f32 %v575_v12, 0.0  ;;  %v615_v17 = vmax.f32 %v583_v13, 0.0 }
  0xd5   : > { %v592_v18 = vmax.f32 %v560_v14, 0.0  ;;  %v600_v19 = vmax.f32 %v568_v15, 0.0 }
  0xd6   : > { %639 = vst [vmem:[%s972_s26 + $0xa0] sm:$0xff] %v607_v16 }
  0xd7   : > { %647 = vst [vmem:[%s972_s26 + $0xe0] sm:$0xff] %v615_v17  ;;  %v487_v20 = vpop.f32.mrf.mxu2  ;;  %v507_v21 = vpop.f32.mrf.mxu3 }
  0xd8   : > { %624 = vst [vmem:[%s972_s26 + $0x28] sm:$0xff] %v592_v18  ;;  %v540_v22 = vmul.f32 %v957_v56, %v487_v20  ;;  %v548_v23 = vmul.f32 %v957_v56, %v507_v21  ;;  %v450_v24 = vpop.f32.mrf.mxu0  ;;  %v470_v25 = vpop.f32.mrf.mxu1 }
  0xd9   : > { %632 = vst [vmem:[%s972_s26 + $0x68] sm:$0xff] %v600_v19  ;;  %v525_v26 = vmul.f32 %v957_v56, %v450_v24  ;;  %v533_v27 = vmul.f32 %v957_v56, %v470_v25 }
  0xda   : > { %v576_v28 = vadd.f32 %v962_v57, %v540_v22  ;;  %v584_v29 = vadd.f32 %v962_v57, %v548_v23 }
  0xdb   : > { %v561_v30 = vadd.f32 %v962_v57, %v525_v26  ;;  %v569_v31 = vadd.f32 %v962_v57, %v533_v27 }
  0xdc   : > { %v608_v32 = vmax.f32 %v576_v28, 0.0  ;;  %v616_v33 = vmax.f32 %v584_v29, 0.0 }
  0xdd   : > { %v593_v34 = vmax.f32 %v561_v30, 0.0  ;;  %v601_v35 = vmax.f32 %v569_v31, 0.0 }
  0xde   : > { %640 = vst [vmem:[%s972_s26 + $0xa8] sm:$0xff] %v608_v32 }
  0xdf   : > { %648 = vst [vmem:[%s972_s26 + $0xe8] sm:$0xff] %v616_v33  ;;  %v490_v36 = vpop.f32.mrf.mxu2  ;;  %v510_v37 = vpop.f32.mrf.mxu3 }
  0xe0   : > { %625 = vst [vmem:[%s972_s26 + $0x30] sm:$0xff] %v593_v34  ;;  %v541_v38 = vmul.f32 %v957_v56, %v490_v36  ;;  %v549_v39 = vmul.f32 %v957_v56, %v510_v37  ;;  %v452_v40 = vpop.f32.mrf.mxu0  ;;  %v472_v41 = vpop.f32.mrf.mxu1 }
  0xe1   : > { %633 = vst [vmem:[%s972_s26 + $0x70] sm:$0xff] %v601_v35  ;;  %v526_v42 = vmul.f32 %v957_v56, %v452_v40  ;;  %v534_v43 = vmul.f32 %v957_v56, %v472_v41 }
  0xe2   : > { %v577_v44 = vadd.f32 %v962_v57, %v541_v38  ;;  %v585_v45 = vadd.f32 %v962_v57, %v549_v39 }
  0xe3   : > { %v562_v46 = vadd.f32 %v962_v57, %v526_v42  ;;  %v570_v47 = vadd.f32 %v962_v57, %v534_v43 }
  0xe4   : > { %v609_v48 = vmax.f32 %v577_v44, 0.0  ;;  %v617_v49 = vmax.f32 %v585_v45, 0.0 }
  0xe5   : > { %v594_v50 = vmax.f32 %v562_v46, 0.0  ;;  %v602_v51 = vmax.f32 %v570_v47, 0.0 }
  0xe6   : > { %641 = vst [vmem:[%s972_s26 + $0xb0] sm:$0xff] %v609_v48 }
  0xe7   : > { %649 = vst [vmem:[%s972_s26 + $0xf0] sm:$0xff] %v617_v49  ;;  %v492_v52 = vpop.f32.mrf.mxu2  ;;  %v512_v53 = vpop.f32.mrf.mxu3 }
  0xe8   : > { %626 = vst [vmem:[%s972_s26 + $0x38] sm:$0xff] %v594_v50  ;;  %v542_v54 = vmul.f32 %v957_v56, %v492_v52  ;;  %v550_v55 = vmul.f32 %v957_v56, %v512_v53 }
  0xe9   : > { %634 = vst [vmem:[%s972_s26 + $0x78] sm:$0xff] %v602_v51 }
  0xea   : > { %v578_v58 = vadd.f32 %v962_v57, %v542_v54  ;;  %v586_v59 = vadd.f32 %v962_v57, %v550_v55 }
  0xec   : > { %v610_v60 = vmax.f32 %v578_v58, 0.0  ;;  %v618_v61 = vmax.f32 %v586_v59, 0.0 }
  0xee   : > { %642 = vst [vmem:[%s972_s26 + $0xb8] sm:$0xff] %v610_v60 }
  0xef   : > { %650 = vst [vmem:[%s972_s26 + $0xf8] sm:$0xff] %v618_v61 }
  0xf0 PF: > { %s15_s18 = sadd.s32 1, %s812_s18  }
  0xf1   : > { %p12_p4 = scmp.ge.s32.totalorder %s15_s18, 4  }
  0xf3   :  { %14 = sbr.rel (!%p12_p4) target bundleno = 1 (0x1), region = 73 }

// kernel: decoder_block_fwd.7
= control target key start
LH: loop header
LB: loop body
LE: loop exit
PB: predicated region body
PF: predicated region fallthrough
CT: control target
= control target key end

     0   :  { %s712_s15 = smov 0   ;;  %s902_s0 = inlined_call_operand.vmem [shape: f32[512,128], index: 0, kind: input, shape index: {}]   ;;  %s903_s1 = inlined_call_operand.vmem [shape: bf16[128,128], index: 1, kind: input, shape index: {}]   ;;  %s904_s2 = inlined_call_operand.vmem [shape: f32[1,128], index: 2, kind: input, shape index: {}]   ;;  %s905_s3 = inlined_call_operand.vmem [shape: f32[1,128], index: 3, kind: input, shape index: {}]   ;;  %s906_s4 = inlined_call_operand.vmem [shape: f32[512,128], index: 4, kind: output, shape index: {}]  }
   0x1 LB: > { %s594_s16 = sadd.s32 4294967295, %s685_s15   ;;  %p598_p0 = scmp.ge.s32.totalorder %s685_s15, 1  ;;  %s685_s15 = sphi %s712_s15, %s14_s15  }
   0x2   : > { %p163_p1 = scmp.lt.s32.totalorder %s685_s15, 3 }
   0x4   : > { %p164_p2 = pnand %p598_p0, %p163_p1 }
   0x5   : > { %s599_s23 = sshll.u32 (!%p164_p2), %s594_s16, 5 }
   0x6   : > { %167 = sbr.rel (%p164_p2) target bundleno = 240 (0xf0), region = 36  ;;  %p190_p3 = scmp.lt.s32.totalorder (!%p164_p2), %s599_s23, 63 }
   0xb   : > { %v644_v0 = vld [vmem:[%s903_s1 + $0x38] sm:$0xff]  ;;  %v643_v1 = vld [vmem:[%s903_s1 + $0x30] sm:$0xff]  ;;  %v642_v2 = vld [vmem:[%s903_s1 + $0x28] sm:$0xff]  ;;  %s908_s23 = smov (!%p190_p3, %s599_s23), 63 }
   0xc   : > { %313 = vmatpush.bf16.msra.mxu0 %v644_v0  ;;  %645 = vmatpush.bf16.msra.mxu1 %v644_v0  ;;  %v641_v3 = vld [vmem:[%s903_s1 + $0x20] sm:$0xff]  ;;  %v640_v4 = vld [vmem:[%s903_s1 + $0x18] sm:$0xff]  ;;  %v639_v5 = vld [vmem:[%s903_s1 + $0x10] sm:$0xff]  ;;  %s600_s30 = sshll.u32 %s908_s23, 3 }
   0xd   : > { %646 = vmatpush.bf16.msra.mxu2 %v644_v0  ;;  %647 = vmatpush.bf16.msra.mxu3 %v644_v0  ;;  %v638_v6 = vld [vmem:[%s903_s1 + $0x8] sm:$0xff]  ;;  %s749_s9 = scalar_lea.vmem %s902_s0, %s600_s30  ;;  %v637_v7 = vld [vmem:[%s903_s1] sm:$0xff]  ;;  %s805_s19 = scalar_lea.vmem %s906_s4, %s600_s30 }
   0xe   : > { %v201_v8 = vld [vmem:[%s749_s9] sm:$0xff]  ;;  %v202_v9 = vld [vmem:[%s749_s9 + $0x8] sm:$0xff]  ;;  %v203_v20 = vld [vmem:[%s749_s9 + $0x10] sm:$0xff] }
   0xf   : > { %v209_v10 = vld [vmem:[%s749_s9 + $0x40] sm:$0xff]  ;;  %v210_v11 = vld [vmem:[%s749_s9 + $0x48] sm:$0xff]  ;;  %v233_v16 = vpack.c.bf16 %v202_v9, %v201_v8  ;;  %v204_v21 = vld [vmem:[%s749_s9 + $0x18] sm:$0xff] }
  0x10   : > { %314 = vmatpush.bf16.msra.mxu0 %v643_v1  ;;  %648 = vmatpush.bf16.msra.mxu1 %v643_v1  ;;  %v217_v12 = vld [vmem:[%s749_s9 + $0x80] sm:$0xff]  ;;  %v218_v13 = vld [vmem:[%s749_s9 + $0x88] sm:$0xff]  ;;  %v237_v17 = vpack.c.bf16 %v210_v11, %v209_v10  ;;  %v211_v22 = vld [vmem:[%s749_s9 + $0x50] sm:$0xff]  ;;  %v234_v28 = vpack.c.bf16 %v204_v21, %v203_v20 }
  0x11   : > { %649 = vmatpush.bf16.msra.mxu2 %v643_v1  ;;  %650 = vmatpush.bf16.msra.mxu3 %v643_v1  ;;  %v225_v14 = vld [vmem:[%s749_s9 + $0xc0] sm:$0xff]  ;;  %v226_v15 = vld [vmem:[%s749_s9 + $0xc8] sm:$0xff]  ;;  %v241_v18 = vpack.c.bf16 %v218_v13, %v217_v12  ;;  %v212_v23 = vld [vmem:[%s749_s9 + $0x58] sm:$0xff] }
  0x12   : > { %v245_v19 = vpack.c.bf16 %v226_v15, %v225_v14  ;;  %v219_v24 = vld [vmem:[%s749_s9 + $0x90] sm:$0xff]  ;;  %v220_v25 = vld [vmem:[%s749_s9 + $0x98] sm:$0xff]  ;;  %v238_v29 = vpack.c.bf16 %v212_v23, %v211_v22  ;;  %v205_v32 = vld [vmem:[%s749_s9 + $0x20] sm:$0xff] }
  0x13   : > { %v227_v26 = vld [vmem:[%s749_s9 + $0xd0] sm:$0xff]  ;;  %v228_v27 = vld [vmem:[%s749_s9 + $0xd8] sm:$0xff]  ;;  %v242_v30 = vpack.c.bf16 %v220_v25, %v219_v24  ;;  %v206_v33 = vld [vmem:[%s749_s9 + $0x28] sm:$0xff] }
  0x14   : > { %315 = vmatpush.bf16.msra.mxu0 %v642_v2  ;;  %651 = vmatpush.bf16.msra.mxu1 %v642_v2  ;;  %v246_v31 = vpack.c.bf16 %v228_v27, %v227_v26  ;;  %v213_v34 = vld [vmem:[%s749_s9 + $0x60] sm:$0xff]  ;;  %v214_v35 = vld [vmem:[%s749_s9 + $0x68] sm:$0xff]  ;;  %v235_v40 = vpack.c.bf16 %v206_v33, %v205_v32  ;;  %v207_v44 = vld [vmem:[%s749_s9 + $0x30] sm:$0xff] }
  0x15   : > { %652 = vmatpush.bf16.msra.mxu2 %v642_v2  ;;  %653 = vmatpush.bf16.msra.mxu3 %v642_v2  ;;  %v221_v36 = vld [vmem:[%s749_s9 + $0xa0] sm:$0xff]  ;;  %v222_v37 = vld [vmem:[%s749_s9 + $0xa8] sm:$0xff]  ;;  %v239_v41 = vpack.c.bf16 %v214_v35, %v213_v34  ;;  %v208_v45 = vld [vmem:[%s749_s9 + $0x38] sm:$0xff] }
  0x16   : > { %v229_v38 = vld [vmem:[%s749_s9 + $0xe0] sm:$0xff]  ;;  %v230_v39 = vld [vmem:[%s749_s9 + $0xe8] sm:$0xff]  ;;  %v243_v42 = vpack.c.bf16 %v222_v37, %v221_v36  ;;  %v215_v46 = vld [vmem:[%s749_s9 + $0x70] sm:$0xff]  ;;  %v236_v52 = vpack.c.bf16 %v208_v45, %v207_v44 }
  0x17   : > { %v247_v43 = vpack.c.bf16 %v230_v39, %v229_v38  ;;  %v216_v47 = vld [vmem:[%s749_s9 + $0x78] sm:$0xff]  ;;  %v223_v48 = vld [vmem:[%s749_s9 + $0xb0] sm:$0xff]  ;;  %v789_v56 = vld [vmem:[%s904_s2] ss:$0 sm:$0xff] }
  0x18   : > { %316 = vmatpush.bf16.msra.mxu0 %v641_v3  ;;  %654 = vmatpush.bf16.msra.mxu1 %v641_v3  ;;  %v224_v49 = vld [vmem:[%s749_s9 + $0xb8] sm:$0xff]  ;;  %v231_v50 = vld [vmem:[%s749_s9 + $0xf0] sm:$0xff]  ;;  %v240_v53 = vpack.c.bf16 %v216_v47, %v215_v46  ;;  %v794_v57 = vld [vmem:[%s905_s3] ss:$0 sm:$0xff] }
  0x19   : > { %655 = vmatpush.bf16.msra.mxu2 %v641_v3  ;;  %656 = vmatpush.bf16.msra.mxu3 %v641_v3  ;;  %v232_v51 = vld [vmem:[%s749_s9 + $0xf8] sm:$0xff]  ;;  %v244_v54 = vpack.c.bf16 %v224_v49, %v223_v48 }
  0x1a   : > { %v248_v55 = vpack.c.bf16 %v232_v51, %v231_v50 }
  0x1c   : > { %317 = vmatpush.bf16.msra.mxu0 %v640_v4  ;;  %657 = vmatpush.bf16.msra.mxu1 %v640_v4 }
  0x1d   : > { %658 = vmatpush.bf16.msra.mxu2 %v640_v4  ;;  %659 = vmatpush.bf16.msra.mxu3 %v640_v4 }
  0x20   : > { %318 = vmatpush.bf16.msra.mxu0 %v639_v5  ;;  %660 = vmatpush.bf16.msra.mxu1 %v639_v5 }
  0x21   : > { %661 = vmatpush.bf16.msra.mxu2 %v639_v5  ;;  %662 = vmatpush.bf16.msra.mxu3 %v639_v5 }
  0x24   : > { %319 = vmatpush.bf16.msra.mxu0 %v638_v6  ;;  %663 = vmatpush.bf16.msra.mxu1 %v638_v6 }
  0x25   : > { %664 = vmatpush.bf16.msra.mxu2 %v638_v6  ;;  %665 = vmatpush.bf16.msra.mxu3 %v638_v6 }
  0x28   : > { %320 = vmatpush.bf16.msra.mxu0 %v637_v7  ;;  %666 = vmatpush.bf16.msra.mxu1 %v637_v7 }
  0x29   : > { %667 = vmatpush.bf16.msra.mxu2 %v637_v7  ;;  %668 = vmatpush.bf16.msra.mxu3 %v637_v7 }
  0x2b   : > { %321 = vmatmul.bf16.vlgmr.msra.gmra.mxu0 %v233_v16  ;;  %341 = vmatmul.bf16.vlgmr.msra.gmra.mxu1 %v237_v17 }
  0x2c   : > { %361 = vmatmul.bf16.vlgmr.msra.gmra.mxu2 %v241_v18  ;;  %381 = vmatmul.bf16.vlgmr.msra.gmra.mxu3 %v245_v19 }
  0x3b   : > { %326 = vmatmul.bf16.gmra.mxu0 %v234_v28  ;;  %346 = vmatmul.bf16.gmra.mxu1 %v238_v29 }
  0x3c   : > { %366 = vmatmul.bf16.gmra.mxu2 %v242_v30  ;;  %386 = vmatmul.bf16.gmra.mxu3 %v246_v31 }
  0x4b   : > { %331 = vmatmul.bf16.gmra.mxu0 %v235_v40  ;;  %351 = vmatmul.bf16.gmra.mxu1 %v239_v41 }
  0x4c   : > { %371 = vmatmul.bf16.gmra.mxu2 %v243_v42  ;;  %391 = vmatmul.bf16.gmra.mxu3 %v247_v43 }
  0x5b   : > { %336 = vmatmul.bf16.gmra.mxu0 %v236_v52  ;;  %356 = vmatmul.bf16.gmra.mxu1 %v240_v53 }
  0x5c   : > { %376 = vmatmul.bf16.gmra.mxu2 %v244_v54  ;;  %396 = vmatmul.bf16.gmra.mxu3 %v248_v55 }
  0xa8   : > { %v322_v58 = vpop.f32.mrf.mxu0  ;;  %v342_v59 = vpop.f32.mrf.mxu1 }
  0xa9   : > { %v406_v60 = vmul.f32 %v789_v56, %v322_v58  ;;  %v414_v61 = vmul.f32 %v789_v56, %v342_v59 }
  0xab   : > { %v442_v62 = vadd.f32 %v794_v57, %v406_v60  ;;  %v450_v63 = vadd.f32 %v794_v57, %v414_v61 }
  0xad   : > { %v474_v0 = vmax.f32 %v442_v62, 0.0  ;;  %v482_v1 = vmax.f32 %v450_v63, 0.0 }
  0xaf   : > { %506 = vst [vmem:[%s805_s19] sm:$0xff] %v474_v0  ;;  %v362_v2 = vpop.f32.mrf.mxu2  ;;  %v382_v3 = vpop.f32.mrf.mxu3 }
  0xb0   : > { %514 = vst [vmem:[%s805_s19 + $0x40] sm:$0xff] %v482_v1  ;;  %v422_v4 = vmul.f32 %v789_v56, %v362_v2  ;;  %v430_v5 = vmul.f32 %v789_v56, %v382_v3  ;;  %v324_v6 = vpop.f32.mrf.mxu0  ;;  %v344_v7 = vpop.f32.mrf.mxu1 }
  0xb1   : > { %v407_v8 = vmul.f32 %v789_v56, %v324_v6  ;;  %v415_v9 = vmul.f32 %v789_v56, %v344_v7 }
  0xb2   : > { %v458_v10 = vadd.f32 %v794_v57, %v422_v4  ;;  %v466_v11 = vadd.f32 %v794_v57, %v430_v5 }
  0xb3   : > { %v443_v12 = vadd.f32 %v794_v57, %v407_v8  ;;  %v451_v13 = vadd.f32 %v794_v57, %v415_v9 }
  0xb4   : > { %v490_v14 = vmax.f32 %v458_v10, 0.0  ;;  %v498_v15 = vmax.f32 %v466_v11, 0.0 }
  0xb5   : > { %v475_v16 = vmax.f32 %v443_v12, 0.0  ;;  %v483_v17 = vmax.f32 %v451_v13, 0.0 }
  0xb6   : > { %522 = vst [vmem:[%s805_s19 + $0x80] sm:$0xff] %v490_v14 }
  0xb7   : > { %530 = vst [vmem:[%s805_s19 + $0xc0] sm:$0xff] %v498_v15  ;;  %v364_v18 = vpop.f32.mrf.mxu2  ;;  %v384_v19 = vpop.f32.mrf.mxu3 }
  0xb8   : > { %507 = vst [vmem:[%s805_s19 + $0x8] sm:$0xff] %v475_v16  ;;  %v423_v20 = vmul.f32 %v789_v56, %v364_v18  ;;  %v431_v21 = vmul.f32 %v789_v56, %v384_v19  ;;  %v327_v22 = vpop.f32.mrf.mxu0  ;;  %v347_v23 = vpop.f32.mrf.mxu1 }
  0xb9   : > { %515 = vst [vmem:[%s805_s19 + $0x48] sm:$0xff] %v483_v17  ;;  %v408_v24 = vmul.f32 %v789_v56, %v327_v22  ;;  %v416_v25 = vmul.f32 %v789_v56, %v347_v23 }
  0xba   : > { %v459_v26 = vadd.f32 %v794_v57, %v423_v20  ;;  %v467_v27 = vadd.f32 %v794_v57, %v431_v21 }
  0xbb   : > { %v444_v28 = vadd.f32 %v794_v57, %v408_v24  ;;  %v452_v29 = vadd.f32 %v794_v57, %v416_v25 }
  0xbc   : > { %v491_v30 = vmax.f32 %v459_v26, 0.0  ;;  %v499_v31 = vmax.f32 %v467_v27, 0.0 }
  0xbd   : > { %v476_v32 = vmax.f32 %v444_v28, 0.0  ;;  %v484_v33 = vmax.f32 %v452_v29, 0.0 }
  0xbe   : > { %523 = vst [vmem:[%s805_s19 + $0x88] sm:$0xff] %v491_v30 }
  0xbf   : > { %531 = vst [vmem:[%s805_s19 + $0xc8] sm:$0xff] %v499_v31  ;;  %v367_v34 = vpop.f32.mrf.mxu2  ;;  %v387_v35 = vpop.f32.mrf.mxu3 }
  0xc0   : > { %508 = vst [vmem:[%s805_s19 + $0x10] sm:$0xff] %v476_v32  ;;  %v424_v36 = vmul.f32 %v789_v56, %v367_v34  ;;  %v432_v37 = vmul.f32 %v789_v56, %v387_v35  ;;  %v329_v38 = vpop.f32.mrf.mxu0  ;;  %v349_v39 = vpop.f32.mrf.mxu1 }
  0xc1   : > { %516 = vst [vmem:[%s805_s19 + $0x50] sm:$0xff] %v484_v33  ;;  %v409_v40 = vmul.f32 %v789_v56, %v329_v38  ;;  %v417_v41 = vmul.f32 %v789_v56, %v349_v39 }
  0xc2   : > { %v460_v42 = vadd.f32 %v794_v57, %v424_v36  ;;  %v468_v43 = vadd.f32 %v794_v57, %v432_v37 }
  0xc3   : > { %v445_v44 = vadd.f32 %v794_v57, %v409_v40  ;;  %v453_v45 = vadd.f32 %v794_v57, %v417_v41 }
  0xc4   : > { %v492_v46 = vmax.f32 %v460_v42, 0.0  ;;  %v500_v47 = vmax.f32 %v468_v43, 0.0 }
  0xc5   : > { %v477_v48 = vmax.f32 %v445_v44, 0.0  ;;  %v485_v49 = vmax.f32 %v453_v45, 0.0 }
  0xc6   : > { %524 = vst [vmem:[%s805_s19 + $0x90] sm:$0xff] %v492_v46 }
  0xc7   : > { %532 = vst [vmem:[%s805_s19 + $0xd0] sm:$0xff] %v500_v47  ;;  %v369_v50 = vpop.f32.mrf.mxu2  ;;  %v389_v51 = vpop.f32.mrf.mxu3 }
  0xc8   : > { %509 = vst [vmem:[%s805_s19 + $0x18] sm:$0xff] %v477_v48  ;;  %v425_v52 = vmul.f32 %v789_v56, %v369_v50  ;;  %v433_v53 = vmul.f32 %v789_v56, %v389_v51  ;;  %v332_v54 = vpop.f32.mrf.mxu0  ;;  %v352_v55 = vpop.f32.mrf.mxu1 }
  0xc9   : > { %517 = vst [vmem:[%s805_s19 + $0x58] sm:$0xff] %v485_v49  ;;  %v410_v58 = vmul.f32 %v789_v56, %v332_v54  ;;  %v418_v59 = vmul.f32 %v789_v56, %v352_v55 }
  0xca   : > { %v461_v60 = vadd.f32 %v794_v57, %v425_v52  ;;  %v469_v61 = vadd.f32 %v794_v57, %v433_v53 }
  0xcb   : > { %v446_v62 = vadd.f32 %v794_v57, %v410_v58  ;;  %v454_v63 = vadd.f32 %v794_v57, %v418_v59 }
  0xcc   : > { %v493_v0 = vmax.f32 %v461_v60, 0.0  ;;  %v501_v1 = vmax.f32 %v469_v61, 0.0 }
  0xcd   : > { %v478_v2 = vmax.f32 %v446_v62, 0.0  ;;  %v486_v3 = vmax.f32 %v454_v63, 0.0 }
  0xce   : > { %525 = vst [vmem:[%s805_s19 + $0x98] sm:$0xff] %v493_v0 }
  0xcf   : > { %533 = vst [vmem:[%s805_s19 + $0xd8] sm:$0xff] %v501_v1  ;;  %v372_v4 = vpop.f32.mrf.mxu2  ;;  %v392_v5 = vpop.f32.mrf.mxu3 }
  0xd0   : > { %510 = vst [vmem:[%s805_s19 + $0x20] sm:$0xff] %v478_v2  ;;  %v426_v6 = vmul.f32 %v789_v56, %v372_v4  ;;  %v434_v7 = vmul.f32 %v789_v56, %v392_v5  ;;  %v334_v8 = vpop.f32.mrf.mxu0  ;;  %v354_v9 = vpop.f32.mrf.mxu1 }
  0xd1   : > { %518 = vst [vmem:[%s805_s19 + $0x60] sm:$0xff] %v486_v3  ;;  %v411_v10 = vmul.f32 %v789_v56, %v334_v8  ;;  %v419_v11 = vmul.f32 %v789_v56, %v354_v9 }
  0xd2   : > { %v462_v12 = vadd.f32 %v794_v57, %v426_v6  ;;  %v470_v13 = vadd.f32 %v794_v57, %v434_v7 }
  0xd3   : > { %v447_v14 = vadd.f32 %v794_v57, %v411_v10  ;;  %v455_v15 = vadd.f32 %v794_v57, %v419_v11 }
  0xd4   : > { %v494_v16 = vmax.f32 %v462_v12, 0.0  ;;  %v502_v17 = vmax.f32 %v470_v13, 0.0 }
  0xd5   : > { %v479_v18 = vmax.f32 %v447_v14, 0.0  ;;  %v487_v19 = vmax.f32 %v455_v15, 0.0 }
  0xd6   : > { %526 = vst [vmem:[%s805_s19 + $0xa0] sm:$0xff] %v494_v16 }
  0xd7   : > { %534 = vst [vmem:[%s805_s19 + $0xe0] sm:$0xff] %v502_v17  ;;  %v374_v20 = vpop.f32.mrf.mxu2  ;;  %v394_v21 = vpop.f32.mrf.mxu3 }
  0xd8   : > { %511 = vst [vmem:[%s805_s19 + $0x28] sm:$0xff] %v479_v18  ;;  %v427_v22 = vmul.f32 %v789_v56, %v374_v20  ;;  %v435_v23 = vmul.f32 %v789_v56, %v394_v21  ;;  %v337_v24 = vpop.f32.mrf.mxu0  ;;  %v357_v25 = vpop.f32.mrf.mxu1 }
  0xd9   : > { %519 = vst [vmem:[%s805_s19 + $0x68] sm:$0xff] %v487_v19  ;;  %v412_v26 = vmul.f32 %v789_v56, %v337_v24  ;;  %v420_v27 = vmul.f32 %v789_v56, %v357_v25 }
  0xda   : > { %v463_v28 = vadd.f32 %v794_v57, %v427_v22  ;;  %v471_v29 = vadd.f32 %v794_v57, %v435_v23 }
  0xdb   : > { %v448_v30 = vadd.f32 %v794_v57, %v412_v26  ;;  %v456_v31 = vadd.f32 %v794_v57, %v420_v27 }
  0xdc   : > { %v495_v32 = vmax.f32 %v463_v28, 0.0  ;;  %v503_v33 = vmax.f32 %v471_v29, 0.0 }
  0xdd   : > { %v480_v34 = vmax.f32 %v448_v30, 0.0  ;;  %v488_v35 = vmax.f32 %v456_v31, 0.0 }
  0xde   : > { %527 = vst [vmem:[%s805_s19 + $0xa8] sm:$0xff] %v495_v32 }
  0xdf   : > { %535 = vst [vmem:[%s805_s19 + $0xe8] sm:$0xff] %v503_v33  ;;  %v377_v36 = vpop.f32.mrf.mxu2  ;;  %v397_v37 = vpop.f32.mrf.mxu3 }
  0xe0   : > { %512 = vst [vmem:[%s805_s19 + $0x30] sm:$0xff] %v480_v34  ;;  %v428_v38 = vmul.f32 %v789_v56, %v377_v36  ;;  %v436_v39 = vmul.f32 %v789_v56, %v397_v37  ;;  %v339_v40 = vpop.f32.mrf.mxu0  ;;  %v359_v41 = vpop.f32.mrf.mxu1 }
  0xe1   : > { %520 = vst [vmem:[%s805_s19 + $0x70] sm:$0xff] %v488_v35  ;;  %v413_v42 = vmul.f32 %v789_v56, %v339_v40  ;;  %v421_v43 = vmul.f32 %v789_v56, %v359_v41 }
  0xe2   : > { %v464_v44 = vadd.f32 %v794_v57, %v428_v38  ;;  %v472_v45 = vadd.f32 %v794_v57, %v436_v39 }
  0xe3   : > { %v449_v46 = vadd.f32 %v794_v57, %v413_v42  ;;  %v457_v47 = vadd.f32 %v794_v57, %v421_v43 }
  0xe4   : > { %v496_v48 = vmax.f32 %v464_v44, 0.0  ;;  %v504_v49 = vmax.f32 %v472_v45, 0.0 }
  0xe5   : > { %v481_v50 = vmax.f32 %v449_v46, 0.0  ;;  %v489_v51 = vmax.f32 %v457_v47, 0.0 }
  0xe6   : > { %528 = vst [vmem:[%s805_s19 + $0xb0] sm:$0xff] %v496_v48 }
  0xe7   : > { %536 = vst [vmem:[%s805_s19 + $0xf0] sm:$0xff] %v504_v49  ;;  %v379_v52 = vpop.f32.mrf.mxu2  ;;  %v399_v53 = vpop.f32.mrf.mxu3 }
  0xe8   : > { %513 = vst [vmem:[%s805_s19 + $0x38] sm:$0xff] %v481_v50  ;;  %v429_v54 = vmul.f32 %v789_v56, %v379_v52  ;;  %v437_v55 = vmul.f32 %v789_v56, %v399_v53 }
  0xe9   : > { %521 = vst [vmem:[%s805_s19 + $0x78] sm:$0xff] %v489_v51 }
  0xea   : > { %v465_v58 = vadd.f32 %v794_v57, %v429_v54  ;;  %v473_v59 = vadd.f32 %v794_v57, %v437_v55 }
  0xec   : > { %v497_v60 = vmax.f32 %v465_v58, 0.0  ;;  %v505_v61 = vmax.f32 %v473_v59, 0.0 }
  0xee   : > { %529 = vst [vmem:[%s805_s19 + $0xb8] sm:$0xff] %v497_v60 }
  0xef   : > { %537 = vst [vmem:[%s805_s19 + $0xf8] sm:$0xff] %v505_v61 }
  0xf0 PF: > { %s14_s15 = sadd.s32 1, %s685_s15  }
  0xf1   : > { %p11_p4 = scmp.ge.s32.totalorder %s14_s15, 4  }
  0xf3   :  { %13 = sbr.rel (!%p11_p4) target bundleno = 1 (0x1), region = 66 }

// kernel: decoder_block_fwd.6
= control target key start
LH: loop header
LB: loop body
LE: loop exit
PB: predicated region body
PF: predicated region fallthrough
CT: control target
= control target key end

     0   :  { %s2982_s15 = smov 0   ;;  %s4118_s0 = inlined_call_operand.vmem [shape: f32[2,18,18,128], index: 0, kind: input, shape index: {}]   ;;  %s4119_s1 = inlined_call_operand.vmem [shape: bf16[3,3,128,128], index: 1, kind: input, shape index: {}]   ;;  %s4120_s2 = inlined_call_operand.vmem [shape: f32[1,128], index: 2, kind: input, shape index: {}]   ;;  %s4121_s3 = inlined_call_operand.vmem [shape: f32[1,128], index: 3, kind: input, shape index: {}]   ;;  %s4122_s4 = inlined_call_operand.vmem [shape: f32[2,16,16,128], index: 4, kind: output, shape index: {}]  }
   0x1 LB: > { %s2414_s16 = sadd.s32 4294967295, %s2955_s15   ;;  %p2418_p0 = scmp.ge.s32.totalorder %s2955_s15, 1  ;;  %s2955_s15 = sphi %s2982_s15, %s14_s15  }
   0x2   : > { %p162_p1 = scmp.lt.s32.totalorder %s2955_s15, 3 }
   0x4   : > { %p163_p2 = pnand %p2418_p0, %p162_p1 }
   0x6   : > { %166 = sbr.rel (%p163_p2) target bundleno = 756 (0x2f4), region = 36 }
   0xb   : > { %v2856_v0 = vld [vmem:[%s4119_s1 + $0x78] sm:$0xff]  ;;  %v2855_v1 = vld [vmem:[%s4119_s1 + $0x70] sm:$0xff]  ;;  %p188_p3 = scmp.lt.s32.totalorder %s2414_s16, 1  ;;  %v2854_v2 = vld [vmem:[%s4119_s1 + $0x68] sm:$0xff]  ;;  %vm332_vm0 = vcmask 1046528   ;;  %vm752_vm1 = vcmask 1045504  }
   0xc   : > { %2913 = vmatpush.bf16.msra.mxu1 %v2856_v0  ;;  %2914 = vmatpush.bf16.msra.mxu2 %v2856_v0  ;;  %v2853_v3 = vld [vmem:[%s4119_s1 + $0x60] sm:$0xff]  ;;  %v2852_v4 = vld [vmem:[%s4119_s1 + $0x58] sm:$0xff]  ;;  %v2851_v5 = vld [vmem:[%s4119_s1 + $0x50] sm:$0xff] }
   0xd   : > { %2915 = vmatpush.bf16.msra.mxu3 %v2856_v0  ;;  %526 = vmatpush.bf16.msra.mxu0 %v2856_v0  ;;  %s4269_s16 = smov (!%p188_p3, %s2414_s16), 1  ;;  %v2850_v22 = vld [vmem:[%s4119_s1 + $0x48] sm:$0xff]  ;;  %v2849_v33 = vld [vmem:[%s4119_s1 + $0x40] sm:$0xff]  ;;  %v2864_v40 = vld [vmem:[%s4119_s1 + $0xb8] sm:$0xff] }
   0xe   : > { %s2937_s25 = smul.u32 432, %s4269_s16  ;;  %v2872_v41 = vld [vmem:[%s4119_s1 + $0xf8] sm:$0xff]  ;;  %v2863_v47 = vld [vmem:[%s4119_s1 + $0xb0] sm:$0xff]  ;;  %v2862_v63 = vld [vmem:[%s4119_s1 + $0xa8] sm:$0xff]  ;;  %s2840_s5 = sshll.u32 %s4269_s16, 8 }
   0xf   : > { %v2848_v46 = vld [vmem:[%s4119_s1 + $0x38] sm:$0xff]  ;;  %v2871_v48 = vld [vmem:[%s4119_s1 + $0xf0] sm:$0xff]  ;;  %s3950_s8 = scalar_lea.vmem %s4122_s4, %s2840_s5 }
  0x10   : > { %2916 = vmatpush.bf16.msra.mxu1 %v2855_v1  ;;  %2917 = vmatpush.bf16.msra.mxu2 %v2855_v1  ;;  %s3011_s30 = scalar_lea.vmem %s4118_s0, %s2937_s25  ;;  %v2880_v49 = vld [vmem:[%s4119_s1 + $0x138] sm:$0xff]  ;;  %v2847_v53 = vld [vmem:[%s4119_s1 + $0x30] sm:$0xff] }
  0x11   : > { %2918 = vmatpush.bf16.msra.mxu3 %v2855_v1  ;;  %527 = vmatpush.bf16.msra.mxu0 %v2855_v1  ;;  %v3017_v6 = vld [vmem:[%s3011_s30 + $0x60] sm:$0xff]  ;;  %v3020_v7 = vld [vmem:[%s3011_s30 + $0x68] sm:$0xff]  ;;  %v3023_v8 = vld [vmem:[%s3011_s30 + $0x70] sm:$0x3] }
  0x12   : > { %v3026_v9 = vld [vmem:[%s3011_s30 + $0xc0] sm:$0xff]  ;;  %v3029_v10 = vld [vmem:[%s3011_s30 + $0xc8] sm:$0xff]  ;;  %v3035_v12 = vld [vmem:[%s3011_s30 + $0xd0] sm:$0x3]  ;;  %v353_v18 = vrot.slane %v3017_v6, 1  ;;  %v354_v19 = vrot.slane %v3020_v7, 1 }
  0x13   : > { %v3032_v11 = vld [vmem:[%s3011_s30 + $0x120] sm:$0xff]  ;;  %v3038_v13 = vld [vmem:[%s3011_s30 + $0x128] sm:$0xff]  ;;  %v3041_v14 = vld [vmem:[%s3011_s30 + $0x130] sm:$0x3]  ;;  %v356_v20 = vrot.slane %v3023_v8, 1  ;;  %v373_v21 = vrot.slane %v3026_v9, 1 }
  0x14   : > { %2919 = vmatpush.bf16.msra.mxu1 %v2854_v2  ;;  %2920 = vmatpush.bf16.msra.mxu2 %v2854_v2  ;;  %4167 = vst [vmem:[#allocation2_spill] sm:$0xff] %v3032_v11  ;;  %v3044_v15 = vld [vmem:[%s3011_s30] sm:$0xff]  ;;  %v3047_v16 = vld [vmem:[%s3011_s30 + $0x8] sm:$0xff]  ;;  %v3050_v17 = vld [vmem:[%s3011_s30 + $0x10] sm:$0x3]  ;;  %v374_v23 = vrot.slane %v3029_v10, 1  ;;  %v355_v31 = vsel %vm332_vm0, %v353_v18, %v354_v19 }
  0x15   : > { %2921 = vmatpush.bf16.msra.mxu3 %v2854_v2  ;;  %528 = vmatpush.bf16.msra.mxu0 %v2854_v2  ;;  %4168 = vst [vmem:[#allocation3_spill] sm:$0xff] %v3038_v13  ;;  %v376_v24 = vrot.slane %v3035_v12, 1  ;;  %v393_v25 = vrot.slane %v3032_v11, 1  ;;  %v394_v26 = vrot.slane %v3038_v13, 1  ;;  %v396_v27 = vrot.slane %v3041_v14, 1  ;;  %v3103_v50 = vld [vmem:[%s3011_s30 + $0x78] sm:$0xff] }
  0x16   : > { %4169 = vst [vmem:[#allocation4_spill] sm:$0xff] %v3041_v14  ;;  %v333_v28 = vrot.slane %v3044_v15, 1  ;;  %v334_v29 = vrot.slane %v3047_v16, 1  ;;  %v336_v30 = vrot.slane %v3050_v17, 1  ;;  %v357_v32 = vsel %vm332_vm0, %v354_v19, %v356_v20  ;;  %v3106_v51 = vld [vmem:[%s3011_s30 + $0x80] sm:$0xff]  ;;  %v3117_v54 = vld [vmem:[%s3011_s30 + $0xd8] sm:$0xff] }
  0x17   : > { %v375_v34 = vsel %vm332_vm0, %v373_v21, %v374_v23  ;;  %v377_v35 = vsel %vm332_vm0, %v374_v23, %v376_v24  ;;  %v395_v36 = vsel %vm332_vm0, %v393_v25, %v394_v26  ;;  %v397_v37 = vsel %vm332_vm0, %v394_v26, %v396_v27  ;;  %v3109_v52 = vld [vmem:[%s3011_s30 + $0x88] sm:$0x3]  ;;  %v3120_v55 = vld [vmem:[%s3011_s30 + $0xe0] sm:$0xff]  ;;  %v3127_v57 = vld [vmem:[%s3011_s30 + $0x138] sm:$0xff] }
  0x18   : > { %2922 = vmatpush.bf16.msra.mxu1 %v2853_v3  ;;  %2923 = vmatpush.bf16.msra.mxu2 %v2853_v3  ;;  %v335_v38 = vsel %vm332_vm0, %v333_v28, %v334_v29  ;;  %v337_v39 = vsel %vm332_vm0, %v334_v29, %v336_v30  ;;  %v3084_v42 = vpack.c.bf16 %v357_v32, %v355_v31  ;;  %v3123_v56 = vld [vmem:[%s3011_s30 + $0xe8] sm:$0x3]  ;;  %v3130_v58 = vld [vmem:[%s3011_s30 + $0x140] sm:$0xff]  ;;  %v3136_v60 = vld [vmem:[%s3011_s30 + $0x18] sm:$0xff]  ;;  %v358_v2 = vrot.slane %v3103_v50, 1 }
  0x19   : > { %2924 = vmatpush.bf16.msra.mxu3 %v2853_v3  ;;  %529 = vmatpush.bf16.msra.mxu0 %v2853_v3  ;;  %v3086_v43 = vpack.c.bf16 %v377_v35, %v375_v34  ;;  %v3088_v44 = vpack.c.bf16 %v397_v37, %v395_v36  ;;  %v445_v45 = vpack.c.bf16 %v337_v39, %v335_v38  ;;  %v3133_v59 = vld [vmem:[%s3011_s30 + $0x148] sm:$0x3]  ;;  %v3139_v61 = vld [vmem:[%s3011_s30 + $0x20] sm:$0xff]  ;;  %v2879_v62 = vld [vmem:[%s4119_s1 + $0x130] sm:$0xff]  ;;  %v359_v3 = vrot.slane %v3106_v51, 1 }
  0x1a   : > { %4172 = vst [vmem:[#allocation7_spill] sm:$0xff] %v3127_v57  ;;  %v3148_v0 = vld [vmem:[%s3011_s30 + $0x28] sm:$0x3]  ;;  %v379_v18 = vrot.slane %v3120_v55, 1  ;;  %v381_v19 = vrot.slane %v3123_v56, 1  ;;  %v398_v20 = vrot.slane %v3127_v57, 1 }
  0x1b   : > { %4170 = vst [vmem:[#allocation5_spill] sm:$0xff] %v3086_v43  ;;  %v2870_v1 = vld [vmem:[%s4119_s1 + $0xe8] sm:$0xff]  ;;  %v399_v21 = vrot.slane %v3130_v58, 1  ;;  %v338_v23 = vrot.slane %v3136_v60, 1  ;;  %v339_v24 = vrot.slane %v3139_v61, 1  ;;  %v341_v25 = vrot.slane %v3148_v0, 1 }
  0x1c   : > { %2925 = vmatpush.bf16.msra.mxu1 %v2852_v4  ;;  %2926 = vmatpush.bf16.msra.mxu2 %v2852_v4  ;;  %4171 = vst [vmem:[#allocation6_spill] sm:$0xff] %v3088_v44  ;;  %v2846_v26 = vld [vmem:[%s4119_s1 + $0x28] sm:$0xff]  ;;  %v2861_v28 = vld [vmem:[%s4119_s1 + $0xa0] sm:$0xff]  ;;  %v360_v30 = vsel %vm332_vm0, %v358_v2, %v359_v3  ;;  %v3221_v2 = vld [vmem:[%s3011_s30 + $0xf0] sm:$0xff] }
  0x1d   : > { %2927 = vmatpush.bf16.msra.mxu3 %v2852_v4  ;;  %530 = vmatpush.bf16.msra.mxu0 %v2852_v4  ;;  %4173 = vst [vmem:[#allocation8_spill] sm:$0xff] %v3130_v58  ;;  %v361_v4 = vrot.slane %v3109_v52, 1  ;;  %v2878_v27 = vld [vmem:[%s4119_s1 + $0x128] sm:$0xff]  ;;  %v2869_v29 = vld [vmem:[%s4119_s1 + $0xe0] sm:$0xff]  ;;  %v400_v34 = vsel %vm332_vm0, %v398_v20, %v399_v21  ;;  %v340_v36 = vsel %vm332_vm0, %v338_v23, %v339_v24  ;;  %v3243_v20 = vld [vmem:[%s3011_s30 + $0x158] sm:$0xff] }
  0x1e   : > { %4174 = vst [vmem:[#allocation9_spill] sm:$0xff] %v3133_v59  ;;  %v342_v37 = vsel %vm332_vm0, %v339_v24, %v341_v25  ;;  %v2845_v38 = vld [vmem:[%s4119_s1 + $0x20] sm:$0xff]  ;;  %v3252_v23 = vld [vmem:[%s3011_s30 + $0x38] sm:$0xff]  ;;  %v2843_v24 = vld [vmem:[%s4119_s1 + $0x10] sm:$0xff] }
  0x1f   : > { %v362_v31 = vsel %vm332_vm0, %v359_v3, %v361_v4  ;;  %v2877_v39 = vld [vmem:[%s4119_s1 + $0x120] sm:$0xff]  ;;  %v2859_v3 = vld [vmem:[%s4119_s1 + $0x90] sm:$0xff]  ;;  %4178 = vst [vmem:[#allocation13_spill] sm:$0xff] %v3243_v20 }
  0x20   : > { %2928 = vmatpush.bf16.msra.mxu1 %v2851_v5  ;;  %2929 = vmatpush.bf16.msra.mxu2 %v2851_v5  ;;  %v2867_v4 = vld [vmem:[%s4119_s1 + $0xd0] sm:$0xff] }
  0x21   : > { %2930 = vmatpush.bf16.msra.mxu3 %v2851_v5  ;;  %531 = vmatpush.bf16.msra.mxu0 %v2851_v5  ;;  %v378_v5 = vrot.slane %v3117_v54, 1  ;;  %v2875_v25 = vld [vmem:[%s4119_s1 + $0x110] sm:$0xff] }
  0x23   : > { %v380_v32 = vsel %vm332_vm0, %v378_v5, %v379_v18  ;;  %v3232_v5 = vld [vmem:[%s3011_s30 + $0xf8] sm:$0xff] }
  0x24   : > { %2931 = vmatpush.bf16.msra.mxu1 %v2850_v22  ;;  %2932 = vmatpush.bf16.msra.mxu2 %v2850_v22 }
  0x25   : > { %2933 = vmatpush.bf16.msra.mxu3 %v2850_v22  ;;  %532 = vmatpush.bf16.msra.mxu0 %v2850_v22  ;;  %v401_v22 = vrot.slane %v3133_v59, 1 }
  0x27   : > { %v402_v35 = vsel %vm332_vm0, %v399_v21, %v401_v22  ;;  %v3246_v21 = vld [vmem:[%s3011_s30 + $0x160] sm:$0x3]  ;;  %v3249_v22 = vld [vmem:[%s3011_s30 + $0x30] sm:$0xff] }
  0x28   : > { %2934 = vmatpush.bf16.msra.mxu1 %v2849_v33  ;;  %2935 = vmatpush.bf16.msra.mxu2 %v2849_v33  ;;  %4179 = vst [vmem:[#allocation14_spill] sm:$0xff] %v3246_v21 }
  0x29   : > { %2936 = vmatpush.bf16.msra.mxu3 %v2849_v33  ;;  %533 = vmatpush.bf16.msra.mxu0 %v2849_v33  ;;  %v382_v33 = vsel %vm332_vm0, %v379_v18, %v381_v19  ;;  %v3235_v18 = vld [vmem:[%s3011_s30 + $0x100] sm:$0x3]  ;;  %v3238_v19 = vld [vmem:[%s3011_s30 + $0x150] sm:$0xff] }
  0x2a   : > { %4177 = vst [vmem:[#allocation12_spill] sm:$0xff] %v3238_v19 }
  0x2b   : > { %554 = vmatmul.bf16.vlgmr.msra.gmra.mxu1 %v3084_v42  ;;  %574 = vmatmul.bf16.vlgmr.msra.gmra.mxu2 %v3086_v43 }
  0x2c   : > { %946 = vmatpush.bf16.msrb.mxu2 %v2864_v40  ;;  %594 = vmatmul.bf16.vlgmr.msra.gmra.mxu3 %v3088_v44  ;;  %v2860_v40 = vld [vmem:[%s4119_s1 + $0x98] sm:$0xff] }
  0x2d   : > { %1133 = vmatpush.bf16.msrb.mxu3 %v2872_v41  ;;  %534 = vmatmul.bf16.vlgmr.msra.gmra.mxu0 %v445_v45  ;;  %v2868_v41 = vld [vmem:[%s4119_s1 + $0xd8] sm:$0xff]  ;;  %v3197_v45 = vpack.c.bf16 %v362_v31, %v360_v30 }
  0x2e   : > { %663 = vmatpush.bf16.msrb.mxu1 %v2848_v46  ;;  %1330 = vmatpush.bf16.msrb.mxu0 %v2880_v49  ;;  %v3199_v46 = vpack.c.bf16 %v382_v33, %v380_v32  ;;  %v2844_v49 = vld [vmem:[%s4119_s1 + $0x18] sm:$0xff]  ;;  %v383_v33 = vrot.slane %v3221_v2, 1 }
  0x30   : > { %947 = vmatpush.bf16.msrb.mxu2 %v2863_v47  ;;  %4175 = vst [vmem:[#allocation10_spill] sm:$0xff] %v3199_v46  ;;  %v3201_v47 = vpack.c.bf16 %v402_v35, %v400_v34  ;;  %v384_v34 = vrot.slane %v3232_v5, 1  ;;  %v386_v35 = vrot.slane %v3235_v18, 1 }
  0x31   : > { %1134 = vmatpush.bf16.msrb.mxu3 %v2871_v48  ;;  %v3203_v48 = vpack.c.bf16 %v342_v37, %v340_v36  ;;  %v403_v36 = vrot.slane %v3238_v19, 1  ;;  %v404_v37 = vrot.slane %v3243_v20, 1 }
  0x32   : > { %664 = vmatpush.bf16.msrb.mxu1 %v2847_v53  ;;  %1331 = vmatpush.bf16.msrb.mxu0 %v2879_v62  ;;  %4176 = vst [vmem:[#allocation11_spill] sm:$0xff] %v3201_v47  ;;  %v2876_v53 = vld [vmem:[%s4119_s1 + $0x118] sm:$0xff]  ;;  %v3212_v62 = vld [vmem:[%s3011_s30 + $0x90] sm:$0xff] }
  0x33   : > { %v363_v30 = vrot.slane %v3212_v62, 1  ;;  %v405_v20 = vsel %vm332_vm0, %v403_v36, %v404_v37  ;;  %v3318_v36 = vld [vmem:[%s3011_s30 + $0xa8] sm:$0xff] }
  0x34   : > { %948 = vmatpush.bf16.msrb.mxu2 %v2862_v63  ;;  %v3215_v63 = vld [vmem:[%s3011_s30 + $0x98] sm:$0xff] }
  0x35   : > { %1135 = vmatpush.bf16.msrb.mxu3 %v2870_v1  ;;  %v3218_v1 = vld [vmem:[%s3011_s30 + $0xa0] sm:$0x3]  ;;  %v364_v31 = vrot.slane %v3215_v63, 1 }
  0x36   : > { %665 = vmatpush.bf16.msrb.mxu1 %v2846_v26  ;;  %1332 = vmatpush.bf16.msrb.mxu0 %v2878_v27  ;;  %v3263_v27 = vld [vmem:[%s3011_s30 + $0x40] sm:$0x3]  ;;  %v366_v32 = vrot.slane %v3218_v1, 1  ;;  %v385_v26 = vsel %vm332_vm0, %v383_v33, %v384_v34 }
  0x38   : > { %949 = vmatpush.bf16.msrb.mxu2 %v2861_v28  ;;  %v2858_v28 = vld [vmem:[%s4119_s1 + $0x88] sm:$0xff] }
  0x39   : > { %1136 = vmatpush.bf16.msrb.mxu3 %v2869_v29  ;;  %v2866_v29 = vld [vmem:[%s4119_s1 + $0xc8] sm:$0xff] }
  0x3a   : > { %666 = vmatpush.bf16.msrb.mxu1 %v2845_v38  ;;  %1333 = vmatpush.bf16.msrb.mxu0 %v2877_v39  ;;  %v406_v38 = vrot.slane %v3246_v21, 1  ;;  %v343_v39 = vrot.slane %v3249_v22, 1  ;;  %v387_v21 = vsel %vm332_vm0, %v384_v34, %v386_v35 }
  0x3b   : > { %559 = vmatmul.bf16.gmra.mxu1 %v3197_v45  ;;  %579 = vmatmul.bf16.gmra.mxu2 %v3199_v46  ;;  %v3311_v33 = vpack.c.bf16 %v387_v21, %v385_v26  ;;  %v3338_v21 = vld [vmem:[%s3011_s30 + $0x168] sm:$0xff]  ;;  %v2896_v26 = vld [vmem:[%s4119_s1 + $0x1b8] sm:$0xff] }
  0x3c   : > { %950 = vmatpush.bf16.msrb.mxu2 %v2860_v40  ;;  %599 = vmatmul.bf16.gmra.mxu3 %v3201_v47  ;;  %v344_v40 = vrot.slane %v3252_v23, 1  ;;  %4185 = vst [vmem:[#allocation20_spill] sm:$0xff] %v3338_v21  ;;  %v408_v47 = vrot.slane %v3338_v21, 1 }
  0x3d   : > { %1137 = vmatpush.bf16.msrb.mxu3 %v2868_v41  ;;  %539 = vmatmul.bf16.gmra.mxu0 %v3203_v48  ;;  %v346_v41 = vrot.slane %v3263_v27, 1  ;;  %4180 = vst [vmem:[#allocation15_spill] sm:$0xff] %v3311_v33 }
  0x3e   : > { %667 = vmatpush.bf16.msrb.mxu1 %v2844_v49  ;;  %1334 = vmatpush.bf16.msrb.mxu0 %v2876_v53  ;;  %v2842_v49 = vld [vmem:[%s4119_s1 + $0x8] sm:$0xff] }
  0x3f   : > { %v2874_v53 = vld [vmem:[%s4119_s1 + $0x108] sm:$0xff]  ;;  %v347_v19 = vsel %vm332_vm0, %v344_v40, %v346_v41  ;;  %v2888_v41 = vld [vmem:[%s4119_s1 + $0x178] sm:$0xff] }
  0x40   : > { %951 = vmatpush.bf16.msrb.mxu2 %v2859_v3  ;;  %v2857_v3 = vld [vmem:[%s4119_s1 + $0x80] sm:$0xff] }
  0x41   : > { %1138 = vmatpush.bf16.msrb.mxu3 %v2867_v4  ;;  %v2865_v4 = vld [vmem:[%s4119_s1 + $0xc0] sm:$0xff] }
  0x42   : > { %668 = vmatpush.bf16.msrb.mxu1 %v2843_v24  ;;  %1335 = vmatpush.bf16.msrb.mxu0 %v2875_v25  ;;  %v365_v24 = vsel %vm332_vm0, %v363_v30, %v364_v31  ;;  %v367_v25 = vsel %vm332_vm0, %v364_v31, %v366_v32  ;;  %v2841_v30 = vld [vmem:[%s4119_s1] sm:$0xff] }
  0x43   : > { %v2873_v31 = vld [vmem:[%s4119_s1 + $0x100] sm:$0xff]  ;;  %v3309_v32 = vpack.c.bf16 %v367_v25, %v365_v24  ;;  %v3364_v24 = vld [vmem:[%s3011_s30 + $0x50] sm:$0xff]  ;;  %v3367_v25 = vld [vmem:[%s3011_s30 + $0x58] sm:$0x3] }
  0x44   : > { %952 = vmatpush.bf16.msrb.mxu2 %v2858_v28  ;;  %v407_v28 = vsel %vm332_vm0, %v404_v37, %v406_v38  ;;  %v3321_v37 = vld [vmem:[%s3011_s30 + $0xb0] sm:$0xff]  ;;  %v3324_v38 = vld [vmem:[%s3011_s30 + $0xb8] sm:$0x3]  ;;  %v349_v57 = vrot.slane %v3364_v24, 1  ;;  %v351_v14 = vrot.slane %v3367_v25, 1 }
  0x45   : > { %1139 = vmatpush.bf16.msrb.mxu3 %v2866_v29  ;;  %v345_v29 = vsel %vm332_vm0, %v343_v39, %v344_v40  ;;  %v3313_v34 = vpack.c.bf16 %v407_v28, %v405_v20  ;;  %v3327_v39 = vld [vmem:[%s3011_s30 + $0x108] sm:$0xff]  ;;  %v3335_v20 = vld [vmem:[%s3011_s30 + $0x118] sm:$0x3]  ;;  %v368_v28 = vrot.slane %v3318_v36, 1 }
  0x46   : > { %669 = vmatpush.bf16.msrb.mxu1 %v2842_v49  ;;  %1336 = vmatpush.bf16.msrb.mxu0 %v2874_v53  ;;  %v3315_v35 = vpack.c.bf16 %v347_v19, %v345_v29  ;;  %4182 = vst [vmem:[#allocation17_spill] sm:$0xff] %v3327_v39  ;;  %v3332_v19 = vld [vmem:[%s3011_s30 + $0x110] sm:$0xff]  ;;  %v2904_v40 = vld [vmem:[%s4119_s1 + $0x1f8] sm:$0xff]  ;;  %v369_v29 = vrot.slane %v3321_v37, 1  ;;  %v391_v59 = vrot.slane %v3335_v20, 1  ;;  %v352_v11 = vsel %vm332_vm0, %v349_v57, %v351_v14 }
  0x47   : > { %4181 = vst [vmem:[#allocation16_spill] sm:$0xff] %v3313_v34  ;;  %v3352_v49 = vld [vmem:[%s3011_s30 + $0x170] sm:$0xff]  ;;  %v3355_v53 = vld [vmem:[%s3011_s30 + $0x178] sm:$0x3]  ;;  %v753_v14 = vrot.slane %v3044_v15, 2 }
  0x48   : > { %953 = vmatpush.bf16.msrb.mxu2 %v2857_v3  ;;  %4183 = vst [vmem:[#allocation18_spill] sm:$0xff] %v3332_v19  ;;  %v2912_v3 = vld [vmem:[%s4119_s1 + $0x238] sm:$0xff]  ;;  %v409_v58 = vrot.slane %v3352_v49, 1  ;;  %v370_v44 = vsel %vm332_vm0, %v368_v28, %v369_v29 }
  0x49   : > { %1140 = vmatpush.bf16.msrb.mxu3 %v2865_v4  ;;  %4184 = vst [vmem:[#allocation19_spill] sm:$0xff] %v3335_v20  ;;  %v3361_v4 = vld [vmem:[%s3011_s30 + $0x48] sm:$0xff] }
  0x4a   : > { %670 = vmatpush.bf16.msrb.mxu1 %v2841_v30  ;;  %1337 = vmatpush.bf16.msrb.mxu0 %v2873_v31  ;;  %4186 = vst [vmem:[#allocation21_spill] sm:$0xff] %v3352_v49  ;;  %v371_v30 = vrot.slane %v3324_v38, 1  ;;  %v388_v31 = vrot.slane %v3327_v39, 1  ;;  %v410_v21 = vsel %vm332_vm0, %v408_v47, %v409_v58  ;;  %v4190_v47 = vpack.c.bf16 %v3047_v16, %v3044_v15  ;;  %v2911_v15 = vld [vmem:[%s4119_s1 + $0x230] sm:$0xff] }
  0x4b   : > { %564 = vmatmul.bf16.gmra.mxu1 %v3309_v32  ;;  %584 = vmatmul.bf16.gmra.mxu2 %v3311_v33  ;;  %4187 = vst [vmem:[#allocation22_spill] sm:$0xff] %v3355_v53 }
  0x4c   : > { %604 = vmatmul.bf16.gmra.mxu3 %v3313_v34  ;;  %1711 = vmatpush.bf16.msra.mxu2 %v2896_v26  ;;  %v389_v34 = vrot.slane %v3332_v19, 1  ;;  %v411_v26 = vrot.slane %v3355_v53, 1 }
  0x4d   : > { %544 = vmatmul.bf16.gmra.mxu0 %v3315_v35  ;;  %1908 = vmatpush.bf16.msra.mxu3 %v2904_v40  ;;  %v348_v40 = vrot.slane %v3361_v4, 1 }
  0x4e   : > { %1524 = vmatpush.bf16.msra.mxu1 %v2888_v41  ;;  %2102 = vmatpush.bf16.msra.mxu0 %v2912_v3  ;;  %v372_v41 = vsel %vm332_vm0, %v369_v29, %v371_v30  ;;  %v390_v3 = vsel %vm332_vm0, %v388_v31, %v389_v34  ;;  %v392_v13 = vsel %vm332_vm0, %v389_v34, %v391_v59  ;;  %v2903_v34 = vld [vmem:[%s4119_s1 + $0x1f0] sm:$0xff] }
  0x4f   : > { %v412_v49 = vsel %vm332_vm0, %v409_v58, %v411_v26  ;;  %v350_v53 = vsel %vm332_vm0, %v348_v40, %v349_v57  ;;  %v3389_v20 = vpack.c.bf16 %v372_v41, %v370_v44  ;;  %v3391_v19 = vpack.c.bf16 %v392_v13, %v390_v3 }
  0x50   : > { %v3393_v39 = vpack.c.bf16 %v412_v49, %v410_v21  ;;  %v3395_v28 = vpack.c.bf16 %v352_v11, %v350_v53  ;;  %v756_v58 = vrot.slane %v3050_v17, 2  ;;  %v754_v44 = vrot.slane %v3047_v16, 2  ;;  %v2895_v17 = vld [vmem:[%s4119_s1 + $0x1b0] sm:$0xff] }
  0x51   : > { %4188 = vst [vmem:[#allocation23_spill] sm:$0xff] %v3389_v20  ;;  %v253_v59 = vpack.c.bf16 %v3139_v61, %v3136_v60  ;;  %v2887_v21 = vld [vmem:[%s4119_s1 + $0x170] sm:$0xff]  ;;  %1712 = vmatpush.bf16.msra.mxu2 %v2895_v17  ;;  %1909 = vmatpush.bf16.msra.mxu3 %v2903_v34  ;;  %v758_v16 = vrot.slane %v3136_v60, 2  ;;  %v761_v49 = vrot.slane %v3148_v0, 2  ;;  %v3433_v31 = vpack.c.bf16 %v3252_v23, %v3249_v22 }
  0x52   : > { %4189 = vst [vmem:[#allocation24_spill] sm:$0xff] %v3393_v39  ;;  %v755_v13 = vsel %vm752_vm1, %v753_v14, %v754_v44  ;;  %v757_v11 = vsel %vm752_vm1, %v754_v44, %v756_v58  ;;  %1525 = vmatpush.bf16.msra.mxu1 %v2887_v21  ;;  %2103 = vmatpush.bf16.msra.mxu0 %v2911_v15  ;;  %v763_v60 = vrot.slane %v3249_v22, 2  ;;  %v766_v0 = vrot.slane %v3263_v27, 2  ;;  %v2894_v22 = vld [vmem:[%s4119_s1 + $0x1a8] sm:$0xff] }
  0x53   : > { %v865_v57 = vpack.c.bf16 %v757_v11, %v755_v13  ;;  %v3447_v3 = vpack.c.bf16 %v3364_v24, %v3361_v4  ;;  %v2886_v27 = vld [vmem:[%s4119_s1 + $0x168] sm:$0xff]  ;;  %v768_v58 = vrot.slane %v3361_v4, 2  ;;  %v769_v14 = vrot.slane %v3364_v24, 2 }
  0x54   : > { %v771_v44 = vrot.slane %v3367_v25, 2  ;;  %v2910_v13 = vld [vmem:[%s4119_s1 + $0x228] sm:$0xff]  ;;  %v773_v4 = vrot.slane %v3017_v6, 2  ;;  %v774_v24 = vrot.slane %v3020_v7, 2  ;;  %v776_v25 = vrot.slane %v3023_v8, 2 }
  0x55   : > { %1713 = vmatpush.bf16.msra.mxu2 %v2894_v22  ;;  %v770_v11 = vsel %vm752_vm1, %v768_v58, %v769_v14 }
  0x56   : > { %1526 = vmatpush.bf16.msra.mxu1 %v2886_v27  ;;  %2104 = vmatpush.bf16.msra.mxu0 %v2910_v13  ;;  %v775_v17 = vsel %vm752_vm1, %v773_v4, %v774_v24  ;;  %v777_v34 = vsel %vm752_vm1, %v774_v24, %v776_v25  ;;  %v784_v4 = vrot.slane %v3215_v63, 2  ;;  %v786_v24 = vrot.slane %v3218_v1, 2  ;;  %v2892_v1 = vld [vmem:[%s4119_s1 + $0x198] sm:$0xff] }
  0x57   : > { %v3485_v21 = vpack.c.bf16 %v777_v34, %v775_v17 }
  0x58   : > { %v787_v34 = vsel %vm752_vm1, %v784_v4, %v786_v24 }
  0x5b   : > { %569 = vmatmul.bf16.gmra.mxu1 %v3389_v20  ;;  %589 = vmatmul.bf16.gmra.mxu2 %v3391_v19 }
  0x5c   : > { %609 = vmatmul.bf16.gmra.mxu3 %v3393_v39 }
  0x5d   : > { %549 = vmatmul.bf16.gmra.mxu0 %v3395_v28 }
  0x6b   : > { %671 = vmatmul.bf16.vlgmr.msrb.gmra.mxu1 %v4190_v47  ;;  %954 = vmatmul.bf16.vlgmr.msrb.gmra.mxu2 %v865_v57  ;;  %v772_v57 = vsel %vm752_vm1, %v769_v14, %v771_v44  ;;  %v3474_v47 = vpack.c.bf16 %v3020_v7, %v3017_v6  ;;  %v2893_v6 = vld [vmem:[%s4119_s1 + $0x1a0] sm:$0xff] }
  0x6c   : > { %1141 = vmatmul.bf16.vlgmr.msrb.gmra.mxu3 %v253_v59  ;;  %v2901_v7 = vld [vmem:[%s4119_s1 + $0x1e0] sm:$0xff]  ;;  %1714 = vmatpush.bf16.msra.mxu2 %v2893_v6 }
  0x6d   : > { %1338 = vmatmul.bf16.vlgmr.msrb.gmra.mxu0 %v3203_v48  ;;  %v759_v48 = vrot.slane %v3139_v61, 2  ;;  %v764_v61 = vrot.slane %v3252_v23, 2  ;;  %v2902_v23 = vld [vmem:[%s4119_s1 + $0x1e8] sm:$0xff] }
  0x6e   : > { %1910 = vmatpush.bf16.msra.mxu3 %v2902_v23 }
  0x6f   : > { %v760_v53 = vsel %vm752_vm1, %v758_v16, %v759_v48  ;;  %v762_v29 = vsel %vm752_vm1, %v759_v48, %v761_v49  ;;  %v765_v26 = vsel %vm752_vm1, %v763_v60, %v764_v61  ;;  %v767_v40 = vsel %vm752_vm1, %v764_v61, %v766_v0 }
  0x70   : > { %v3429_v30 = vpack.c.bf16 %v762_v29, %v760_v53  ;;  %v3443_v41 = vpack.c.bf16 %v767_v40, %v765_v26  ;;  %v3491_v16 = vpack.c.bf16 %v3106_v51, %v3103_v50  ;;  %v2885_v53 = vld [vmem:[%s4119_s1 + $0x160] sm:$0xff]  ;;  %v778_v60 = vrot.slane %v3103_v50, 2  ;;  %1715 = vmatpush.bf16.msra.mxu2 %v2892_v1 }
  0x71   : > { %v779_v61 = vrot.slane %v3106_v51, 2  ;;  %v781_v0 = vrot.slane %v3109_v52, 2  ;;  %1527 = vmatpush.bf16.msra.mxu1 %v2885_v53  ;;  %v2909_v40 = vld [vmem:[%s4119_s1 + $0x220] sm:$0xff]  ;;  %v3534_v52 = vpack.c.bf16 %v3215_v63, %v3212_v62 }
  0x72   : > { %1911 = vmatpush.bf16.msra.mxu3 %v2901_v7  ;;  %2105 = vmatpush.bf16.msra.mxu0 %v2909_v40 }
  0x73   : > { %v780_v22 = vsel %vm752_vm1, %v778_v60, %v779_v61  ;;  %v782_v23 = vsel %vm752_vm1, %v779_v61, %v781_v0  ;;  %v2900_v61 = vld [vmem:[%s4119_s1 + $0x1d8] sm:$0xff] }
  0x74   : > { %v3528_v50 = vpack.c.bf16 %v782_v23, %v780_v22  ;;  %v788_v23 = vrot.slane %v3318_v36, 2 }
  0x76   : > { %1912 = vmatpush.bf16.msra.mxu3 %v2900_v61 }
  0x7b   : > { %676 = vmatmul.bf16.gmra.mxu1 %v253_v59  ;;  %959 = vmatmul.bf16.gmra.mxu2 %v3429_v30  ;;  %v3470_v59 = vpack.c.bf16 %v772_v57, %v770_v11  ;;  %v783_v57 = vrot.slane %v3212_v62, 2  ;;  %v3565_v62 = vpack.c.bf16 %v3321_v37, %v3318_v36 }
  0x7c   : > { %1146 = vmatmul.bf16.gmra.mxu3 %v3433_v31 }
  0x7d   : > { %1343 = vmatmul.bf16.gmra.mxu0 %v3315_v35  ;;  %v785_v17 = vsel %vm752_vm1, %v783_v57, %v784_v4  ;;  %4195 = vst [vmem:[#allocation29_spill] sm:$0xff] %v3565_v62  ;;  %v789_v57 = vrot.slane %v3321_v37, 2  ;;  %v791_v4 = vrot.slane %v3324_v38, 2 }
  0x7e   : > { %v3559_v53 = vpack.c.bf16 %v787_v34, %v785_v17  ;;  %v2884_v17 = vld [vmem:[%s4119_s1 + $0x158] sm:$0xff] }
  0x7f   : > { %v2908_v34 = vld [vmem:[%s4119_s1 + $0x218] sm:$0xff]  ;;  %1528 = vmatpush.bf16.msra.mxu1 %v2884_v17  ;;  %v790_v1 = vsel %vm752_vm1, %v788_v23, %v789_v57  ;;  %v792_v36 = vsel %vm752_vm1, %v789_v57, %v791_v4  ;;  %v793_v17 = vrot.slane %v3026_v9, 2 }
  0x80   : > { %2106 = vmatpush.bf16.msra.mxu0 %v2908_v34  ;;  %v3602_v38 = vpack.c.bf16 %v792_v36, %v790_v1  ;;  %v794_v34 = vrot.slane %v3029_v10, 2  ;;  %v796_v1 = vrot.slane %v3035_v12, 2 }
  0x82   : > { %4198 = vst [vmem:[#allocation32_spill] sm:$0xff] %v3602_v38 }
  0x8b   : > { %681 = vmatmul.bf16.gmra.mxu1 %v3433_v31  ;;  %964 = vmatmul.bf16.gmra.mxu2 %v3443_v41 }
  0x8c   : > { %1151 = vmatmul.bf16.gmra.mxu3 %v3447_v3 }
  0x8d   : > { %1348 = vmatmul.bf16.gmra.mxu0 %v3395_v28 }
  0x9b   : > { %686 = vmatmul.bf16.gmra.mxu1 %v3447_v3  ;;  %969 = vmatmul.bf16.gmra.mxu2 %v3470_v59 }
  0x9c   : > { %1156 = vmatmul.bf16.gmra.mxu3 %v3474_v47 }
  0x9d   : > { %1353 = vmatmul.bf16.gmra.mxu0 %v3084_v42 }
  0xa8   : > { %v3487_v15 = vpop.f32.mrf.mxu1 }
  0xaa   : > { %v3493_v48 = vpop.f32.mrf.mxu0 }
  0xab   : > { %691 = vmatmul.bf16.gmra.mxu1 %v3474_v47  ;;  %974 = vmatmul.bf16.gmra.mxu2 %v3485_v21 }
  0xac   : > { %1161 = vmatmul.bf16.gmra.mxu3 %v3491_v16 }
  0xad   : > { %1358 = vmatmul.bf16.gmra.mxu0 %v3197_v45 }
  0xae   : > { %v3505_v8 = vpop.f32.mrf.mxu2 }
  0xaf   : > { %v3507_v49 = vpop.f32.mrf.mxu3 }
  0xb0   : > { %4191 = vst [vmem:[#allocation25_spill] sm:$0xff] %v3507_v49  ;;  %v3512_v29 = vpop.f32.mrf.mxu1  ;;  %v2883_v49 = vld [vmem:[%s4119_s1 + $0x150] sm:$0xff] }
  0xb1   : > { %1529 = vmatpush.bf16.msra.mxu1 %v2883_v49 }
  0xb2   : > { %v3517_v26 = vpop.f32.mrf.mxu0 }
  0xb6   : > { %v3524_v27 = vpop.f32.mrf.mxu2 }
  0xb7   : > { %v3526_v58 = vpop.f32.mrf.mxu3 }
  0xb8   : > { %4192 = vst [vmem:[#allocation26_spill] sm:$0xff] %v3526_v58  ;;  %v3530_v51 = vpop.f32.mrf.mxu1 }
  0xba   : > { %v3536_v14 = vpop.f32.mrf.mxu0 }
  0xbb   : > { %696 = vmatmul.bf16.gmra.mxu1 %v3491_v16  ;;  %979 = vmatmul.bf16.gmra.mxu2 %v3528_v50 }
  0xbc   : > { %1166 = vmatmul.bf16.gmra.mxu3 %v3534_v52 }
  0xbd   : > { %1363 = vmatmul.bf16.gmra.mxu0 %v3309_v32 }
  0xbe   : > { %v3542_v44 = vpop.f32.mrf.mxu2 }
  0xbf   : > { %v3544_v13 = vpop.f32.mrf.mxu3 }
  0xc0   : > { %4193 = vst [vmem:[#allocation27_spill] sm:$0xff] %v3544_v13  ;;  %v3546_v11 = vpop.f32.mrf.mxu1 }
  0xc2   : > { %v3551_v25 = vpop.f32.mrf.mxu0 }
  0xc6   : > { %v3555_v6 = vpop.f32.mrf.mxu2 }
  0xc7   : > { %v3557_v7 = vpop.f32.mrf.mxu3 }
  0xc8   : > { %4194 = vst [vmem:[#allocation28_spill] sm:$0xff] %v3557_v7  ;;  %v3561_v60 = vpop.f32.mrf.mxu1  ;;  %v3608_v7 = vpack.c.bf16 %v3029_v10, %v3026_v9  ;;  %v3637_v9 = vpack.c.bf16 %v3120_v55, %v3117_v54 }
  0xca   : > { %v3567_v63 = vpop.f32.mrf.mxu0  ;;  %4199 = vst [vmem:[#allocation33_spill] sm:$0xff] %v3608_v7 }
  0xcb   : > { %701 = vmatmul.bf16.gmra.mxu1 %v3534_v52  ;;  %984 = vmatmul.bf16.gmra.mxu2 %v3559_v53 }
  0xcc   : > { %1171 = vmatmul.bf16.gmra.mxu3 %v3565_v62 }
  0xcd   : > { %1368 = vmatmul.bf16.gmra.mxu0 %v3389_v20 }
  0xce   : > { %v3579_v0 = vpop.f32.mrf.mxu2 }
  0xcf   : > { %v3581_v40 = vpop.f32.mrf.mxu3 }
  0xd0   : > { %4196 = vst [vmem:[#allocation30_spill] sm:$0xff] %v3581_v40  ;;  %v3583_v22 = vpop.f32.mrf.mxu1 }
  0xd2   : > { %v3588_v24 = vpop.f32.mrf.mxu0 }
  0xd6   : > { %v3598_v61 = vpop.f32.mrf.mxu2 }
  0xd7   : > { %v3600_v37 = vpop.f32.mrf.mxu3 }
  0xd8   : > { %4197 = vst [vmem:[#allocation31_spill] sm:$0xff] %v3600_v37  ;;  %v3604_v40 = vpop.f32.mrf.mxu1  ;;  %v795_v37 = vsel %vm752_vm1, %v793_v17, %v794_v34 }
  0xda   : > { %v3610_v13 = vpop.f32.mrf.mxu0 }
  0xdb   : > { %706 = vmatmul.bf16.gmra.mxu1 %v3565_v62  ;;  %989 = vmatmul.bf16.gmra.mxu2 %v3602_v38  ;;  %v797_v38 = vsel %vm752_vm1, %v794_v34, %v796_v1  ;;  %v798_v1 = vrot.slane %v3117_v54, 2 }
  0xdc   : > { %1176 = vmatmul.bf16.gmra.mxu3 %v3608_v7  ;;  %v3633_v62 = vpack.c.bf16 %v797_v38, %v795_v37  ;;  %v2891_v37 = vld [vmem:[%s4119_s1 + $0x190] sm:$0xff] }
  0xdd   : > { %1373 = vmatmul.bf16.gmra.mxu0 %v3086_v43  ;;  %v2899_v38 = vld [vmem:[%s4119_s1 + $0x1d0] sm:$0xff]  ;;  %1716 = vmatpush.bf16.msra.mxu2 %v2891_v37 }
  0xde   : > { %v3616_v23 = vpop.f32.mrf.mxu2  ;;  %4202 = vst [vmem:[#allocation36_spill] sm:$0xff] %v3633_v62  ;;  %1913 = vmatpush.bf16.msra.mxu3 %v2899_v38 }
  0xdf   : > { %v3618_v57 = vpop.f32.mrf.mxu3 }
  0xe0   : > { %4200 = vst [vmem:[#allocation34_spill] sm:$0xff] %v3618_v57  ;;  %v3620_v4 = vpop.f32.mrf.mxu1 }
  0xe2   : > { %v3625_v36 = vpop.f32.mrf.mxu0 }
  0xe6   : > { %v3629_v20 = vpop.f32.mrf.mxu2 }
  0xe7   : > { %v3631_v43 = vpop.f32.mrf.mxu3 }
  0xe8   : > { %4201 = vst [vmem:[#allocation35_spill] sm:$0xff] %v3631_v43  ;;  %v672_v57 = vpop.f32.mrf.mxu1  ;;  %v799_v43 = vrot.slane %v3120_v55, 2 }
  0xe9   : > { %v673_v10 = vadd.f32 %v672_v57, %v3493_v48 }
  0xea   : > { %v1339_v12 = vpop.f32.mrf.mxu0  ;;  %v800_v54 = vsel %vm752_vm1, %v798_v1, %v799_v43  ;;  %v803_v1 = vrot.slane %v3221_v2, 2 }
  0xeb   : > { %711 = vmatmul.bf16.gmra.mxu1 %v3608_v7  ;;  %994 = vmatmul.bf16.gmra.mxu2 %v3633_v62 }
  0xec   : > { %1181 = vmatmul.bf16.gmra.mxu3 %v3637_v9 }
  0xed   : > { %1378 = vmatmul.bf16.gmra.mxu0 %v3199_v46  ;;  %v801_v46 = vrot.slane %v3123_v56, 2 }
  0xee   : > { %v955_v17 = vpop.f32.mrf.mxu2 }
  0xef   : > { %v1035_v48 = vadd.f32 %v955_v17, %v673_v10  ;;  %v1142_v57 = vpop.f32.mrf.mxu3  ;;  %v2907_v10 = vld [vmem:[%s4119_s1 + $0x210] sm:$0xff]  ;;  %v802_v55 = vsel %vm752_vm1, %v799_v43, %v801_v46 }
  0xf0   : > { %v674_v34 = vpop.f32.mrf.mxu1  ;;  %2107 = vmatpush.bf16.msra.mxu0 %v2907_v10  ;;  %v3664_v17 = vpack.c.bf16 %v802_v55, %v800_v54  ;;  %v804_v54 = vrot.slane %v3232_v5, 2 }
  0xf1   : > { %v1222_v62 = vadd.f32 %v1142_v57, %v1035_v48  ;;  %v675_v7 = vadd.f32 %v674_v34, %v3517_v26  ;;  %v3668_v57 = vpack.c.bf16 %v3232_v5, %v3221_v2  ;;  %v4207_v5 = vld [vmem:[#allocation18_spill] sm:$0xff] }
  0xf2   : > { %v1341_v58 = vpop.f32.mrf.mxu0 }
  0xf3   : > { %v3660_v37 = vadd.f32 %v1339_v12, %v1222_v62 }
  0xf5   : > { %4203 = vst [vmem:[#allocation37_spill] sm:$0xff] %v3660_v37  ;;  %v4206_v37 = vld [vmem:[#allocation17_spill] sm:$0xff] }
  0xf6   : > { %v957_v56 = vpop.f32.mrf.mxu2 }
  0xf7   : > { %v1036_v38 = vadd.f32 %v957_v56, %v675_v7  ;;  %v1144_v26 = vpop.f32.mrf.mxu3 }
  0xf8   : > { %v677_v48 = vpop.f32.mrf.mxu1 }
  0xf9   : > { %v1223_v34 = vadd.f32 %v1144_v26, %v1036_v38  ;;  %v678_v49 = vadd.f32 %v677_v48, %v3536_v14  ;;  %v806_v14 = vrot.slane %v3235_v18, 2  ;;  %v805_v26 = vsel %vm752_vm1, %v803_v1, %v804_v54 }
  0xfa   : > { %v1344_v10 = vpop.f32.mrf.mxu0 }
  0xfb   : > { %716 = vmatmul.bf16.gmra.mxu1 %v3637_v9  ;;  %999 = vmatmul.bf16.gmra.mxu2 %v3664_v17  ;;  %v3673_v62 = vadd.f32 %v1341_v58, %v1223_v34  ;;  %v807_v48 = vsel %vm752_vm1, %v804_v54, %v806_v14 }
  0xfc   : > { %1186 = vmatmul.bf16.gmra.mxu3 %v3668_v57 }
  0xfd   : > { %4204 = vst [vmem:[#allocation38_spill] sm:$0xff] %v3673_v62  ;;  %1383 = vmatmul.bf16.gmra.mxu0 %v3311_v33  ;;  %v3685_v62 = vpack.c.bf16 %v807_v48, %v805_v26  ;;  %v3689_v33 = vpack.c.bf16 %v4207_v5, %v4206_v37 }
  0xfe   : > { %v960_v43 = vpop.f32.mrf.mxu2 }
  0xff   : > { %v1037_v46 = vadd.f32 %v960_v43, %v678_v49  ;;  %v1147_v7 = vpop.f32.mrf.mxu3 }
 0x100   : > { %v679_v12 = vpop.f32.mrf.mxu1 }
 0x101   : > { %v1224_v55 = vadd.f32 %v1147_v7, %v1037_v46  ;;  %v680_v56 = vadd.f32 %v679_v12, %v3551_v25  ;;  %v2890_v7 = vld [vmem:[%s4119_s1 + $0x188] sm:$0xff] }
 0x102   : > { %v1346_v38 = vpop.f32.mrf.mxu0  ;;  %v2898_v12 = vld [vmem:[%s4119_s1 + $0x1c8] sm:$0xff]  ;;  %1717 = vmatpush.bf16.msra.mxu2 %v2890_v7 }
 0x103   : > { %v3681_v58 = vadd.f32 %v1344_v10, %v1224_v55  ;;  %1914 = vmatpush.bf16.msra.mxu3 %v2898_v12  ;;  %v808_v55 = vrot.slane %v4206_v37, 2 }
 0x105   : > { %4205 = vst [vmem:[#allocation39_spill] sm:$0xff] %v3681_v58 }
 0x106   : > { %v962_v34 = vpop.f32.mrf.mxu2 }
 0x107   : > { %v1038_v49 = vadd.f32 %v962_v34, %v680_v56  ;;  %v1149_v43 = vpop.f32.mrf.mxu3  ;;  %v809_v56 = vrot.slane %v4207_v5, 2 }
 0x108   : > { %v682_v2 = vpop.f32.mrf.mxu1 }
 0x109   : > { %v1225_v18 = vadd.f32 %v1149_v43, %v1038_v49  ;;  %v683_v25 = vadd.f32 %v682_v2, %v3567_v63  ;;  %v2882_v43 = vld [vmem:[%s4119_s1 + $0x148] sm:$0xff]  ;;  %v810_v37 = vsel %vm752_vm1, %v808_v55, %v809_v56 }
 0x10a   : > { %v1349_v46 = vpop.f32.mrf.mxu0  ;;  %v2906_v2 = vld [vmem:[%s4119_s1 + $0x208] sm:$0xff]  ;;  %1530 = vmatpush.bf16.msra.mxu1 %v2882_v43 }
 0x10b   : > { %721 = vmatmul.bf16.gmra.mxu1 %v3668_v57  ;;  %1004 = vmatmul.bf16.gmra.mxu2 %v3685_v62  ;;  %v3694_v10 = vadd.f32 %v1346_v38, %v1225_v18  ;;  %v4209_v38 = vld [vmem:[#allocation19_spill] sm:$0xff] }
 0x10c   : > { %1191 = vmatmul.bf16.gmra.mxu3 %v3689_v33  ;;  %v811_v26 = vrot.slane %v4209_v38, 2  ;;  %2108 = vmatpush.bf16.msra.mxu0 %v2906_v2 }
 0x10d   : > { %4208 = vst [vmem:[#allocation17_spill] sm:$0xff] %v3694_v10  ;;  %1388 = vmatmul.bf16.gmra.mxu0 %v3391_v19  ;;  %v4217_v10 = vld [vmem:[#allocation7_spill] sm:$0xff] }
 0x10e   : > { %v965_v63 = vpop.f32.mrf.mxu2  ;;  %v812_v5 = vsel %vm752_vm1, %v809_v56, %v811_v26  ;;  %v4214_v56 = vld [vmem:[#allocation6_spill] sm:$0xff] }
 0x10f   : > { %v1039_v1 = vadd.f32 %v965_v63, %v683_v25  ;;  %v1152_v54 = vpop.f32.mrf.mxu3  ;;  %v3718_v12 = vpack.c.bf16 %v812_v5, %v810_v37  ;;  %v2948_v37 = vld [vmem:[%s3011_s30 + $0x120] sm:$0xff] }
 0x110   : > { %v684_v14 = vpop.f32.mrf.mxu1  ;;  %v813_v5 = vrot.slane %v2948_v37, 2 }
 0x111   : > { %v1226_v48 = vadd.f32 %v1152_v54, %v1039_v1  ;;  %v685_v34 = vadd.f32 %v684_v14, %v3588_v24  ;;  %v4211_v1 = vld [vmem:[#allocation2_spill] sm:$0xff]  ;;  %v4212_v54 = vld [vmem:[#allocation3_spill] sm:$0xff] }
 0x112   : > { %v1351_v49 = vpop.f32.mrf.mxu0  ;;  %v3722_v14 = vpack.c.bf16 %v4212_v54, %v4211_v1 }
 0x113   : > { %v3714_v18 = vadd.f32 %v1349_v46, %v1226_v48 }
 0x115   : > { %4210 = vst [vmem:[#allocation18_spill] sm:$0xff] %v3714_v18 }
 0x116   : > { %v967_v25 = vpop.f32.mrf.mxu2 }
 0x117   : > { %v1040_v7 = vadd.f32 %v967_v25, %v685_v34  ;;  %v1154_v24 = vpop.f32.mrf.mxu3  ;;  %v814_v25 = vrot.slane %v4212_v54, 2  ;;  %v4218_v54 = vld [vmem:[#allocation8_spill] sm:$0xff] }
 0x118   : > { %v687_v63 = vpop.f32.mrf.mxu1  ;;  %v3743_v58 = vpack.c.bf16 %v4218_v54, %v4217_v10 }
 0x119   : > { %v1227_v38 = vadd.f32 %v1154_v24, %v1040_v7  ;;  %v688_v43 = vadd.f32 %v687_v63, %v3610_v13  ;;  %v4215_v13 = vld [vmem:[#allocation4_spill] sm:$0xff] }
 0x11a   : > { %v1354_v46 = vpop.f32.mrf.mxu0  ;;  %v816_v7 = vrot.slane %v4215_v13, 2 }
 0x11b   : > { %726 = vmatmul.bf16.gmra.mxu1 %v3689_v33  ;;  %1009 = vmatmul.bf16.gmra.mxu2 %v3718_v12  ;;  %v3727_v55 = vadd.f32 %v1351_v49, %v1227_v38  ;;  %v815_v38 = vsel %vm752_vm1, %v813_v5, %v814_v25 }
 0x11c   : > { %1196 = vmatmul.bf16.gmra.mxu3 %v3722_v14 }
 0x11d   : > { %4213 = vst [vmem:[#allocation19_spill] sm:$0xff] %v3727_v55  ;;  %1393 = vmatmul.bf16.gmra.mxu0 %v4214_v56  ;;  %v817_v55 = vsel %vm752_vm1, %v814_v25, %v816_v7 }
 0x11e   : > { %v970_v26 = vpop.f32.mrf.mxu2  ;;  %v3739_v56 = vpack.c.bf16 %v817_v55, %v815_v38  ;;  %v2897_v55 = vld [vmem:[%s4119_s1 + $0x1c0] sm:$0xff] }
 0x11f   : > { %v1041_v48 = vadd.f32 %v970_v26, %v688_v43  ;;  %v1157_v34 = vpop.f32.mrf.mxu3  ;;  %1915 = vmatpush.bf16.msra.mxu3 %v2897_v55 }
 0x120   : > { %v689_v2 = vpop.f32.mrf.mxu1 }
 0x121   : > { %v1228_v24 = vadd.f32 %v1157_v34, %v1041_v48  ;;  %v690_v63 = vadd.f32 %v689_v2, %v3625_v36 }
 0x122   : > { %v1356_v1 = vpop.f32.mrf.mxu0 }
 0x123   : > { %v3735_v49 = vadd.f32 %v1354_v46, %v1228_v24  ;;  %v4220_v46 = vld [vmem:[#allocation11_spill] sm:$0xff]  ;;  %v818_v24 = vrot.slane %v4217_v10, 2 }
 0x125   : > { %4216 = vst [vmem:[#allocation2_spill] sm:$0xff] %v3735_v49 }
 0x126   : > { %v972_v18 = vpop.f32.mrf.mxu2 }
 0x127   : > { %v1042_v43 = vadd.f32 %v972_v18, %v690_v63  ;;  %v1159_v26 = vpop.f32.mrf.mxu3  ;;  %v2889_v18 = vld [vmem:[%s4119_s1 + $0x180] sm:$0xff]  ;;  %v819_v63 = vrot.slane %v4218_v54, 2 }
 0x128   : > { %v692_v37 = vpop.f32.mrf.mxu1  ;;  %1718 = vmatpush.bf16.msra.mxu2 %v2889_v18 }
 0x129   : > { %v1229_v48 = vadd.f32 %v1159_v26, %v1042_v43  ;;  %v693_v2 = vadd.f32 %v692_v37, %v3487_v15  ;;  %v2905_v15 = vld [vmem:[%s4119_s1 + $0x200] sm:$0xff]  ;;  %v820_v10 = vsel %vm752_vm1, %v818_v24, %v819_v63 }
 0x12a   : > { %v1359_v34 = vpop.f32.mrf.mxu0  ;;  %2109 = vmatpush.bf16.msra.mxu0 %v2905_v15 }
 0x12b   : > { %731 = vmatmul.bf16.gmra.mxu1 %v3722_v14  ;;  %1014 = vmatmul.bf16.gmra.mxu2 %v3739_v56  ;;  %v3747_v36 = vadd.f32 %v1356_v1, %v1229_v48  ;;  %v4221_v1 = vld [vmem:[#allocation9_spill] sm:$0xff]  ;;  %v2881_v48 = vld [vmem:[%s4119_s1 + $0x140] sm:$0xff] }
 0x12c   : > { %1201 = vmatmul.bf16.gmra.mxu3 %v3743_v58  ;;  %v821_v38 = vrot.slane %v4221_v1, 2  ;;  %1531 = vmatpush.bf16.msra.mxu1 %v2881_v48  ;;  %v4223_v1 = vld [vmem:[#allocation12_spill] sm:$0xff] }
 0x12d   : > { %4219 = vst [vmem:[#allocation3_spill] sm:$0xff] %v3747_v36  ;;  %1398 = vmatmul.bf16.gmra.mxu0 %v4220_v46  ;;  %v4224_v36 = vld [vmem:[#allocation13_spill] sm:$0xff] }
 0x12e   : > { %v975_v5 = vpop.f32.mrf.mxu2  ;;  %v822_v54 = vsel %vm752_vm1, %v819_v63, %v821_v38  ;;  %v3776_v49 = vpack.c.bf16 %v4224_v36, %v4223_v1 }
 0x12f   : > { %v1043_v25 = vadd.f32 %v975_v5, %v693_v2  ;;  %v1162_v13 = vpop.f32.mrf.mxu3 }
 0x130   : > { %v694_v7 = vpop.f32.mrf.mxu1  ;;  %4225 = vst [vmem:[#allocation7_spill] sm:$0xff] %v3776_v49 }
 0x131   : > { %v1230_v43 = vadd.f32 %v1162_v13, %v1043_v25  ;;  %v695_v18 = vadd.f32 %v694_v7, %v3512_v29  ;;  %v3772_v25 = vpack.c.bf16 %v822_v54, %v820_v10  ;;  %v4227_v29 = vld [vmem:[#allocation16_spill] sm:$0xff]  ;;  %v823_v10 = vrot.slane %v4223_v1, 2 }
 0x132   : > { %v1361_v26 = vpop.f32.mrf.mxu0  ;;  %v824_v54 = vrot.slane %v4224_v36, 2 }
 0x133   : > { %v3767_v37 = vadd.f32 %v1359_v34, %v1230_v43 }
 0x135   : > { %4222 = vst [vmem:[#allocation4_spill] sm:$0xff] %v3767_v37 }
 0x136   : > { %v977_v55 = vpop.f32.mrf.mxu2 }
 0x137   : > { %v1044_v2 = vadd.f32 %v977_v55, %v695_v18  ;;  %v1164_v5 = vpop.f32.mrf.mxu3  ;;  %v4228_v18 = vld [vmem:[#allocation14_spill] sm:$0xff] }
 0x138   : > { %v697_v13 = vpop.f32.mrf.mxu1  ;;  %v826_v55 = vrot.slane %v4228_v18, 2  ;;  %v4231_v18 = vld [vmem:[#allocation20_spill] sm:$0xff] }
 0x139   : > { %v1231_v48 = vadd.f32 %v1164_v5, %v1044_v2  ;;  %v698_v7 = vadd.f32 %v697_v13, %v3530_v51 }
 0x13a   : > { %v1364_v15 = vpop.f32.mrf.mxu0 }
 0x13b   : > { %736 = vmatmul.bf16.gmra.mxu1 %v3743_v58  ;;  %1019 = vmatmul.bf16.gmra.mxu2 %v3772_v25  ;;  %v3780_v34 = vadd.f32 %v1361_v26, %v1231_v48  ;;  %v825_v48 = vsel %vm752_vm1, %v823_v10, %v824_v54  ;;  %v3807_v10 = vld [vmem:[%s3011_s30 + $0x180] sm:$0xff] }
 0x13c   : > { %1206 = vmatmul.bf16.gmra.mxu3 %v3776_v49 }
 0x13d   : > { %4226 = vst [vmem:[#allocation8_spill] sm:$0xff] %v3780_v34  ;;  %1403 = vmatmul.bf16.gmra.mxu0 %v4227_v29  ;;  %v827_v34 = vsel %vm752_vm1, %v824_v54, %v826_v55  ;;  %v3810_v54 = vld [vmem:[%s3011_s30 + $0x188] sm:$0xff]  ;;  %v3813_v55 = vld [vmem:[%s3011_s30 + $0x190] sm:$0x3] }
 0x13e   : > { %v980_v24 = vpop.f32.mrf.mxu2 }
 0x13f   : > { %v1045_v63 = vadd.f32 %v980_v24, %v698_v7  ;;  %v1167_v38 = vpop.f32.mrf.mxu3  ;;  %v3793_v24 = vpack.c.bf16 %v827_v34, %v825_v48 }
 0x140   : > { %v699_v43 = vpop.f32.mrf.mxu1 }
 0x141   : > { %v1232_v2 = vadd.f32 %v1167_v38, %v1045_v63  ;;  %v700_v51 = vadd.f32 %v699_v43, %v3546_v11  ;;  %4230 = vst [vmem:[#allocation9_spill] sm:$0xff] %v3793_v24  ;;  %v4232_v63 = vld [vmem:[#allocation21_spill] sm:$0xff] }
 0x142   : > { %v1366_v5 = vpop.f32.mrf.mxu0  ;;  %v3797_v38 = vpack.c.bf16 %v4232_v63, %v4231_v18 }
 0x143   : > { %v3788_v26 = vadd.f32 %v1364_v15, %v1232_v2 }
 0x145   : > { %4229 = vst [vmem:[#allocation11_spill] sm:$0xff] %v3788_v26 }
 0x146   : > { %v982_v13 = vpop.f32.mrf.mxu2 }
 0x147   : > { %v1046_v7 = vadd.f32 %v982_v13, %v700_v51  ;;  %v1169_v1 = vpop.f32.mrf.mxu3 }
 0x148   : > { %v702_v36 = vpop.f32.mrf.mxu1 }
 0x149   : > { %v1233_v15 = vadd.f32 %v1169_v1, %v1046_v7  ;;  %v703_v34 = vadd.f32 %v702_v36, %v3561_v60  ;;  %v828_v7 = vrot.slane %v4231_v18, 2  ;;  %v4234_v1 = vld [vmem:[#allocation22_spill] sm:$0xff]  ;;  %v1257_v60 = vrot.slane %v3807_v10, 1 }
 0x14a   : > { %v1369_v2 = vpop.f32.mrf.mxu0  ;;  %v1258_v36 = vrot.slane %v3810_v54, 1 }
 0x14b   : > { %741 = vmatmul.bf16.gmra.mxu1 %v3776_v49  ;;  %1024 = vmatmul.bf16.gmra.mxu2 %v3793_v24  ;;  %v3801_v11 = vadd.f32 %v1366_v5, %v1233_v15  ;;  %v829_v5 = vrot.slane %v4232_v63, 2  ;;  %v831_v15 = vrot.slane %v4234_v1, 2 }
 0x14c   : > { %1211 = vmatmul.bf16.gmra.mxu3 %v3797_v38  ;;  %v1259_v63 = vsel %vm332_vm0, %v1257_v60, %v1258_v36 }
 0x14d   : > { %4233 = vst [vmem:[#allocation12_spill] sm:$0xff] %v3801_v11  ;;  %1408 = vmatmul.bf16.gmra.mxu0 %v3393_v39  ;;  %v1260_v39 = vrot.slane %v3813_v55, 1 }
 0x14e   : > { %v985_v43 = vpop.f32.mrf.mxu2 }
 0x14f   : > { %v1047_v48 = vadd.f32 %v985_v43, %v703_v34  ;;  %v1172_v51 = vpop.f32.mrf.mxu3  ;;  %v830_v34 = vsel %vm752_vm1, %v828_v7, %v829_v5  ;;  %v832_v43 = vsel %vm752_vm1, %v829_v5, %v831_v15  ;;  %v1261_v1 = vsel %vm332_vm0, %v1258_v36, %v1260_v39 }
 0x150   : > { %v704_v13 = vpop.f32.mrf.mxu1  ;;  %v3828_v29 = vpack.c.bf16 %v832_v43, %v830_v34 }
 0x151   : > { %v1234_v11 = vadd.f32 %v1172_v51, %v1047_v48  ;;  %v705_v18 = vadd.f32 %v704_v13, %v3583_v22 }
 0x152   : > { %v1371_v26 = vpop.f32.mrf.mxu0 }
 0x153   : > { %v3821_v37 = vadd.f32 %v1369_v2, %v1234_v11  ;;  %v3832_v2 = vpack.c.bf16 %v3810_v54, %v3807_v10  ;;  %v3834_v11 = vpack.c.bf16 %v1261_v1, %v1259_v63 }
 0x156   : > { %v987_v48 = vpop.f32.mrf.mxu2 }
 0x157   : > { %v1048_v51 = vadd.f32 %v987_v48, %v705_v18  ;;  %v1174_v24 = vpop.f32.mrf.mxu3 }
 0x158   : > { %v707_v49 = vpop.f32.mrf.mxu1 }
 0x159   : > { %v1235_v7 = vadd.f32 %v1174_v24, %v1048_v51  ;;  %v708_v39 = vadd.f32 %v707_v49, %v3604_v40 }
 0x15a   : > { %v1374_v5 = vpop.f32.mrf.mxu0 }
 0x15b   : > { %746 = vmatmul.bf16.gmra.mxu1 %v3797_v38  ;;  %1029 = vmatmul.bf16.gmra.mxu2 %v3828_v29  ;;  %v3838_v22 = vadd.f32 %v1371_v26, %v1235_v7 }
 0x15c   : > { %1216 = vmatmul.bf16.gmra.mxu3 %v3832_v2 }
 0x15d   : > { %1413 = vmatmul.bf16.gmra.mxu0 %v3834_v11 }
 0x15e   : > { %v990_v13 = vpop.f32.mrf.mxu2 }
 0x15f   : > { %v1049_v15 = vadd.f32 %v990_v13, %v708_v39  ;;  %v1177_v60 = vpop.f32.mrf.mxu3 }
 0x160   : > { %v709_v36 = vpop.f32.mrf.mxu1 }
 0x161   : > { %v1236_v34 = vadd.f32 %v1177_v60, %v1049_v15  ;;  %v710_v18 = vadd.f32 %v709_v36, %v3620_v4 }
 0x162   : > { %v1376_v43 = vpop.f32.mrf.mxu0 }
 0x163   : > { %v3843_v24 = vadd.f32 %v1374_v5, %v1236_v34 }
 0x166   : > { %v992_v63 = vpop.f32.mrf.mxu2 }
 0x167   : > { %v1050_v1 = vadd.f32 %v992_v63, %v710_v18  ;;  %v1179_v26 = vpop.f32.mrf.mxu3 }
 0x168   : > { %v712_v48 = vpop.f32.mrf.mxu1 }
 0x169   : > { %v1237_v51 = vadd.f32 %v1179_v26, %v1050_v1  ;;  %v713_v49 = vadd.f32 %v712_v48, %v3505_v8 }
 0x16a   : > { %v1379_v7 = vpop.f32.mrf.mxu0 }
 0x16b   : > { %1532 = vmatmul.bf16.vlgmr.msra.gmra.mxu1 %v3429_v30  ;;  %1719 = vmatmul.bf16.vlgmr.msra.gmra.mxu2 %v3433_v31  ;;  %v3848_v40 = vadd.f32 %v1376_v43, %v1237_v51 }
 0x16c   : > { %1916 = vmatmul.bf16.vlgmr.msra.gmra.mxu3 %v3315_v35 }
 0x16d   : > { %2110 = vmatmul.bf16.vlgmr.msra.gmra.mxu0 %v3443_v41 }
 0x16e   : > { %v995_v5 = vpop.f32.mrf.mxu2 }
 0x16f   : > { %v1051_v4 = vadd.f32 %v995_v5, %v713_v49  ;;  %v1182_v39 = vpop.f32.mrf.mxu3 }
 0x170   : > { %v714_v13 = vpop.f32.mrf.mxu1 }
 0x171   : > { %v1238_v15 = vadd.f32 %v1182_v39, %v1051_v4  ;;  %v715_v30 = vadd.f32 %v714_v13, %v3524_v27 }
 0x172   : > { %v1381_v60 = vpop.f32.mrf.mxu0 }
 0x173   : > { %v3853_v36 = vadd.f32 %v1379_v7, %v1238_v15 }
 0x176   : > { %v997_v34 = vpop.f32.mrf.mxu2 }
 0x177   : > { %v1052_v31 = vadd.f32 %v997_v34, %v715_v30  ;;  %v1184_v43 = vpop.f32.mrf.mxu3 }
 0x178   : > { %v717_v18 = vpop.f32.mrf.mxu1 }
 0x179   : > { %v1239_v63 = vadd.f32 %v1184_v43, %v1052_v31  ;;  %v718_v1 = vadd.f32 %v717_v18, %v3542_v44 }
 0x17a   : > { %v1384_v35 = vpop.f32.mrf.mxu0 }
 0x17b   : > { %1537 = vmatmul.bf16.gmra.mxu1 %v3443_v41  ;;  %1724 = vmatmul.bf16.gmra.mxu2 %v3447_v3  ;;  %v3858_v8 = vadd.f32 %v1381_v60, %v1239_v63 }
 0x17c   : > { %1921 = vmatmul.bf16.gmra.mxu3 %v3395_v28 }
 0x17d   : > { %2115 = vmatmul.bf16.gmra.mxu0 %v3470_v59 }
 0x17e   : > { %v1000_v26 = vpop.f32.mrf.mxu2 }
 0x17f   : > { %v1053_v27 = vadd.f32 %v1000_v26, %v718_v1  ;;  %v1187_v48 = vpop.f32.mrf.mxu3 }
 0x180   : > { %v719_v51 = vpop.f32.mrf.mxu1 }
 0x181   : > { %v1240_v7 = vadd.f32 %v1187_v48, %v1053_v27  ;;  %v720_v41 = vadd.f32 %v719_v51, %v3555_v6 }
 0x182   : > { %v1386_v49 = vpop.f32.mrf.mxu0 }
 0x183   : > { %v3863_v5 = vadd.f32 %v1384_v35, %v1240_v7 }
 0x186   : > { %v1002_v4 = vpop.f32.mrf.mxu2 }
 0x187   : > { %v1054_v3 = vadd.f32 %v1002_v4, %v720_v41  ;;  %v1189_v39 = vpop.f32.mrf.mxu3 }
 0x188   : > { %v722_v13 = vpop.f32.mrf.mxu1 }
 0x189   : > { %v1241_v15 = vadd.f32 %v1189_v39, %v1054_v3  ;;  %v723_v60 = vadd.f32 %v722_v13, %v3579_v0 }
 0x18a   : > { %v1389_v28 = vpop.f32.mrf.mxu0 }
 0x18b   : > { %1542 = vmatmul.bf16.gmra.mxu1 %v3470_v59  ;;  %1729 = vmatmul.bf16.gmra.mxu2 %v3474_v47  ;;  %v3868_v44 = vadd.f32 %v1386_v49, %v1241_v15 }
 0x18c   : > { %1926 = vmatmul.bf16.gmra.mxu3 %v3084_v42 }
 0x18d   : > { %2120 = vmatmul.bf16.gmra.mxu0 %v3485_v21 }
 0x18e   : > { %v1005_v30 = vpop.f32.mrf.mxu2 }
 0x18f   : > { %v1055_v6 = vadd.f32 %v1005_v30, %v723_v60  ;;  %v1192_v34 = vpop.f32.mrf.mxu3  ;;  %v4235_v60 = vld [vmem:[#allocation25_spill] sm:$0xff] }
 0x190   : > { %v724_v31 = vpop.f32.mrf.mxu1 }
 0x191   : > { %v1242_v43 = vadd.f32 %v1192_v34, %v1055_v6  ;;  %v725_v59 = vadd.f32 %v724_v31, %v3598_v61 }
 0x192   : > { %v1391_v18 = vpop.f32.mrf.mxu0 }
 0x193   : > { %v3873_v63 = vadd.f32 %v1389_v28, %v1242_v43 }
 0x196   : > { %v1007_v35 = vpop.f32.mrf.mxu2 }
 0x197   : > { %v1056_v47 = vadd.f32 %v1007_v35, %v725_v59  ;;  %v1194_v1 = vpop.f32.mrf.mxu3  ;;  %v4236_v35 = vld [vmem:[#allocation26_spill] sm:$0xff] }
 0x198   : > { %v727_v26 = vpop.f32.mrf.mxu1 }
 0x199   : > { %v1243_v27 = vadd.f32 %v1194_v1, %v1056_v47  ;;  %v728_v48 = vadd.f32 %v727_v26, %v3616_v23 }
 0x19a   : > { %v1394_v42 = vpop.f32.mrf.mxu0 }
 0x19b   : > { %1547 = vmatmul.bf16.gmra.mxu1 %v3485_v21  ;;  %1734 = vmatmul.bf16.gmra.mxu2 %v3491_v16  ;;  %v3878_v0 = vadd.f32 %v1391_v18, %v1243_v27 }
 0x19c   : > { %1931 = vmatmul.bf16.gmra.mxu3 %v3197_v45 }
 0x19d   : > { %2125 = vmatmul.bf16.gmra.mxu0 %v3528_v50 }
 0x19e   : > { %v1010_v51 = vpop.f32.mrf.mxu2 }
 0x19f   : > { %v1057_v61 = vadd.f32 %v1010_v51, %v728_v48  ;;  %v1197_v7 = vpop.f32.mrf.mxu3  ;;  %v4238_v51 = vld [vmem:[#allocation23_spill] sm:$0xff] }
 0x1a0   : > { %v729_v49 = vpop.f32.mrf.mxu1 }
 0x1a1   : > { %v1244_v41 = vadd.f32 %v1197_v7, %v1057_v61  ;;  %v730_v21 = vadd.f32 %v729_v49, %v3629_v20  ;;  %v4239_v61 = vld [vmem:[#allocation32_spill] sm:$0xff]  ;;  %v4240_v7 = vld [vmem:[#allocation27_spill] sm:$0xff] }
 0x1a2   : > { %v1396_v4 = vpop.f32.mrf.mxu0 }
 0x1a3   : > { %v3883_v3 = vadd.f32 %v1394_v42, %v1244_v41  ;;  %v4237_v42 = vld [vmem:[#allocation29_spill] sm:$0xff] }
 0x1a6   : > { %v1012_v39 = vpop.f32.mrf.mxu2 }
 0x1a7   : > { %v1058_v16 = vadd.f32 %v1012_v39, %v730_v21  ;;  %v1199_v13 = vpop.f32.mrf.mxu3 }
 0x1a8   : > { %v732_v15 = vpop.f32.mrf.mxu1 }
 0x1a9   : > { %v1245_v28 = vadd.f32 %v1199_v13, %v1058_v16  ;;  %v733_v30 = vadd.f32 %v732_v15, %v4235_v60 }
 0x1aa   : > { %v1399_v45 = vpop.f32.mrf.mxu0 }
 0x1ab   : > { %1552 = vmatmul.bf16.gmra.mxu1 %v3528_v50  ;;  %1739 = vmatmul.bf16.gmra.mxu2 %v3534_v52  ;;  %v3888_v23 = vadd.f32 %v1396_v4, %v1245_v28  ;;  %v4241_v28 = vld [vmem:[#allocation28_spill] sm:$0xff] }
 0x1ac   : > { %1936 = vmatmul.bf16.gmra.mxu3 %v3309_v32 }
 0x1ad   : > { %2130 = vmatmul.bf16.gmra.mxu0 %v3559_v53 }
 0x1ae   : > { %v1015_v6 = vpop.f32.mrf.mxu2 }
 0x1af   : > { %v1059_v20 = vadd.f32 %v1015_v6, %v733_v30  ;;  %v1202_v34 = vpop.f32.mrf.mxu3 }
 0x1b0   : > { %v734_v31 = vpop.f32.mrf.mxu1 }
 0x1b1   : > { %v1246_v43 = vadd.f32 %v1202_v34, %v1059_v20  ;;  %v735_v50 = vadd.f32 %v734_v31, %v4236_v35  ;;  %v4242_v31 = vld [vmem:[#allocation33_spill] sm:$0xff]  ;;  %v4244_v35 = vld [vmem:[#allocation36_spill] sm:$0xff] }
 0x1b2   : > { %v1401_v18 = vpop.f32.mrf.mxu0 }
 0x1b3   : > { %v3893_v59 = vadd.f32 %v1399_v45, %v1246_v43 }
 0x1b6   : > { %v1017_v47 = vpop.f32.mrf.mxu2 }
 0x1b7   : > { %v1060_v52 = vadd.f32 %v1017_v47, %v735_v50  ;;  %v1204_v1 = vpop.f32.mrf.mxu3  ;;  %v4245_v50 = vld [vmem:[#allocation30_spill] sm:$0xff] }
 0x1b8   : > { %v737_v26 = vpop.f32.mrf.mxu1 }
 0x1b9   : > { %v1247_v27 = vadd.f32 %v1204_v1, %v1060_v52  ;;  %v738_v49 = vadd.f32 %v737_v26, %v4240_v7  ;;  %v4246_v7 = vld [vmem:[#allocation31_spill] sm:$0xff] }
 0x1ba   : > { %v1404_v32 = vpop.f32.mrf.mxu0 }
 0x1bb   : > { %1557 = vmatmul.bf16.gmra.mxu1 %v3559_v53  ;;  %1744 = vmatmul.bf16.gmra.mxu2 %v4237_v42  ;;  %v3898_v48 = vadd.f32 %v1401_v18, %v1247_v27  ;;  %v4243_v18 = vld [vmem:[#allocation5_spill] sm:$0xff] }
 0x1bc   : > { %1941 = vmatmul.bf16.gmra.mxu3 %v4238_v51 }
 0x1bd   : > { %2135 = vmatmul.bf16.gmra.mxu0 %v4239_v61 }
 0x1be   : > { %v1020_v41 = vpop.f32.mrf.mxu2 }
 0x1bf   : > { %v1061_v4 = vadd.f32 %v1020_v41, %v738_v49  ;;  %v1207_v21 = vpop.f32.mrf.mxu3 }
 0x1c0   : > { %v739_v39 = vpop.f32.mrf.mxu1 }
 0x1c1   : > { %v1248_v16 = vadd.f32 %v1207_v21, %v1061_v4  ;;  %v740_v53 = vadd.f32 %v739_v39, %v4241_v28  ;;  %v4247_v28 = vld [vmem:[#allocation10_spill] sm:$0xff] }
 0x1c2   : > { %v1406_v13 = vpop.f32.mrf.mxu0 }
 0x1c3   : > { %v3903_v15 = vadd.f32 %v1404_v32, %v1248_v16 }
 0x1c6   : > { %v1022_v45 = vpop.f32.mrf.mxu2 }
 0x1c7   : > { %v1062_v60 = vadd.f32 %v1022_v45, %v740_v53  ;;  %v1209_v30 = vpop.f32.mrf.mxu3  ;;  %v4248_v53 = vld [vmem:[#allocation34_spill] sm:$0xff] }
 0x1c8   : > { %v742_v6 = vpop.f32.mrf.mxu1 }
 0x1c9   : > { %v1249_v20 = vadd.f32 %v1209_v30, %v1062_v60  ;;  %v743_v47 = vadd.f32 %v742_v6, %v4245_v50  ;;  %v4249_v50 = vld [vmem:[#allocation35_spill] sm:$0xff] }
 0x1ca   : > { %v1409_v34 = vpop.f32.mrf.mxu0 }
 0x1cb   : > { %1562 = vmatmul.bf16.gmra.mxu1 %v4239_v61  ;;  %1749 = vmatmul.bf16.gmra.mxu2 %v4242_v31  ;;  %v3908_v43 = vadd.f32 %v1406_v13, %v1249_v20 }
 0x1cc   : > { %1946 = vmatmul.bf16.gmra.mxu3 %v4243_v18 }
 0x1cd   : > { %2140 = vmatmul.bf16.gmra.mxu0 %v4244_v35 }
 0x1ce   : > { %v1025_v52 = vpop.f32.mrf.mxu2 }
 0x1cf   : > { %v1063_v1 = vadd.f32 %v1025_v52, %v743_v47  ;;  %v1212_v26 = vpop.f32.mrf.mxu3 }
 0x1d0   : > { %v744_v27 = vpop.f32.mrf.mxu1 }
 0x1d1   : > { %v1250_v32 = vadd.f32 %v1212_v26, %v1063_v1  ;;  %v745_v61 = vadd.f32 %v744_v27, %v4246_v7  ;;  %v4251_v7 = vld [vmem:[#allocation37_spill] sm:$0xff] }
 0x1d2   : > { %v1411_v42 = vpop.f32.mrf.mxu0 }
 0x1d3   : > { %v3913_v51 = vadd.f32 %v1409_v34, %v1250_v32 }
 0x1d6   : > { %v1027_v49 = vpop.f32.mrf.mxu2 }
 0x1d7   : > { %v1064_v41 = vadd.f32 %v1027_v49, %v745_v61  ;;  %v1214_v4 = vpop.f32.mrf.mxu3 }
 0x1d8   : > { %v747_v21 = vpop.f32.mrf.mxu1 }
 0x1d9   : > { %v1251_v39 = vadd.f32 %v1214_v4, %v1064_v41  ;;  %v748_v45 = vadd.f32 %v747_v21, %v4248_v53 }
 0x1da   : > { %v1414_v16 = vpop.f32.mrf.mxu0 }
 0x1db   : > { %1567 = vmatmul.bf16.gmra.mxu1 %v4244_v35  ;;  %1754 = vmatmul.bf16.gmra.mxu2 %v3637_v9  ;;  %v3918_v13 = vadd.f32 %v1411_v42, %v1251_v39  ;;  %v4250_v42 = vld [vmem:[#allocation15_spill] sm:$0xff] }
 0x1dc   : > { %1951 = vmatmul.bf16.gmra.mxu3 %v4247_v28  ;;  %v3941_v28 = vld [vmem:[%s4121_s3] ss:$0 sm:$0xff] }
 0x1dd   : > { %2145 = vmatmul.bf16.gmra.mxu0 %v3664_v17 }
 0x1de   : > { %v1030_v60 = vpop.f32.mrf.mxu2 }
 0x1df   : > { %v1065_v30 = vadd.f32 %v1030_v60, %v748_v45  ;;  %v1217_v6 = vpop.f32.mrf.mxu3  ;;  %v4252_v45 = vld [vmem:[#allocation38_spill] sm:$0xff] }
 0x1e0   : > { %v749_v20 = vpop.f32.mrf.mxu1 }
 0x1e1   : > { %v1252_v34 = vadd.f32 %v1217_v6, %v1065_v30  ;;  %v750_v35 = vadd.f32 %v749_v20, %v4249_v50 }
 0x1e2   : > { %v1416_v31 = vpop.f32.mrf.mxu0 }
 0x1e3   : > { %v3923_v18 = vadd.f32 %v1414_v16, %v1252_v34  ;;  %v3936_v16 = vld [vmem:[%s4120_s2] ss:$0 sm:$0xff] }
 0x1e6   : > { %v1032_v47 = vpop.f32.mrf.mxu2 }
 0x1e7   : > { %v1066_v9 = vadd.f32 %v1032_v47, %v750_v35  ;;  %v1219_v52 = vpop.f32.mrf.mxu3 }
 0x1e8   : > { %v1533_v1 = vpop.f32.mrf.mxu1 }
 0x1e9   : > { %v1253_v26 = vadd.f32 %v1219_v52, %v1066_v9  ;;  %v1613_v61 = vadd.f32 %v1533_v1, %v4251_v7  ;;  %v4253_v1 = vld [vmem:[#allocation39_spill] sm:$0xff] }
 0x1ea   : > { %v2111_v27 = vpop.f32.mrf.mxu0 }
 0x1eb   : > { %1572 = vmatmul.bf16.gmra.mxu1 %v3664_v17  ;;  %1759 = vmatmul.bf16.gmra.mxu2 %v3668_v57  ;;  %v3928_v32 = vadd.f32 %v1416_v31, %v1253_v26 }
 0x1ec   : > { %1956 = vmatmul.bf16.gmra.mxu3 %v4250_v42 }
 0x1ed   : > { %2150 = vmatmul.bf16.gmra.mxu0 %v3685_v62 }
 0x1ee   : > { %v1720_v49 = vpop.f32.mrf.mxu2 }
 0x1ef   : > { %v1800_v41 = vadd.f32 %v1720_v49, %v1613_v61  ;;  %v1917_v4 = vpop.f32.mrf.mxu3 }
 0x1f0   : > { %v1535_v21 = vpop.f32.mrf.mxu1 }
 0x1f1   : > { %v1997_v39 = vadd.f32 %v1917_v4, %v1800_v41  ;;  %v1614_v60 = vadd.f32 %v1535_v21, %v4252_v45  ;;  %v4254_v21 = vld [vmem:[#allocation17_spill] sm:$0xff] }
 0x1f2   : > { %v2113_v17 = vpop.f32.mrf.mxu0 }
 0x1f3   : > { %v2191_v57 = vadd.f32 %v2111_v27, %v1997_v39 }
 0x1f5   : > { %v2227_v53 = vmul.f32 %v3936_v16, %v2191_v57 }
 0x1f6   : > { %v1722_v30 = vpop.f32.mrf.mxu2 }
 0x1f7   : > { %v2263_v6 = vadd.f32 %v3941_v28, %v2227_v53  ;;  %v1801_v20 = vadd.f32 %v1722_v30, %v1614_v60  ;;  %v1919_v34 = vpop.f32.mrf.mxu3 }
 0x1f8   : > { %v1538_v31 = vpop.f32.mrf.mxu1 }
 0x1f9   : > { %v2295_v50 = vmax.f32 %v2263_v6, 0.0  ;;  %v1998_v35 = vadd.f32 %v1919_v34, %v1801_v20  ;;  %v1615_v26 = vadd.f32 %v1538_v31, %v4253_v1  ;;  %v4255_v31 = vld [vmem:[#allocation6_spill] sm:$0xff] }
 0x1fa   : > { %v2116_v47 = vpop.f32.mrf.mxu0 }
 0x1fb   : > { %2327 = vst [vmem:[%s3950_s8] sm:$0xff] %v2295_v50  ;;  %v2192_v9 = vadd.f32 %v2113_v17, %v1998_v35  ;;  %1577 = vmatmul.bf16.gmra.mxu1 %v3685_v62  ;;  %1764 = vmatmul.bf16.gmra.mxu2 %v3689_v33  ;;  %v4256_v35 = vld [vmem:[#allocation18_spill] sm:$0xff] }
 0x1fc   : > { %1961 = vmatmul.bf16.gmra.mxu3 %v3391_v19 }
 0x1fd   : > { %2155 = vmatmul.bf16.gmra.mxu0 %v3718_v12  ;;  %v2228_v52 = vmul.f32 %v3936_v16, %v2192_v9 }
 0x1fe   : > { %v1725_v27 = vpop.f32.mrf.mxu2 }
 0x1ff   : > { %v2264_v42 = vadd.f32 %v3941_v28, %v2228_v52  ;;  %v1802_v7 = vadd.f32 %v1725_v27, %v1615_v26  ;;  %v1922_v61 = vpop.f32.mrf.mxu3 }
 0x200   : > { %v1540_v49 = vpop.f32.mrf.mxu1 }
 0x201   : > { %v2296_v41 = vmax.f32 %v2264_v42, 0.0  ;;  %v1999_v4 = vadd.f32 %v1922_v61, %v1802_v7  ;;  %v1616_v39 = vadd.f32 %v1540_v49, %v4254_v21  ;;  %v4257_v49 = vld [vmem:[#allocation19_spill] sm:$0xff] }
 0x202   : > { %v2118_v62 = vpop.f32.mrf.mxu0 }
 0x203   : > { %2328 = vst [vmem:[%s3950_s8 + $0x8] sm:$0xff] %v2296_v41  ;;  %v2193_v33 = vadd.f32 %v2116_v47, %v1999_v4 }
 0x205   : > { %v2229_v19 = vmul.f32 %v3936_v16, %v2193_v33 }
 0x206   : > { %v1727_v17 = vpop.f32.mrf.mxu2 }
 0x207   : > { %v2265_v57 = vadd.f32 %v3941_v28, %v2229_v19  ;;  %v1803_v53 = vadd.f32 %v1727_v17, %v1616_v39  ;;  %v1924_v45 = vpop.f32.mrf.mxu3 }
 0x208   : > { %v1543_v60 = vpop.f32.mrf.mxu1 }
 0x209   : > { %v2297_v30 = vmax.f32 %v2265_v57, 0.0  ;;  %v2000_v6 = vadd.f32 %v1924_v45, %v1803_v53  ;;  %v1617_v47 = vadd.f32 %v1543_v60, %v4256_v35  ;;  %v4258_v60 = vld [vmem:[#allocation2_spill] sm:$0xff] }
 0x20a   : > { %v2121_v20 = vpop.f32.mrf.mxu0 }
 0x20b   : > { %2329 = vst [vmem:[%s3950_s8 + $0x10] sm:$0xff] %v2297_v30  ;;  %v2194_v34 = vadd.f32 %v2118_v62, %v2000_v6  ;;  %1582 = vmatmul.bf16.gmra.mxu1 %v3718_v12  ;;  %1769 = vmatmul.bf16.gmra.mxu2 %v3722_v14 }
 0x20c   : > { %1966 = vmatmul.bf16.gmra.mxu3 %v4255_v31 }
 0x20d   : > { %2160 = vmatmul.bf16.gmra.mxu0 %v3739_v56  ;;  %v2230_v50 = vmul.f32 %v3936_v16, %v2194_v34 }
 0x20e   : > { %v1730_v9 = vpop.f32.mrf.mxu2 }
 0x20f   : > { %v2266_v52 = vadd.f32 %v3941_v28, %v2230_v50  ;;  %v1804_v1 = vadd.f32 %v1730_v9, %v1617_v47  ;;  %v1927_v26 = vpop.f32.mrf.mxu3 }
 0x210   : > { %v1545_v27 = vpop.f32.mrf.mxu1 }
 0x211   : > { %v2298_v42 = vmax.f32 %v2266_v52, 0.0  ;;  %v2001_v7 = vadd.f32 %v1927_v26, %v1804_v1  ;;  %v1618_v41 = vadd.f32 %v1545_v27, %v4257_v49  ;;  %v1451_v26 = vrot.slane %v3807_v10, 2 }
 0x212   : > { %v2123_v12 = vpop.f32.mrf.mxu0  ;;  %v1452_v27 = vrot.slane %v3810_v54, 2 }
 0x213   : > { %2330 = vst [vmem:[%s3950_s8 + $0x18] sm:$0xff] %v2298_v42  ;;  %v2195_v14 = vadd.f32 %v2121_v20, %v2001_v7 }
 0x214   : > { %v1453_v10 = vsel %vm752_vm1, %v1451_v26, %v1452_v27 }
 0x215   : > { %v2231_v61 = vmul.f32 %v3936_v16, %v2195_v14 }
 0x216   : > { %v1732_v4 = vpop.f32.mrf.mxu2 }
 0x217   : > { %v2267_v62 = vadd.f32 %v3941_v28, %v2231_v61  ;;  %v1805_v33 = vadd.f32 %v1732_v4, %v1618_v41  ;;  %v1929_v19 = vpop.f32.mrf.mxu3  ;;  %v1454_v4 = vrot.slane %v3813_v55, 2  ;;  %v4263_v55 = vld [vmem:[#allocation4_spill] sm:$0xff] }
 0x218   : > { %v1548_v21 = vpop.f32.mrf.mxu1 }
 0x219   : > { %v2299_v39 = vmax.f32 %v2267_v62, 0.0  ;;  %v2002_v17 = vadd.f32 %v1929_v19, %v1805_v33  ;;  %v1619_v30 = vadd.f32 %v1548_v21, %v4258_v60  ;;  %v4260_v33 = vld [vmem:[#allocation7_spill] sm:$0xff]  ;;  %v1455_v54 = vsel %vm752_vm1, %v1452_v27, %v1454_v4  ;;  %v4261_v19 = vld [vmem:[#allocation16_spill] sm:$0xff]  ;;  %v4262_v21 = vld [vmem:[#allocation9_spill] sm:$0xff] }
 0x21a   : > { %v2126_v57 = vpop.f32.mrf.mxu0 }
 0x21b   : > { %2331 = vst [vmem:[%s3950_s8 + $0x20] sm:$0xff] %v2299_v39  ;;  %v2196_v53 = vadd.f32 %v2123_v12, %v2002_v17  ;;  %1587 = vmatmul.bf16.gmra.mxu1 %v3739_v56  ;;  %1774 = vmatmul.bf16.gmra.mxu2 %v3743_v58  ;;  %v3998_v39 = vpack.c.bf16 %v1455_v54, %v1453_v10 }
 0x21c   : > { %1971 = vmatmul.bf16.gmra.mxu3 %v4220_v46  ;;  %v4259_v46 = vld [vmem:[#allocation3_spill] sm:$0xff] }
 0x21d   : > { %2165 = vmatmul.bf16.gmra.mxu0 %v3772_v25  ;;  %v2232_v45 = vmul.f32 %v3936_v16, %v2196_v53 }
 0x21e   : > { %v1735_v6 = vpop.f32.mrf.mxu2 }
 0x21f   : > { %v2268_v20 = vadd.f32 %v3941_v28, %v2232_v45  ;;  %v1806_v34 = vadd.f32 %v1735_v6, %v1619_v30  ;;  %v1932_v31 = vpop.f32.mrf.mxu3 }
 0x220   : > { %v1550_v50 = vpop.f32.mrf.mxu1 }
 0x221   : > { %v2300_v35 = vmax.f32 %v2268_v20, 0.0  ;;  %v2003_v47 = vadd.f32 %v1932_v31, %v1806_v34  ;;  %v1620_v52 = vadd.f32 %v1550_v50, %v4259_v46 }
 0x222   : > { %v2128_v9 = vpop.f32.mrf.mxu0 }
 0x223   : > { %2332 = vst [vmem:[%s3950_s8 + $0x28] sm:$0xff] %v2300_v35  ;;  %v2197_v58 = vadd.f32 %v2126_v57, %v2003_v47  ;;  %v4264_v35 = vld [vmem:[#allocation8_spill] sm:$0xff] }
 0x225   : > { %v2233_v56 = vmul.f32 %v3936_v16, %v2197_v58 }
 0x226   : > { %v1737_v1 = vpop.f32.mrf.mxu2 }
 0x227   : > { %v2269_v42 = vadd.f32 %v3941_v28, %v2233_v56  ;;  %v1807_v7 = vadd.f32 %v1737_v1, %v1620_v52  ;;  %v1934_v12 = vpop.f32.mrf.mxu3 }
 0x228   : > { %v1553_v14 = vpop.f32.mrf.mxu1 }
 0x229   : > { %v2301_v61 = vmax.f32 %v2269_v42, 0.0  ;;  %v2004_v49 = vadd.f32 %v1934_v12, %v1807_v7  ;;  %v1621_v57 = vadd.f32 %v1553_v14, %v4263_v55  ;;  %v4265_v7 = vld [vmem:[#allocation24_spill] sm:$0xff]  ;;  %v4266_v14 = vld [vmem:[#allocation11_spill] sm:$0xff] }
 0x22a   : > { %v2131_v41 = vpop.f32.mrf.mxu0 }
 0x22b   : > { %2333 = vst [vmem:[%s3950_s8 + $0x30] sm:$0xff] %v2301_v61  ;;  %v2198_v62 = vadd.f32 %v2128_v9, %v2004_v49  ;;  %1592 = vmatmul.bf16.gmra.mxu1 %v3772_v25  ;;  %1779 = vmatmul.bf16.gmra.mxu2 %v4260_v33 }
 0x22c   : > { %1976 = vmatmul.bf16.gmra.mxu3 %v4261_v19 }
 0x22d   : > { %2170 = vmatmul.bf16.gmra.mxu0 %v4262_v21  ;;  %v2234_v17 = vmul.f32 %v3936_v16, %v2198_v62 }
 0x22e   : > { %v1740_v53 = vpop.f32.mrf.mxu2 }
 0x22f   : > { %v2270_v25 = vadd.f32 %v3941_v28, %v2234_v17  ;;  %v1808_v45 = vadd.f32 %v1740_v53, %v1621_v57  ;;  %v1937_v60 = vpop.f32.mrf.mxu3  ;;  %v4267_v17 = vld [vmem:[#allocation12_spill] sm:$0xff] }
 0x230   : > { %v1555_v30 = vpop.f32.mrf.mxu1 }
 0x231   : > { %v2302_v6 = vmax.f32 %v2270_v25, 0.0  ;;  %v2005_v20 = vadd.f32 %v1937_v60, %v1808_v45  ;;  %v1622_v47 = vadd.f32 %v1555_v30, %v4264_v35  ;;  %v249_v35 = vld [vmem:[%s3011_s30 + $0x198] sm:$0xff] }
 0x232   : > { %v2133_v34 = vpop.f32.mrf.mxu0 }
 0x233   : > { %2334 = vst [vmem:[%s3950_s8 + $0x38] sm:$0xff] %v2302_v6  ;;  %v2199_v31 = vadd.f32 %v2131_v41, %v2005_v20 }
 0x235   : > { %v2235_v50 = vmul.f32 %v3936_v16, %v2199_v31 }
 0x236   : > { %v1742_v9 = vpop.f32.mrf.mxu2 }
 0x237   : > { %v2271_v58 = vadd.f32 %v3941_v28, %v2235_v50  ;;  %v1809_v56 = vadd.f32 %v1742_v9, %v1622_v47  ;;  %v1939_v46 = vpop.f32.mrf.mxu3  ;;  %v250_v47 = vld [vmem:[%s3011_s30 + $0x1a0] sm:$0xff]  ;;  %v251_v9 = vld [vmem:[%s3011_s30 + $0x1a8] sm:$0x3] }
 0x238   : > { %v1558_v52 = vpop.f32.mrf.mxu1 }
 0x239   : > { %v2303_v1 = vmax.f32 %v2271_v58, 0.0  ;;  %v2006_v26 = vadd.f32 %v1939_v46, %v1809_v56  ;;  %v1623_v61 = vadd.f32 %v1558_v52, %v4266_v14  ;;  %v2032_v14 = vrot.slane %v251_v9, 2 }
 0x23a   : > { %v2136_v27 = vpop.f32.mrf.mxu0 }
 0x23b   : > { %2335 = vst [vmem:[%s3950_s8 + $0x40] sm:$0xff] %v2303_v1  ;;  %v2200_v42 = vadd.f32 %v2133_v34, %v2006_v26  ;;  %1597 = vmatmul.bf16.gmra.mxu1 %v4262_v21  ;;  %1784 = vmatmul.bf16.gmra.mxu2 %v3797_v38  ;;  %v1835_v1 = vrot.slane %v249_v35, 1  ;;  %v2029_v26 = vrot.slane %v249_v35, 2 }
 0x23c   : > { %1981 = vmatmul.bf16.gmra.mxu3 %v4265_v7 }
 0x23d   : > { %2175 = vmatmul.bf16.gmra.mxu0 %v3828_v29  ;;  %v2236_v12 = vmul.f32 %v3936_v16, %v2200_v42 }
 0x23e   : > { %v1745_v49 = vpop.f32.mrf.mxu2 }
 0x23f   : > { %v2272_v41 = vadd.f32 %v3941_v28, %v2236_v12  ;;  %v1810_v4 = vadd.f32 %v1745_v49, %v1623_v61  ;;  %v1942_v62 = vpop.f32.mrf.mxu3  ;;  %v2030_v12 = vrot.slane %v250_v47, 2 }
 0x240   : > { %v1560_v33 = vpop.f32.mrf.mxu1 }
 0x241   : > { %v2304_v10 = vmax.f32 %v2272_v41, 0.0  ;;  %v2007_v54 = vadd.f32 %v1942_v62, %v1810_v4  ;;  %v1624_v55 = vadd.f32 %v1560_v33, %v4267_v17  ;;  %v2031_v62 = vsel %vm752_vm1, %v2029_v26, %v2030_v12 }
 0x242   : > { %v2138_v19 = vpop.f32.mrf.mxu0  ;;  %v2033_v33 = vsel %vm752_vm1, %v2030_v12, %v2032_v14 }
 0x243   : > { %2336 = vst [vmem:[%s3950_s8 + $0x48] sm:$0xff] %v2304_v10  ;;  %v2201_v38 = vadd.f32 %v2136_v27, %v2007_v54 }
 0x245   : > { %v2237_v21 = vmul.f32 %v3936_v16, %v2201_v38 }
 0x246   : > { %v1747_v57 = vpop.f32.mrf.mxu2 }
 0x247   : > { %v2273_v53 = vadd.f32 %v3941_v28, %v2237_v21  ;;  %v1811_v25 = vadd.f32 %v1747_v57, %v1624_v55  ;;  %v1944_v45 = vpop.f32.mrf.mxu3  ;;  %v1645_v21 = vpack.c.bf16 %v250_v47, %v249_v35  ;;  %v2036_v57 = vpack.c.bf16 %v2033_v33, %v2031_v62 }
 0x248   : > { %v1563_v60 = vpop.f32.mrf.mxu1 }
 0x249   : > { %v2305_v30 = vmax.f32 %v2273_v53, 0.0  ;;  %v2008_v6 = vadd.f32 %v1944_v45, %v1811_v25  ;;  %v1625_v50 = vadd.f32 %v1563_v60, %v3821_v37 }
 0x24a   : > { %v2141_v20 = vpop.f32.mrf.mxu0 }
 0x24b   : > { %2337 = vst [vmem:[%s3950_s8 + $0x50] sm:$0xff] %v2305_v30  ;;  %v2202_v34 = vadd.f32 %v2138_v19, %v2008_v6  ;;  %1602 = vmatmul.bf16.gmra.mxu1 %v3828_v29  ;;  %1789 = vmatmul.bf16.gmra.mxu2 %v3832_v2  ;;  %v1836_v2 = vrot.slane %v250_v47, 1 }
 0x24c   : > { %1986 = vmatmul.bf16.gmra.mxu3 %v3834_v11  ;;  %v1838_v11 = vrot.slane %v251_v9, 1 }
 0x24d   : > { %2180 = vmatmul.bf16.gmra.mxu0 %v3998_v39  ;;  %v2238_v31 = vmul.f32 %v3936_v16, %v2202_v34  ;;  %v1837_v61 = vsel %vm332_vm0, %v1835_v1, %v1836_v2 }
 0x24e   : > { %v1750_v58 = vpop.f32.mrf.mxu2  ;;  %v1839_v49 = vsel %vm332_vm0, %v1836_v2, %v1838_v11 }
 0x24f   : > { %v2274_v56 = vadd.f32 %v3941_v28, %v2238_v31  ;;  %v1812_v46 = vadd.f32 %v1750_v58, %v1625_v50  ;;  %v1947_v52 = vpop.f32.mrf.mxu3  ;;  %v1842_v55 = vpack.c.bf16 %v1839_v49, %v1837_v61 }
 0x250   : > { %v1565_v29 = vpop.f32.mrf.mxu1 }
 0x251   : > { %v2306_v27 = vmax.f32 %v2274_v56, 0.0  ;;  %v2009_v42 = vadd.f32 %v1947_v52, %v1812_v46  ;;  %v1626_v4 = vadd.f32 %v1565_v29, %v3838_v22 }
 0x252   : > { %v2143_v7 = vpop.f32.mrf.mxu0 }
 0x253   : > { %2338 = vst [vmem:[%s3950_s8 + $0x58] sm:$0xff] %v2306_v27  ;;  %v2203_v37 = vadd.f32 %v2141_v20, %v2009_v42 }
 0x255   : > { %v2239_v41 = vmul.f32 %v3936_v16, %v2203_v37 }
 0x256   : > { %v1752_v10 = vpop.f32.mrf.mxu2 }
 0x257   : > { %v2275_v54 = vadd.f32 %v3941_v28, %v2239_v41  ;;  %v1813_v19 = vadd.f32 %v1752_v10, %v1626_v4  ;;  %v1949_v38 = vpop.f32.mrf.mxu3 }
 0x258   : > { %v1568_v17 = vpop.f32.mrf.mxu1 }
 0x259   : > { %v2307_v53 = vmax.f32 %v2275_v54, 0.0  ;;  %v2010_v25 = vadd.f32 %v1949_v38, %v1813_v19  ;;  %v1627_v30 = vadd.f32 %v1568_v17, %v3843_v24 }
 0x25a   : > { %v2146_v45 = vpop.f32.mrf.mxu0 }
 0x25b   : > { %2339 = vst [vmem:[%s3950_s8 + $0x60] sm:$0xff] %v2307_v53  ;;  %v2204_v60 = vadd.f32 %v2143_v7, %v2010_v25  ;;  %1607 = vmatmul.bf16.gmra.mxu1 %v3998_v39  ;;  %1794 = vmatmul.bf16.gmra.mxu2 %v1645_v21 }
 0x25c   : > { %1991 = vmatmul.bf16.gmra.mxu3 %v1842_v55 }
 0x25d   : > { %2185 = vmatmul.bf16.gmra.mxu0 %v2036_v57  ;;  %v2240_v22 = vmul.f32 %v3936_v16, %v2204_v60 }
 0x25e   : > { %v1755_v6 = vpop.f32.mrf.mxu2 }
 0x25f   : > { %v2276_v20 = vadd.f32 %v3941_v28, %v2240_v22  ;;  %v1814_v34 = vadd.f32 %v1755_v6, %v1627_v30  ;;  %v1952_v31 = vpop.f32.mrf.mxu3 }
 0x260   : > { %v1570_v50 = vpop.f32.mrf.mxu1 }
 0x261   : > { %v2308_v35 = vmax.f32 %v2276_v20, 0.0  ;;  %v2011_v47 = vadd.f32 %v1952_v31, %v1814_v34  ;;  %v1628_v56 = vadd.f32 %v1570_v50, %v3848_v40 }
 0x262   : > { %v2148_v9 = vpop.f32.mrf.mxu0 }
 0x263   : > { %2340 = vst [vmem:[%s3950_s8 + $0x68] sm:$0xff] %v2308_v35  ;;  %v2205_v58 = vadd.f32 %v2146_v45, %v2011_v47 }
 0x265   : > { %v2241_v39 = vmul.f32 %v3936_v16, %v2205_v58 }
 0x266   : > { %v1757_v46 = vpop.f32.mrf.mxu2 }
 0x267   : > { %v2277_v52 = vadd.f32 %v3941_v28, %v2241_v39  ;;  %v1815_v24 = vadd.f32 %v1757_v46, %v1628_v56  ;;  %v1954_v29 = vpop.f32.mrf.mxu3 }
 0x268   : > { %v1573_v1 = vpop.f32.mrf.mxu1 }
 0x269   : > { %v2309_v2 = vmax.f32 %v2277_v52, 0.0  ;;  %v2012_v26 = vadd.f32 %v1954_v29, %v1815_v24  ;;  %v1629_v7 = vadd.f32 %v1573_v1, %v3853_v36 }
 0x26a   : > { %v2151_v11 = vpop.f32.mrf.mxu0 }
 0x26b   : > { %2341 = vst [vmem:[%s3950_s8 + $0x70] sm:$0xff] %v2309_v2  ;;  %v2206_v27 = vadd.f32 %v2148_v9, %v2012_v26 }
 0x26d   : > { %v2242_v42 = vmul.f32 %v3936_v16, %v2206_v27 }
 0x26e   : > { %v1760_v12 = vpop.f32.mrf.mxu2 }
 0x26f   : > { %v2278_v14 = vadd.f32 %v3941_v28, %v2242_v42  ;;  %v1816_v40 = vadd.f32 %v1760_v12, %v1629_v7  ;;  %v1957_v37 = vpop.f32.mrf.mxu3 }
 0x270   : > { %v1575_v61 = vpop.f32.mrf.mxu1 }
 0x271   : > { %v2310_v49 = vmax.f32 %v2278_v14, 0.0  ;;  %v2013_v41 = vadd.f32 %v1957_v37, %v1816_v40  ;;  %v1630_v10 = vadd.f32 %v1575_v61, %v3858_v8 }
 0x272   : > { %v2153_v4 = vpop.f32.mrf.mxu0 }
 0x273   : > { %2342 = vst [vmem:[%s3950_s8 + $0x78] sm:$0xff] %v2310_v49  ;;  %v2207_v62 = vadd.f32 %v2151_v11, %v2013_v41 }
 0x275   : > { %v2243_v33 = vmul.f32 %v3936_v16, %v2207_v62 }
 0x276   : > { %v1762_v54 = vpop.f32.mrf.mxu2 }
 0x277   : > { %v2279_v19 = vadd.f32 %v3941_v28, %v2243_v33  ;;  %v1817_v36 = vadd.f32 %v1762_v54, %v1630_v10  ;;  %v1959_v38 = vpop.f32.mrf.mxu3 }
 0x278   : > { %v1578_v21 = vpop.f32.mrf.mxu1 }
 0x279   : > { %v2311_v17 = vmax.f32 %v2279_v19, 0.0  ;;  %v2014_v55 = vadd.f32 %v1959_v38, %v1817_v36  ;;  %v1631_v45 = vadd.f32 %v1578_v21, %v3863_v5 }
 0x27a   : > { %v2156_v57 = vpop.f32.mrf.mxu0 }
 0x27b   : > { %2343 = vst [vmem:[%s3950_s8 + $0x80] sm:$0xff] %v2311_v17  ;;  %v2208_v53 = vadd.f32 %v2153_v4, %v2014_v55 }
 0x27d   : > { %v2244_v25 = vmul.f32 %v3936_v16, %v2208_v53 }
 0x27e   : > { %v1765_v60 = vpop.f32.mrf.mxu2 }
 0x27f   : > { %v2280_v22 = vadd.f32 %v3941_v28, %v2244_v25  ;;  %v1818_v8 = vadd.f32 %v1765_v60, %v1631_v45  ;;  %v1962_v30 = vpop.f32.mrf.mxu3 }
 0x280   : > { %v1580_v6 = vpop.f32.mrf.mxu1 }
 0x281   : > { %v2312_v20 = vmax.f32 %v2280_v22, 0.0  ;;  %v2015_v34 = vadd.f32 %v1962_v30, %v1818_v8  ;;  %v1632_v47 = vadd.f32 %v1580_v6, %v3868_v44 }
 0x282   : > { %v2158_v31 = vpop.f32.mrf.mxu0 }
 0x283   : > { %2344 = vst [vmem:[%s3950_s8 + $0x88] sm:$0xff] %v2312_v20  ;;  %v2209_v50 = vadd.f32 %v2156_v57, %v2015_v34 }
 0x285   : > { %v2245_v35 = vmul.f32 %v3936_v16, %v2209_v50 }
 0x286   : > { %v1767_v9 = vpop.f32.mrf.mxu2 }
 0x287   : > { %v2281_v58 = vadd.f32 %v3941_v28, %v2245_v35  ;;  %v1819_v5 = vadd.f32 %v1767_v9, %v1632_v47  ;;  %v1964_v39 = vpop.f32.mrf.mxu3 }
 0x288   : > { %v1583_v56 = vpop.f32.mrf.mxu1 }
 0x289   : > { %v2313_v46 = vmax.f32 %v2281_v58, 0.0  ;;  %v2016_v52 = vadd.f32 %v1964_v39, %v1819_v5  ;;  %v1633_v2 = vadd.f32 %v1583_v56, %v3873_v63 }
 0x28a   : > { %v2161_v24 = vpop.f32.mrf.mxu0 }
 0x28b   : > { %2345 = vst [vmem:[%s3950_s8 + $0x90] sm:$0xff] %v2313_v46  ;;  %v2210_v29 = vadd.f32 %v2158_v31, %v2016_v52 }
 0x28d   : > { %v2246_v1 = vmul.f32 %v3936_v16, %v2210_v29 }
 0x28e   : > { %v1770_v26 = vpop.f32.mrf.mxu2 }
 0x28f   : > { %v2282_v11 = vadd.f32 %v3941_v28, %v2246_v1  ;;  %v1820_v44 = vadd.f32 %v1770_v26, %v1633_v2  ;;  %v1967_v27 = vpop.f32.mrf.mxu3 }
 0x290   : > { %v1585_v42 = vpop.f32.mrf.mxu1 }
 0x291   : > { %v2314_v7 = vmax.f32 %v2282_v11, 0.0  ;;  %v2017_v12 = vadd.f32 %v1967_v27, %v1820_v44  ;;  %v1634_v61 = vadd.f32 %v1585_v42, %v3878_v0 }
 0x292   : > { %v2163_v14 = vpop.f32.mrf.mxu0 }
 0x293   : > { %2346 = vst [vmem:[%s3950_s8 + $0x98] sm:$0xff] %v2314_v7  ;;  %v2211_v40 = vadd.f32 %v2161_v24, %v2017_v12 }
 0x295   : > { %v2247_v37 = vmul.f32 %v3936_v16, %v2211_v40 }
 0x296   : > { %v1772_v49 = vpop.f32.mrf.mxu2 }
 0x297   : > { %v2283_v41 = vadd.f32 %v3941_v28, %v2247_v37  ;;  %v1821_v63 = vadd.f32 %v1772_v49, %v1634_v61  ;;  %v1969_v4 = vpop.f32.mrf.mxu3 }
 0x298   : > { %v1588_v62 = vpop.f32.mrf.mxu1 }
 0x299   : > { %v2315_v33 = vmax.f32 %v2283_v41, 0.0  ;;  %v2018_v10 = vadd.f32 %v1969_v4, %v1821_v63  ;;  %v1635_v38 = vadd.f32 %v1588_v62, %v3883_v3 }
 0x29a   : > { %v2166_v54 = vpop.f32.mrf.mxu0 }
 0x29b   : > { %2347 = vst [vmem:[%s3950_s8 + $0xa0] sm:$0xff] %v2315_v33  ;;  %v2212_v19 = vadd.f32 %v2163_v14, %v2018_v10 }
 0x29d   : > { %v2248_v36 = vmul.f32 %v3936_v16, %v2212_v19 }
 0x29e   : > { %v1775_v21 = vpop.f32.mrf.mxu2 }
 0x29f   : > { %v2284_v17 = vadd.f32 %v3941_v28, %v2248_v36  ;;  %v1822_v0 = vadd.f32 %v1775_v21, %v1635_v38  ;;  %v1972_v55 = vpop.f32.mrf.mxu3 }
 0x2a0   : > { %v1590_v57 = vpop.f32.mrf.mxu1 }
 0x2a1   : > { %v2316_v53 = vmax.f32 %v2284_v17, 0.0  ;;  %v2019_v25 = vadd.f32 %v1972_v55, %v1822_v0  ;;  %v1636_v8 = vadd.f32 %v1590_v57, %v3888_v23 }
 0x2a2   : > { %v2168_v45 = vpop.f32.mrf.mxu0 }
 0x2a3   : > { %2348 = vst [vmem:[%s3950_s8 + $0xa8] sm:$0xff] %v2316_v53  ;;  %v2213_v60 = vadd.f32 %v2166_v54, %v2019_v25 }
 0x2a5   : > { %v2249_v22 = vmul.f32 %v3936_v16, %v2213_v60 }
 0x2a6   : > { %v1777_v30 = vpop.f32.mrf.mxu2 }
 0x2a7   : > { %v2285_v6 = vadd.f32 %v3941_v28, %v2249_v22  ;;  %v1823_v3 = vadd.f32 %v1777_v30, %v1636_v8  ;;  %v1974_v20 = vpop.f32.mrf.mxu3 }
 0x2a8   : > { %v1593_v34 = vpop.f32.mrf.mxu1 }
 0x2a9   : > { %v2317_v31 = vmax.f32 %v2285_v6, 0.0  ;;  %v2020_v50 = vadd.f32 %v1974_v20, %v1823_v3  ;;  %v1637_v58 = vadd.f32 %v1593_v34, %v3893_v59 }
 0x2aa   : > { %v2171_v35 = vpop.f32.mrf.mxu0 }
 0x2ab   : > { %2349 = vst [vmem:[%s3950_s8 + $0xb0] sm:$0xff] %v2317_v31  ;;  %v2214_v47 = vadd.f32 %v2168_v45, %v2020_v50 }
 0x2ad   : > { %v2250_v9 = vmul.f32 %v3936_v16, %v2214_v47 }
 0x2ae   : > { %v1780_v5 = vpop.f32.mrf.mxu2 }
 0x2af   : > { %v2286_v39 = vadd.f32 %v3941_v28, %v2250_v9  ;;  %v1824_v23 = vadd.f32 %v1780_v5, %v1637_v58  ;;  %v1977_v56 = vpop.f32.mrf.mxu3 }
 0x2b0   : > { %v1595_v46 = vpop.f32.mrf.mxu1 }
 0x2b1   : > { %v2318_v52 = vmax.f32 %v2286_v39, 0.0  ;;  %v2021_v24 = vadd.f32 %v1977_v56, %v1824_v23  ;;  %v1638_v26 = vadd.f32 %v1595_v46, %v3898_v48 }
 0x2b2   : > { %v2173_v29 = vpop.f32.mrf.mxu0 }
 0x2b3   : > { %2350 = vst [vmem:[%s3950_s8 + $0xb8] sm:$0xff] %v2318_v52  ;;  %v2215_v1 = vadd.f32 %v2171_v35, %v2021_v24 }
 0x2b5   : > { %v2251_v2 = vmul.f32 %v3936_v16, %v2215_v1 }
 0x2b6   : > { %v1782_v11 = vpop.f32.mrf.mxu2 }
 0x2b7   : > { %v2287_v44 = vadd.f32 %v3941_v28, %v2251_v2  ;;  %v1825_v59 = vadd.f32 %v1782_v11, %v1638_v26  ;;  %v1979_v27 = vpop.f32.mrf.mxu3 }
 0x2b8   : > { %v1598_v42 = vpop.f32.mrf.mxu1 }
 0x2b9   : > { %v2319_v7 = vmax.f32 %v2287_v44, 0.0  ;;  %v2022_v12 = vadd.f32 %v1979_v27, %v1825_v59  ;;  %v1639_v61 = vadd.f32 %v1598_v42, %v3903_v15 }
 0x2ba   : > { %v2176_v14 = vpop.f32.mrf.mxu0 }
 0x2bb   : > { %2351 = vst [vmem:[%s3950_s8 + $0xc0] sm:$0xff] %v2319_v7  ;;  %v2216_v40 = vadd.f32 %v2173_v29, %v2022_v12 }
 0x2bd   : > { %v2252_v37 = vmul.f32 %v3936_v16, %v2216_v40 }
 0x2be   : > { %v1785_v49 = vpop.f32.mrf.mxu2 }
 0x2bf   : > { %v2288_v41 = vadd.f32 %v3941_v28, %v2252_v37  ;;  %v1826_v48 = vadd.f32 %v1785_v49, %v1639_v61  ;;  %v1982_v63 = vpop.f32.mrf.mxu3 }
 0x2c0   : > { %v1600_v4 = vpop.f32.mrf.mxu1 }
 0x2c1   : > { %v2320_v62 = vmax.f32 %v2288_v41, 0.0  ;;  %v2023_v33 = vadd.f32 %v1982_v63, %v1826_v48  ;;  %v1640_v36 = vadd.f32 %v1600_v4, %v3908_v43 }
 0x2c2   : > { %v2178_v10 = vpop.f32.mrf.mxu0 }
 0x2c3   : > { %2352 = vst [vmem:[%s3950_s8 + $0xc8] sm:$0xff] %v2320_v62  ;;  %v2217_v54 = vadd.f32 %v2176_v14, %v2023_v33 }
 0x2c5   : > { %v2253_v19 = vmul.f32 %v3936_v16, %v2217_v54 }
 0x2c6   : > { %v1787_v38 = vpop.f32.mrf.mxu2 }
 0x2c7   : > { %v2289_v21 = vadd.f32 %v3941_v28, %v2253_v19  ;;  %v1827_v15 = vadd.f32 %v1787_v38, %v1640_v36  ;;  %v1984_v17 = vpop.f32.mrf.mxu3 }
 0x2c8   : > { %v1603_v0 = vpop.f32.mrf.mxu1 }
 0x2c9   : > { %v2321_v55 = vmax.f32 %v2289_v21, 0.0  ;;  %v2024_v57 = vadd.f32 %v1984_v17, %v1827_v15  ;;  %v1641_v60 = vadd.f32 %v1603_v0, %v3913_v51 }
 0x2ca   : > { %v2181_v25 = vpop.f32.mrf.mxu0 }
 0x2cb   : > { %2353 = vst [vmem:[%s3950_s8 + $0xd0] sm:$0xff] %v2321_v55  ;;  %v2218_v53 = vadd.f32 %v2178_v10, %v2024_v57 }
 0x2cd   : > { %v2254_v45 = vmul.f32 %v3936_v16, %v2218_v53 }
 0x2ce   : > { %v1790_v22 = vpop.f32.mrf.mxu2 }
 0x2cf   : > { %v2290_v8 = vadd.f32 %v3941_v28, %v2254_v45  ;;  %v1828_v43 = vadd.f32 %v1790_v22, %v1641_v60  ;;  %v1987_v30 = vpop.f32.mrf.mxu3 }
 0x2d0   : > { %v1605_v6 = vpop.f32.mrf.mxu1 }
 0x2d1   : > { %v2322_v3 = vmax.f32 %v2290_v8, 0.0  ;;  %v2025_v20 = vadd.f32 %v1987_v30, %v1828_v43  ;;  %v1642_v50 = vadd.f32 %v1605_v6, %v3918_v13 }
 0x2d2   : > { %v2183_v35 = vpop.f32.mrf.mxu0 }
 0x2d3   : > { %2354 = vst [vmem:[%s3950_s8 + $0xd8] sm:$0xff] %v2322_v3  ;;  %v2219_v34 = vadd.f32 %v2181_v25, %v2025_v20 }
 0x2d5   : > { %v2255_v31 = vmul.f32 %v3936_v16, %v2219_v34 }
 0x2d6   : > { %v1792_v47 = vpop.f32.mrf.mxu2 }
 0x2d7   : > { %v2291_v9 = vadd.f32 %v3941_v28, %v2255_v31  ;;  %v1829_v51 = vadd.f32 %v1792_v47, %v1642_v50  ;;  %v1989_v58 = vpop.f32.mrf.mxu3 }
 0x2d8   : > { %v1608_v5 = vpop.f32.mrf.mxu1 }
 0x2d9   : > { %v2323_v39 = vmax.f32 %v2291_v9, 0.0  ;;  %v2026_v23 = vadd.f32 %v1989_v58, %v1829_v51  ;;  %v1643_v52 = vadd.f32 %v1608_v5, %v3923_v18 }
 0x2da   : > { %v2186_v2 = vpop.f32.mrf.mxu0 }
 0x2db   : > { %2355 = vst [vmem:[%s3950_s8 + $0xe0] sm:$0xff] %v2323_v39  ;;  %v2220_v56 = vadd.f32 %v2183_v35, %v2026_v23 }
 0x2dd   : > { %v2256_v46 = vmul.f32 %v3936_v16, %v2220_v56 }
 0x2de   : > { %v1795_v24 = vpop.f32.mrf.mxu2 }
 0x2df   : > { %v2292_v29 = vadd.f32 %v3941_v28, %v2256_v46  ;;  %v1830_v13 = vadd.f32 %v1795_v24, %v1643_v52  ;;  %v1992_v1 = vpop.f32.mrf.mxu3 }
 0x2e0   : > { %v1610_v44 = vpop.f32.mrf.mxu1 }
 0x2e1   : > { %v2324_v26 = vmax.f32 %v2292_v29, 0.0  ;;  %v2027_v11 = vadd.f32 %v1992_v1, %v1830_v13  ;;  %v1644_v42 = vadd.f32 %v1610_v44, %v3928_v32 }
 0x2e2   : > { %v2188_v61 = vpop.f32.mrf.mxu0 }
 0x2e3   : > { %2356 = vst [vmem:[%s3950_s8 + $0xe8] sm:$0xff] %v2324_v26  ;;  %v2221_v59 = vadd.f32 %v2186_v2, %v2027_v11 }
 0x2e5   : > { %v2257_v27 = vmul.f32 %v3936_v16, %v2221_v59 }
 0x2e6   : > { %v1797_v7 = vpop.f32.mrf.mxu2 }
 0x2e7   : > { %v2293_v18 = vadd.f32 %v3941_v28, %v2257_v27  ;;  %v1831_v12 = vadd.f32 %v1797_v7, %v1644_v42  ;;  %v1994_v14 = vpop.f32.mrf.mxu3 }
 0x2e9   : > { %v2325_v40 = vmax.f32 %v2293_v18, 0.0  ;;  %v2028_v37 = vadd.f32 %v1994_v14, %v1831_v12 }
 0x2eb   : > { %2357 = vst [vmem:[%s3950_s8 + $0xf0] sm:$0xff] %v2325_v40  ;;  %v2222_v49 = vadd.f32 %v2188_v61, %v2028_v37 }
 0x2ed   : > { %v2258_v41 = vmul.f32 %v3936_v16, %v2222_v49 }
 0x2ef   : > { %v2294_v48 = vadd.f32 %v3941_v28, %v2258_v41 }
 0x2f1   : > { %v2326_v63 = vmax.f32 %v2294_v48, 0.0 }
 0x2f3   : > { %2358 = vst [vmem:[%s3950_s8 + $0xf8] sm:$0xff] %v2326_v63 }
 0x2f4 PF: > { %s14_s15 = sadd.s32 1, %s2955_s15  }
 0x2f5   : > { %p11_p4 = scmp.ge.s32.totalorder %s14_s15, 4  }
 0x2f7   :  { %13 = sbr.rel (!%p11_p4) target bundleno = 1 (0x1), region = 74 }

</bundles_post_ra>
